<compile_context>
chip_gen: v7x
topology: tpu7x:2x2x1
jax: 0.10.0
libtpu: 0.0.40
codegen_flags: <defaults>
</compile_context>

<pallas_src>
import jax
import jax.numpy as jnp
from jax.experimental import pallas as pl
from jax.experimental.pallas import tpu as pltpu


def event_decoder_kernel(
    use_label_ref,                                   # scalar prefetch: [T-1] int32 (SMEM)
    emb_lab_ref,                                     # [T-1, B, E] teacher-forced label embeddings
    hid0_ref,                                        # [B, Hd]     initial decoder hidden
    enc_ref,                                         # [B, S, He]  encoder outputs
    encproj_ref,                                     # [B, S*Hd]   hoisted enc @ W_e + b_attn (lane-dense)
    whid_ref,                                        # [Hd, S*Hd + 3*Hd] fused hid-LHS weight
    bgh_ref,                                         # [1, 3*Hd]
    wgx_ref,                                         # [E+He, 3*Hd]
    bgx_ref,                                         # [1, 3*Hd]
    wfc_ref,                                         # [Hd+He+E, Vp]
    bfc_ref,                                         # [1, Vp] (-1e30 on padded logit columns)
    embtab_ref,                                      # [Vp, E] padded embedding table
    vblk_ref,                                        # [S*Hd, S] block-diagonal copies of v_attn
    out_ref,                                         # [T-1, B, Vp] all decode-step logits
    nemb_scr,                                        # [B, E] VMEM: next step's decoder-input embedding
):
    Tm1, B, Vp = out_ref.shape
    S = enc_ref.shape[1]
    Hd = hid0_ref.shape[1]
    SH = S * Hd

    hid = hid0_ref[...]                              # carried in vregs across the unrolled loop

    for t in range(Tm1):                             # fully unrolled: no per-step grid/pipeline overhead
        emb = emb_lab_ref[0] if t == 0 else nemb_scr[...]                 # [B, E]

        # ---- single fused hid-LHS matmul: [B,Hd] @ [Hd, S*Hd + 3*Hd] ------------
        hg = jnp.dot(hid, whid_ref[...], preferred_element_type=jnp.float32)
        e_h = hg[:, :SH]                                                  # W_h h, already S-tiled along lanes
        gh = hg[:, SH:] + bgh_ref[...]                                    # [B, 3*Hd]

        # ---- Bahdanau attention (lane-dense energy, MXU score reduction) --------
        energy = jnp.tanh(encproj_ref[...] + e_h)                         # [B, S*Hd]
        scores = jnp.dot(energy, vblk_ref[...],
                         preferred_element_type=jnp.float32)              # [B, S]
        scores = scores - jnp.max(scores, axis=-1, keepdims=True)
        p = jnp.exp(scores)
        inv = pl.reciprocal(jnp.sum(p, axis=-1, keepdims=True), approx=False)
        a = p * inv                                                       # [B, S]
        weighted = jnp.sum(a[:, :, None] * enc_ref[...], axis=1)          # [B, He]

        # ---- single GRU step, gates (r, z, n) fused along lanes ------------------
        x = jnp.concatenate([emb, weighted], axis=-1)                     # [B, E+He]
        gx = jnp.dot(x, wgx_ref[...], preferred_element_type=jnp.float32) + bgx_ref[...]
        r = jax.nn.sigmoid(gx[:, 0:Hd] + gh[:, 0:Hd])
        z = jax.nn.sigmoid(gx[:, Hd:2 * Hd] + gh[:, Hd:2 * Hd])
        n = jnp.tanh(gx[:, 2 * Hd:3 * Hd] + r * gh[:, 2 * Hd:3 * Hd])
        h_new = (1.0 - z) * n + z * hid                                   # [B, Hd]

        # ---- fc_out over cat(output, weighted, embedded), one fused matmul -------
        feat = jnp.concatenate([h_new, weighted, emb], axis=-1)           # [B, Hd+He+E]
        pred = jnp.dot(feat, wfc_ref[...], preferred_element_type=jnp.float32) + bfc_ref[...]

        out_ref[t] = pred                                                 # lane-dense [B, Vp] store
        hid = h_new

        # ---- decoder input for step t+1 (statically skipped on last step) --------
        if t + 1 < Tm1:
            take_label = use_label_ref[t + 1] > 0

            @pl.when(take_label)
            def _copy_label(t=t):
                nemb_scr[...] = emb_lab_ref[t + 1]

            @pl.when(jnp.logical_not(take_label))
            def _greedy(pred=pred):
                # first-max tie-break with max/min reductions (matches jnp.argmax)
                col = jax.lax.broadcasted_iota(jnp.int32, pred.shape, 1)  # [B, Vp]
                m = jnp.max(pred, axis=-1, keepdims=True)
                big = jnp.where(pred >= m, col, Vp)
                amax = jnp.min(big, axis=-1, keepdims=True)               # [B, 1]
                onehot = (col == amax).astype(jnp.float32)                # [B, Vp]
                nemb_scr[...] = jnp.dot(onehot, embtab_ref[...],
                                        preferred_element_type=jnp.float32)  # [B, E]


def event_generator_forward(label_ids, hidden, encoder_outputs, use_label, params):
    """Full EventGenerator decode loop. Returns outputs [B, T, V] (row t=0 is zeros)."""
    B, T = label_ids.shape
    Tm1 = T - 1
    S, He = encoder_outputs.shape[1], encoder_outputs.shape[2]
    Hd = hidden.shape[1]
    E = params['embedding'].shape[1]
    V = params['w_fc'].shape[1]
    Vp = pl.cdiv(V, 128) * 128

    # ---- one-time glue, all hoisted out of the serial kernel -----------------------
    emb_labels = jnp.take(params['embedding'], label_ids[:, :Tm1].T, axis=0)        # [T-1, B, E]

    # step-invariant encoder projection (hoisted), stored lane-dense as [B, S*Hd]
    enc_proj = (jnp.einsum('bse,eh->bsh', encoder_outputs, params['w_attn_e'])
                + params['b_attn'][None, :, :])
    enc_proj_flat = enc_proj.reshape(B, S * Hd)

    # fused hid-LHS weight: S lane-tiled copies of w_attn_h | GRU hidden-gate weights
    w_hid_fused = jnp.concatenate(
        [jnp.tile(params['w_attn_h'], (1, S)), params['w_gru_h']], axis=1)           # [Hd, S*Hd+3*Hd]

    # block-diagonal v_attn: scores = energy_flat @ v_blk is one MXU matmul
    v_blk = (jnp.eye(S, dtype=jnp.float32)[:, None, :]
             * params['v_attn'][0][None, :, None]).reshape(S * Hd, S)                # [S*Hd, S]

    # lane-padded fc_out / embedding table (padded logit cols get -1e30 so argmax ignores them)
    w_fc_p = jnp.zeros((Hd + He + E, Vp), jnp.float32).at[:, :V].set(params['w_fc'])
    b_fc_p = jnp.full((1, Vp), -1e30, jnp.float32).at[:, :V].set(params['b_fc'])
    emb_tab_p = jnp.zeros((Vp, E), jnp.float32).at[:V, :].set(params['embedding'])

    c2 = lambda i, ul: (0, 0)
    c3 = lambda i, ul: (0, 0, 0)
    grid_spec = pltpu.PrefetchScalarGridSpec(
        num_scalar_prefetch=1,
        grid=(1,),                                        # whole decode loop in one grid step
        in_specs=[
            pl.BlockSpec((Tm1, B, E), c3),                # label-embedding slab (VMEM-resident)
            pl.BlockSpec((B, Hd), c2),                    # initial hidden
            pl.BlockSpec((B, S, He), c3),                 # encoder outputs
            pl.BlockSpec((B, S * Hd), c2),                # hoisted encoder projection (flat)
            pl.BlockSpec((Hd, S * Hd + 3 * Hd), c2),      # fused hid-LHS weight
            pl.BlockSpec((1, 3 * Hd), c2),                # b_gru_h
            pl.BlockSpec((E + He, 3 * Hd), c2),           # w_gru_x
            pl.BlockSpec((1, 3 * Hd), c2),                # b_gru_x
            pl.BlockSpec((Hd + He + E, Vp), c2),          # w_fc (padded)
            pl.BlockSpec((1, Vp), c2),                    # b_fc (padded)
            pl.BlockSpec((Vp, E), c2),                    # embedding table (padded)
            pl.BlockSpec((S * Hd, S), c2),                # block-diag v_attn
        ],
        out_specs=pl.BlockSpec((Tm1, B, Vp), c3),
        scratch_shapes=[pltpu.VMEM((B, E), jnp.float32)],  # next-step decoder-input embedding
    )

    out = pl.pallas_call(
        event_decoder_kernel,
        out_shape=jax.ShapeDtypeStruct((Tm1, B, Vp), jnp.float32),
        grid_spec=grid_spec,
        compiler_params=pltpu.CompilerParams(dimension_semantics=("arbitrary",)),
    )(use_label, emb_labels, hidden, encoder_outputs, enc_proj_flat,
      w_hid_fused, params['b_gru_h'], params['w_gru_x'], params['b_gru_x'],
      w_fc_p, b_fc_p, emb_tab_p, v_blk)

    dec_outs = jnp.transpose(out[:, :, :V], (1, 0, 2))                               # [B, T-1, V]
    return jnp.concatenate([jnp.zeros((B, 1, V), jnp.float32), dec_outs], axis=1)


def init_params(key, V, E, He, Hd):
    # weights ~ N(0, 0.01), biases = 0 (deterministic via PRNGKey), pre-fused layout.
    std = 0.01
    keys = jax.random.split(key, 7)
    w = lambda k, shape: std * jax.random.normal(k, shape, dtype=jnp.float32)
    return {
        'embedding': w(keys[0], (V, E)),
        # attention: Linear(He+Hd -> Hd) split into h-part / enc-part, v: Linear(Hd -> 1)
        'w_attn_h': w(keys[1], (Hd, Hd)),
        'w_attn_e': w(keys[2], (He, Hd)),
        'b_attn':   jnp.zeros((1, Hd), jnp.float32),
        'v_attn':   w(keys[3], (1, Hd)),
        # GRU(input = E + He, hidden = Hd), gates (r, z, n) stacked along lanes
        'w_gru_x':  w(keys[4], (E + He, 3 * Hd)),
        'w_gru_h':  w(keys[5], (Hd, 3 * Hd)),
        'b_gru_x':  jnp.zeros((1, 3 * Hd), jnp.float32),
        'b_gru_h':  jnp.zeros((1, 3 * Hd), jnp.float32),
        # fc_out(Hd + He + E -> V), columns match cat(output, weighted, embedded)
        'w_fc':     w(keys[6], (Hd + He + E, V)),
        'b_fc':     jnp.zeros((1, V), jnp.float32),
    }


def reference_forward(label_ids, hidden, encoder_outputs, use_label, params):
    # Pure-JAX mirror of the PyTorch EventGenerator.forward (for correctness check).
    B, T = label_ids.shape
    V = params['w_fc'].shape[1]
    Hd = hidden.shape[1]
    enc = encoder_outputs
    enc_proj = (jnp.einsum('bse,eh->bsh', enc, params['w_attn_e'])
                + params['b_attn'][None, :, :])
    outs = [jnp.zeros((B, V), jnp.float32)]
    hid = hidden
    prev_pred = None
    for g in range(T - 1):
        if g == 0:
            emb = params['embedding'][label_ids[:, 0]]
        else:
            greedy = params['embedding'][jnp.argmax(prev_pred, axis=-1)]
            lab = params['embedding'][label_ids[:, g]]
            emb = jnp.where(use_label[g] > 0, lab, greedy)
        e_h = hid @ params['w_attn_h']
        energy = jnp.tanh(enc_proj + e_h[:, None, :])
        s = jnp.sum(energy * params['v_attn'][None, :, :], axis=-1)
        a = jax.nn.softmax(s, axis=-1)
        weighted = jnp.einsum('bs,bse->be', a, enc)
        x = jnp.concatenate([emb, weighted], axis=-1)
        gx = x @ params['w_gru_x'] + params['b_gru_x']
        gh = hid @ params['w_gru_h'] + params['b_gru_h']
        r = jax.nn.sigmoid(gx[:, :Hd] + gh[:, :Hd])
        z = jax.nn.sigmoid(gx[:, Hd:2 * Hd] + gh[:, Hd:2 * Hd])
        n = jnp.tanh(gx[:, 2 * Hd:] + r * gh[:, 2 * Hd:])
        hid = (1.0 - z) * n + z * hid
        feat = jnp.concatenate([hid, weighted, emb], axis=-1)
        pred = feat @ params['w_fc'] + params['b_fc']
        outs.append(pred)
        prev_pred = pred
    return jnp.stack(outs, axis=1)                                                   # [B, T, V]


if __name__ == "__main__":
    # TODO(synk): the external encoder (BERT-like) and host-side generate() dedup loop
    # are not translated; encoder_outputs/hidden are inputs and teacher-forcing coins
    # are a precomputed deterministic mask (python random.random in the original).
    B, S, E, He, Hd, V, T = 8, 8, 16, 32, 32, 64, 6
    key = jax.random.PRNGKey(0)
    kp, k1, k2, k3, k4 = jax.random.split(key, 5)

    params = init_params(kp, V, E, He, Hd)
    label_ids = jax.random.randint(k1, (B, T), 0, V, dtype=jnp.int32)
    hidden = jax.random.normal(k2, (B, Hd), dtype=jnp.float32)
    encoder_outputs = jax.random.normal(k3, (B, S, He), dtype=jnp.float32)
    coins = jax.random.uniform(k4, (T - 1,)) < 0.5        # teacher_forcing_ratio = 0.5
    use_label = coins.at[0].set(True).astype(jnp.int32)   # first input is always label_ids[:,0]

    outputs = event_generator_forward(label_ids, hidden, encoder_outputs, use_label, params)
    jax.block_until_ready(outputs)

    ref = reference_forward(label_ids, hidden, encoder_outputs, use_label, params)
    assert outputs.shape == (B, T, V)
    assert jnp.allclose(outputs, ref, atol=1e-4, rtol=1e-4)

    print("KERNEL_OK")
</pallas_src>

<mosaic_0001>
module attributes {stable_mosaic.version = 11 : i64} {
  func.func @event_decoder_kernel(%arg0: i32, %arg1: memref<5xi32, #tpu.memory_space<smem>>, %arg2: memref<5x8x16xf32, #tpu.memory_space<vmem>>, %arg3: memref<8x32xf32, #tpu.memory_space<vmem>>, %arg4: memref<8x8x32xf32, #tpu.memory_space<vmem>>, %arg5: memref<8x256xf32, #tpu.memory_space<vmem>>, %arg6: memref<32x352xf32, #tpu.memory_space<vmem>>, %arg7: memref<1x96xf32, #tpu.memory_space<vmem>>, %arg8: memref<48x96xf32, #tpu.memory_space<vmem>>, %arg9: memref<1x96xf32, #tpu.memory_space<vmem>>, %arg10: memref<80x128xf32, #tpu.memory_space<vmem>>, %arg11: memref<1x128xf32, #tpu.memory_space<vmem>>, %arg12: memref<128x16xf32, #tpu.memory_space<vmem>>, %arg13: memref<256x8xf32, #tpu.memory_space<vmem>>, %arg14: memref<5x8x128xf32, #tpu.memory_space<vmem>>, %arg15: memref<8x16xf32, #tpu.memory_space<vmem>>) attributes {dimension_semantics = [#tpu.dimension_semantics<arbitrary>], iteration_bounds = array<i64: 1>, scalar_prefetch = 1 : i64, scratch_operands = 1 : i64, tpu.core_type = #tpu.core_type<tc>, window_params = [{pipeline_mode = #tpu.pipeline_mode<synchronous>, transform_indices = @transform_0, window_bounds = array<i64: 5, 8, 16>}, {pipeline_mode = #tpu.pipeline_mode<synchronous>, transform_indices = @transform_1, window_bounds = array<i64: 8, 32>}, {pipeline_mode = #tpu.pipeline_mode<synchronous>, transform_indices = @transform_2, window_bounds = array<i64: 8, 8, 32>}, {pipeline_mode = #tpu.pipeline_mode<synchronous>, transform_indices = @transform_3, window_bounds = array<i64: 8, 256>}, {pipeline_mode = #tpu.pipeline_mode<synchronous>, transform_indices = @transform_4, window_bounds = array<i64: 32, 352>}, {pipeline_mode = #tpu.pipeline_mode<synchronous>, transform_indices = @transform_5, window_bounds = array<i64: 1, 96>}, {pipeline_mode = #tpu.pipeline_mode<synchronous>, transform_indices = @transform_6, window_bounds = array<i64: 48, 96>}, {pipeline_mode = #tpu.pipeline_mode<synchronous>, transform_indices = @transform_7, window_bounds = array<i64: 1, 96>}, {pipeline_mode = #tpu.pipeline_mode<synchronous>, transform_indices = @transform_8, window_bounds = array<i64: 80, 128>}, {pipeline_mode = #tpu.pipeline_mode<synchronous>, transform_indices = @transform_9, window_bounds = array<i64: 1, 128>}, {pipeline_mode = #tpu.pipeline_mode<synchronous>, transform_indices = @transform_10, window_bounds = array<i64: 128, 16>}, {pipeline_mode = #tpu.pipeline_mode<synchronous>, transform_indices = @transform_11, window_bounds = array<i64: 256, 8>}, {pipeline_mode = #tpu.pipeline_mode<synchronous>, transform_indices = @transform_12, window_bounds = array<i64: 5, 8, 128>}]} {
    %c0 = arith.constant 0 : index
    %c0_0 = arith.constant 0 : index
    %0 = vector.load %arg3[%c0, %c0_0] : memref<8x32xf32, #tpu.memory_space<vmem>>, vector<8x32xf32>
    %c0_1 = arith.constant 0 : index
    %c0_2 = arith.constant 0 : index
    %c0_3 = arith.constant 0 : index
    %1 = vector.load %arg2[%c0_1, %c0_2, %c0_3] : memref<5x8x16xf32, #tpu.memory_space<vmem>>, vector<1x8x16xf32>
    %2 = vector.shape_cast %1 : vector<1x8x16xf32> to vector<8x16xf32>
    %c0_4 = arith.constant 0 : index
    %c0_5 = arith.constant 0 : index
    %3 = vector.load %arg6[%c0_4, %c0_5] : memref<32x352xf32, #tpu.memory_space<vmem>>, vector<32x352xf32>
    %cst = arith.constant dense<0.000000e+00> : vector<8x352xf32>
    %4 = tpu.matmul %0, %3, %cst {dimension_numbers = #tpu.dot_dimension_numbers<[1], [0], [0], [1], [0, 0, 1, 1], [], []>} : vector<8x32xf32>, vector<32x352xf32>, vector<8x352xf32> -> vector<8x352xf32>
    %5 = vector.extract_strided_slice %4 {offsets = [0, 0], sizes = [8, 256], strides = [1, 1]} : vector<8x352xf32> to vector<8x256xf32>
    %6 = vector.extract_strided_slice %4 {offsets = [0, 256], sizes = [8, 96], strides = [1, 1]} : vector<8x352xf32> to vector<8x96xf32>
    %c0_6 = arith.constant 0 : index
    %c0_7 = arith.constant 0 : index
    %7 = vector.load %arg7[%c0_6, %c0_7] : memref<1x96xf32, #tpu.memory_space<vmem>>, vector<1x96xf32>
    %8 = vector.broadcast %7 : vector<1x96xf32> to vector<8x96xf32>
    %9 = arith.addf %6, %8 : vector<8x96xf32>
    %c0_8 = arith.constant 0 : index
    %c0_9 = arith.constant 0 : index
    %10 = vector.load %arg5[%c0_8, %c0_9] : memref<8x256xf32, #tpu.memory_space<vmem>>, vector<8x256xf32>
    %11 = arith.addf %10, %5 : vector<8x256xf32>
    %12 = math.tanh %11 : vector<8x256xf32>
    %c0_10 = arith.constant 0 : index
    %c0_11 = arith.constant 0 : index
    %13 = vector.load %arg13[%c0_10, %c0_11] : memref<256x8xf32, #tpu.memory_space<vmem>>, vector<256x8xf32>
    %cst_12 = arith.constant dense<0.000000e+00> : vector<8x8xf32>
    %14 = tpu.matmul %12, %13, %cst_12 {dimension_numbers = #tpu.dot_dimension_numbers<[1], [0], [0], [1], [0, 0, 1, 1], [], []>} : vector<8x256xf32>, vector<256x8xf32>, vector<8x8xf32> -> vector<8x8xf32>
    %cst_13 = arith.constant dense<0xFF800000> : vector<8xf32>
    %15 = vector.multi_reduction <maximumf>, %14, %cst_13 [1] : vector<8x8xf32> to vector<8xf32>
    %16 = vector.shape_cast %15 : vector<8xf32> to vector<8x1xf32>
    %17 = vector.broadcast %16 : vector<8x1xf32> to vector<8x8xf32>
    %18 = arith.subf %14, %17 : vector<8x8xf32>
    %19 = math.exp %18 : vector<8x8xf32>
    %cst_14 = arith.constant dense<0.000000e+00> : vector<8xf32>
    %20 = vector.multi_reduction <add>, %19, %cst_14 [1] : vector<8x8xf32> to vector<8xf32>
    %21 = vector.shape_cast %20 : vector<8xf32> to vector<8x1xf32>
    %22 = tpu.reciprocal %21 : vector<8x1xf32> -> vector<8x1xf32>
    %23 = vector.broadcast %22 : vector<8x1xf32> to vector<8x8xf32>
    %24 = arith.mulf %19, %23 : vector<8x8xf32>
    %25 = vector.shape_cast %24 : vector<8x8xf32> to vector<8x8x1xf32>
    %c0_15 = arith.constant 0 : index
    %c0_16 = arith.constant 0 : index
    %c0_17 = arith.constant 0 : index
    %26 = vector.load %arg4[%c0_15, %c0_16, %c0_17] : memref<8x8x32xf32, #tpu.memory_space<vmem>>, vector<8x8x32xf32>
    %27 = vector.broadcast %25 : vector<8x8x1xf32> to vector<8x8x32xf32>
    %28 = arith.mulf %27, %26 : vector<8x8x32xf32>
    %cst_18 = arith.constant dense<0.000000e+00> : vector<8x32xf32>
    %29 = vector.multi_reduction <add>, %28, %cst_18 [1] : vector<8x8x32xf32> to vector<8x32xf32>
    %30 = tpu.concatenate %2, %29 in 1 : vector<8x16xf32>, vector<8x32xf32> -> vector<8x48xf32>
    %c0_19 = arith.constant 0 : index
    %c0_20 = arith.constant 0 : index
    %31 = vector.load %arg8[%c0_19, %c0_20] : memref<48x96xf32, #tpu.memory_space<vmem>>, vector<48x96xf32>
    %cst_21 = arith.constant dense<0.000000e+00> : vector<8x96xf32>
    %32 = tpu.matmul %30, %31, %cst_21 {dimension_numbers = #tpu.dot_dimension_numbers<[1], [0], [0], [1], [0, 0, 1, 1], [], []>} : vector<8x48xf32>, vector<48x96xf32>, vector<8x96xf32> -> vector<8x96xf32>
    %c0_22 = arith.constant 0 : index
    %c0_23 = arith.constant 0 : index
    %33 = vector.load %arg9[%c0_22, %c0_23] : memref<1x96xf32, #tpu.memory_space<vmem>>, vector<1x96xf32>
    %34 = vector.broadcast %33 : vector<1x96xf32> to vector<8x96xf32>
    %35 = arith.addf %32, %34 : vector<8x96xf32>
    %36 = vector.extract_strided_slice %35 {offsets = [0, 0], sizes = [8, 32], strides = [1, 1]} : vector<8x96xf32> to vector<8x32xf32>
    %37 = vector.extract_strided_slice %9 {offsets = [0, 0], sizes = [8, 32], strides = [1, 1]} : vector<8x96xf32> to vector<8x32xf32>
    %38 = arith.addf %36, %37 : vector<8x32xf32>
    %39 = arith.negf %38 : vector<8x32xf32>
    %40 = math.exp %39 : vector<8x32xf32>
    %cst_24 = arith.constant 1.000000e+00 : f32
    %41 = vector.broadcast %cst_24 : f32 to vector<8x32xf32>
    %42 = arith.addf %41, %40 : vector<8x32xf32>
    %43 = arith.divf %41, %42 : vector<8x32xf32>
    %44 = vector.extract_strided_slice %35 {offsets = [0, 32], sizes = [8, 32], strides = [1, 1]} : vector<8x96xf32> to vector<8x32xf32>
    %45 = vector.extract_strided_slice %9 {offsets = [0, 32], sizes = [8, 32], strides = [1, 1]} : vector<8x96xf32> to vector<8x32xf32>
    %46 = arith.addf %44, %45 : vector<8x32xf32>
    %47 = arith.negf %46 : vector<8x32xf32>
    %48 = math.exp %47 : vector<8x32xf32>
    %cst_25 = arith.constant 1.000000e+00 : f32
    %49 = vector.broadcast %cst_25 : f32 to vector<8x32xf32>
    %50 = arith.addf %49, %48 : vector<8x32xf32>
    %51 = arith.divf %49, %50 : vector<8x32xf32>
    %52 = vector.extract_strided_slice %35 {offsets = [0, 64], sizes = [8, 32], strides = [1, 1]} : vector<8x96xf32> to vector<8x32xf32>
    %53 = vector.extract_strided_slice %9 {offsets = [0, 64], sizes = [8, 32], strides = [1, 1]} : vector<8x96xf32> to vector<8x32xf32>
    %54 = arith.mulf %43, %53 : vector<8x32xf32>
    %55 = arith.addf %52, %54 : vector<8x32xf32>
    %56 = math.tanh %55 : vector<8x32xf32>
    %cst_26 = arith.constant 1.000000e+00 : f32
    %57 = vector.broadcast %cst_26 : f32 to vector<8x32xf32>
    %58 = arith.subf %57, %51 : vector<8x32xf32>
    %59 = arith.mulf %58, %56 : vector<8x32xf32>
    %60 = arith.mulf %51, %0 : vector<8x32xf32>
    %61 = arith.addf %59, %60 : vector<8x32xf32>
    %62 = tpu.concatenate %61, %29, %2 in 1 : vector<8x32xf32>, vector<8x32xf32>, vector<8x16xf32> -> vector<8x80xf32>
    %c0_27 = arith.constant 0 : index
    %c0_28 = arith.constant 0 : index
    %63 = vector.load %arg10[%c0_27, %c0_28] : memref<80x128xf32, #tpu.memory_space<vmem>>, vector<80x128xf32>
    %cst_29 = arith.constant dense<0.000000e+00> : vector<8x128xf32>
    %64 = tpu.matmul %62, %63, %cst_29 {dimension_numbers = #tpu.dot_dimension_numbers<[1], [0], [0], [1], [0, 0, 1, 1], [], []>} : vector<8x80xf32>, vector<80x128xf32>, vector<8x128xf32> -> vector<8x128xf32>
    %c0_30 = arith.constant 0 : index
    %c0_31 = arith.constant 0 : index
    %65 = vector.load %arg11[%c0_30, %c0_31] : memref<1x128xf32, #tpu.memory_space<vmem>>, vector<1x128xf32>
    %66 = vector.broadcast %65 : vector<1x128xf32> to vector<8x128xf32>
    %67 = arith.addf %64, %66 : vector<8x128xf32>
    %c0_32 = arith.constant 0 : index
    %c0_33 = arith.constant 0 : index
    %c0_34 = arith.constant 0 : index
    %68 = vector.load %arg14[%c0_32, %c0_33, %c0_34] : memref<5x8x128xf32, #tpu.memory_space<vmem>>, vector<1x8x128xf32>
    %69 = vector.shape_cast %68 : vector<1x8x128xf32> to vector<8x128xf32>
    %70 = vector.shape_cast %67 : vector<8x128xf32> to vector<1x8x128xf32>
    tpu.vector_store %arg14[%c0_32, %c0_33, %c0_34], %70 {strides = array<i32>} : memref<5x8x128xf32, #tpu.memory_space<vmem>>, vector<1x8x128xf32>,
    %c1 = arith.constant 1 : index
    %71 = memref.load %arg1[%c1] : memref<5xi32, #tpu.memory_space<smem>>
    %c0_i32 = arith.constant 0 : i32
    %72 = arith.cmpi sgt, %71, %c0_i32 : i32
    %73 = arith.extui %72 : i1 to i32
    %c0_i32_35 = arith.constant 0 : i32
    %74 = arith.cmpi ne, %73, %c0_i32_35 : i32
    scf.if %74 {
      %c1_185 = arith.constant 1 : index
      %c0_186 = arith.constant 0 : index
      %c0_187 = arith.constant 0 : index
      %375 = vector.load %arg2[%c1_185, %c0_186, %c0_187] : memref<5x8x16xf32, #tpu.memory_space<vmem>>, vector<1x8x16xf32>
      %376 = vector.shape_cast %375 : vector<1x8x16xf32> to vector<8x16xf32>
      %c0_188 = arith.constant 0 : index
      %c0_189 = arith.constant 0 : index
      %377 = vector.load %arg15[%c0_188, %c0_189] : memref<8x16xf32, #tpu.memory_space<vmem>>, vector<8x16xf32>
      tpu.vector_store %arg15[%c0_188, %c0_189], %376 {strides = array<i32>} : memref<8x16xf32, #tpu.memory_space<vmem>>, vector<8x16xf32>,
    } else {
    }
    %true = arith.constant true
    %75 = arith.xori %72, %true : i1
    %76 = arith.extui %75 : i1 to i32
    %c0_i32_36 = arith.constant 0 : i32
    %77 = arith.cmpi ne, %76, %c0_i32_36 : i32
    scf.if %77 {
      %375 = tpu.iota {dimensions = array<i32: 1>} : vector<8x128xi32>
      %cst_185 = arith.constant dense<0xFF800000> : vector<8xf32>
      %376 = vector.multi_reduction <maximumf>, %67, %cst_185 [1] : vector<8x128xf32> to vector<8xf32>
      %377 = vector.shape_cast %376 : vector<8xf32> to vector<8x1xf32>
      %378 = vector.broadcast %377 : vector<8x1xf32> to vector<8x128xf32>
      %379 = arith.cmpf oge, %67, %378 : vector<8x128xf32>
      %c128_i32 = arith.constant 128 : i32
      %380 = vector.broadcast %c128_i32 : i32 to vector<8x128xi32>
      %381 = arith.select %379, %375, %380 : vector<8x128xi1>, vector<8x128xi32>
      %cst_186 = arith.constant dense<2147483647> : vector<8xi32>
      %382 = vector.multi_reduction <minsi>, %381, %cst_186 [1] : vector<8x128xi32> to vector<8xi32>
      %383 = vector.shape_cast %382 : vector<8xi32> to vector<8x1xi32>
      %384 = vector.broadcast %383 : vector<8x1xi32> to vector<8x128xi32>
      %385 = arith.cmpi eq, %375, %384 : vector<8x128xi32>
      %386 = arith.extui %385 : vector<8x128xi1> to vector<8x128xi32>
      %387 = arith.sitofp %386 : vector<8x128xi32> to vector<8x128xf32>
      %c0_187 = arith.constant 0 : index
      %c0_188 = arith.constant 0 : index
      %388 = vector.load %arg12[%c0_187, %c0_188] : memref<128x16xf32, #tpu.memory_space<vmem>>, vector<128x16xf32>
      %cst_189 = arith.constant dense<0.000000e+00> : vector<8x16xf32>
      %389 = tpu.matmul %387, %388, %cst_189 {dimension_numbers = #tpu.dot_dimension_numbers<[1], [0], [0], [1], [0, 0, 1, 1], [], []>} : vector<8x128xf32>, vector<128x16xf32>, vector<8x16xf32> -> vector<8x16xf32>
      %c0_190 = arith.constant 0 : index
      %c0_191 = arith.constant 0 : index
      %390 = vector.load %arg15[%c0_190, %c0_191] : memref<8x16xf32, #tpu.memory_space<vmem>>, vector<8x16xf32>
      tpu.vector_store %arg15[%c0_190, %c0_191], %389 {strides = array<i32>} : memref<8x16xf32, #tpu.memory_space<vmem>>, vector<8x16xf32>,
    } else {
    }
    %c0_37 = arith.constant 0 : index
    %c0_38 = arith.constant 0 : index
    %78 = vector.load %arg15[%c0_37, %c0_38] : memref<8x16xf32, #tpu.memory_space<vmem>>, vector<8x16xf32>
    %c0_39 = arith.constant 0 : index
    %c0_40 = arith.constant 0 : index
    %79 = vector.load %arg6[%c0_39, %c0_40] : memref<32x352xf32, #tpu.memory_space<vmem>>, vector<32x352xf32>
    %cst_41 = arith.constant dense<0.000000e+00> : vector<8x352xf32>
    %80 = tpu.matmul %61, %79, %cst_41 {dimension_numbers = #tpu.dot_dimension_numbers<[1], [0], [0], [1], [0, 0, 1, 1], [], []>} : vector<8x32xf32>, vector<32x352xf32>, vector<8x352xf32> -> vector<8x352xf32>
    %81 = vector.extract_strided_slice %80 {offsets = [0, 0], sizes = [8, 256], strides = [1, 1]} : vector<8x352xf32> to vector<8x256xf32>
    %82 = vector.extract_strided_slice %80 {offsets = [0, 256], sizes = [8, 96], strides = [1, 1]} : vector<8x352xf32> to vector<8x96xf32>
    %c0_42 = arith.constant 0 : index
    %c0_43 = arith.constant 0 : index
    %83 = vector.load %arg7[%c0_42, %c0_43] : memref<1x96xf32, #tpu.memory_space<vmem>>, vector<1x96xf32>
    %84 = vector.broadcast %83 : vector<1x96xf32> to vector<8x96xf32>
    %85 = arith.addf %82, %84 : vector<8x96xf32>
    %c0_44 = arith.constant 0 : index
    %c0_45 = arith.constant 0 : index
    %86 = vector.load %arg5[%c0_44, %c0_45] : memref<8x256xf32, #tpu.memory_space<vmem>>, vector<8x256xf32>
    %87 = arith.addf %86, %81 : vector<8x256xf32>
    %88 = math.tanh %87 : vector<8x256xf32>
    %c0_46 = arith.constant 0 : index
    %c0_47 = arith.constant 0 : index
    %89 = vector.load %arg13[%c0_46, %c0_47] : memref<256x8xf32, #tpu.memory_space<vmem>>, vector<256x8xf32>
    %cst_48 = arith.constant dense<0.000000e+00> : vector<8x8xf32>
    %90 = tpu.matmul %88, %89, %cst_48 {dimension_numbers = #tpu.dot_dimension_numbers<[1], [0], [0], [1], [0, 0, 1, 1], [], []>} : vector<8x256xf32>, vector<256x8xf32>, vector<8x8xf32> -> vector<8x8xf32>
    %cst_49 = arith.constant dense<0xFF800000> : vector<8xf32>
    %91 = vector.multi_reduction <maximumf>, %90, %cst_49 [1] : vector<8x8xf32> to vector<8xf32>
    %92 = vector.shape_cast %91 : vector<8xf32> to vector<8x1xf32>
    %93 = vector.broadcast %92 : vector<8x1xf32> to vector<8x8xf32>
    %94 = arith.subf %90, %93 : vector<8x8xf32>
    %95 = math.exp %94 : vector<8x8xf32>
    %cst_50 = arith.constant dense<0.000000e+00> : vector<8xf32>
    %96 = vector.multi_reduction <add>, %95, %cst_50 [1] : vector<8x8xf32> to vector<8xf32>
    %97 = vector.shape_cast %96 : vector<8xf32> to vector<8x1xf32>
    %98 = tpu.reciprocal %97 : vector<8x1xf32> -> vector<8x1xf32>
    %99 = vector.broadcast %98 : vector<8x1xf32> to vector<8x8xf32>
    %100 = arith.mulf %95, %99 : vector<8x8xf32>
    %101 = vector.shape_cast %100 : vector<8x8xf32> to vector<8x8x1xf32>
    %c0_51 = arith.constant 0 : index
    %c0_52 = arith.constant 0 : index
    %c0_53 = arith.constant 0 : index
    %102 = vector.load %arg4[%c0_51, %c0_52, %c0_53] : memref<8x8x32xf32, #tpu.memory_space<vmem>>, vector<8x8x32xf32>
    %103 = vector.broadcast %101 : vector<8x8x1xf32> to vector<8x8x32xf32>
    %104 = arith.mulf %103, %102 : vector<8x8x32xf32>
    %cst_54 = arith.constant dense<0.000000e+00> : vector<8x32xf32>
    %105 = vector.multi_reduction <add>, %104, %cst_54 [1] : vector<8x8x32xf32> to vector<8x32xf32>
    %106 = tpu.concatenate %78, %105 in 1 : vector<8x16xf32>, vector<8x32xf32> -> vector<8x48xf32>
    %c0_55 = arith.constant 0 : index
    %c0_56 = arith.constant 0 : index
    %107 = vector.load %arg8[%c0_55, %c0_56] : memref<48x96xf32, #tpu.memory_space<vmem>>, vector<48x96xf32>
    %cst_57 = arith.constant dense<0.000000e+00> : vector<8x96xf32>
    %108 = tpu.matmul %106, %107, %cst_57 {dimension_numbers = #tpu.dot_dimension_numbers<[1], [0], [0], [1], [0, 0, 1, 1], [], []>} : vector<8x48xf32>, vector<48x96xf32>, vector<8x96xf32> -> vector<8x96xf32>
    %c0_58 = arith.constant 0 : index
    %c0_59 = arith.constant 0 : index
    %109 = vector.load %arg9[%c0_58, %c0_59] : memref<1x96xf32, #tpu.memory_space<vmem>>, vector<1x96xf32>
    %110 = vector.broadcast %109 : vector<1x96xf32> to vector<8x96xf32>
    %111 = arith.addf %108, %110 : vector<8x96xf32>
    %112 = vector.extract_strided_slice %111 {offsets = [0, 0], sizes = [8, 32], strides = [1, 1]} : vector<8x96xf32> to vector<8x32xf32>
    %113 = vector.extract_strided_slice %85 {offsets = [0, 0], sizes = [8, 32], strides = [1, 1]} : vector<8x96xf32> to vector<8x32xf32>
    %114 = arith.addf %112, %113 : vector<8x32xf32>
    %115 = arith.negf %114 : vector<8x32xf32>
    %116 = math.exp %115 : vector<8x32xf32>
    %cst_60 = arith.constant 1.000000e+00 : f32
    %117 = vector.broadcast %cst_60 : f32 to vector<8x32xf32>
    %118 = arith.addf %117, %116 : vector<8x32xf32>
    %119 = arith.divf %117, %118 : vector<8x32xf32>
    %120 = vector.extract_strided_slice %111 {offsets = [0, 32], sizes = [8, 32], strides = [1, 1]} : vector<8x96xf32> to vector<8x32xf32>
    %121 = vector.extract_strided_slice %85 {offsets = [0, 32], sizes = [8, 32], strides = [1, 1]} : vector<8x96xf32> to vector<8x32xf32>
    %122 = arith.addf %120, %121 : vector<8x32xf32>
    %123 = arith.negf %122 : vector<8x32xf32>
    %124 = math.exp %123 : vector<8x32xf32>
    %cst_61 = arith.constant 1.000000e+00 : f32
    %125 = vector.broadcast %cst_61 : f32 to vector<8x32xf32>
    %126 = arith.addf %125, %124 : vector<8x32xf32>
    %127 = arith.divf %125, %126 : vector<8x32xf32>
    %128 = vector.extract_strided_slice %111 {offsets = [0, 64], sizes = [8, 32], strides = [1, 1]} : vector<8x96xf32> to vector<8x32xf32>
    %129 = vector.extract_strided_slice %85 {offsets = [0, 64], sizes = [8, 32], strides = [1, 1]} : vector<8x96xf32> to vector<8x32xf32>
    %130 = arith.mulf %119, %129 : vector<8x32xf32>
    %131 = arith.addf %128, %130 : vector<8x32xf32>
    %132 = math.tanh %131 : vector<8x32xf32>
    %cst_62 = arith.constant 1.000000e+00 : f32
    %133 = vector.broadcast %cst_62 : f32 to vector<8x32xf32>
    %134 = arith.subf %133, %127 : vector<8x32xf32>
    %135 = arith.mulf %134, %132 : vector<8x32xf32>
    %136 = arith.mulf %127, %61 : vector<8x32xf32>
    %137 = arith.addf %135, %136 : vector<8x32xf32>
    %138 = tpu.concatenate %137, %105, %78 in 1 : vector<8x32xf32>, vector<8x32xf32>, vector<8x16xf32> -> vector<8x80xf32>
    %c0_63 = arith.constant 0 : index
    %c0_64 = arith.constant 0 : index
    %139 = vector.load %arg10[%c0_63, %c0_64] : memref<80x128xf32, #tpu.memory_space<vmem>>, vector<80x128xf32>
    %cst_65 = arith.constant dense<0.000000e+00> : vector<8x128xf32>
    %140 = tpu.matmul %138, %139, %cst_65 {dimension_numbers = #tpu.dot_dimension_numbers<[1], [0], [0], [1], [0, 0, 1, 1], [], []>} : vector<8x80xf32>, vector<80x128xf32>, vector<8x128xf32> -> vector<8x128xf32>
    %c0_66 = arith.constant 0 : index
    %c0_67 = arith.constant 0 : index
    %141 = vector.load %arg11[%c0_66, %c0_67] : memref<1x128xf32, #tpu.memory_space<vmem>>, vector<1x128xf32>
    %142 = vector.broadcast %141 : vector<1x128xf32> to vector<8x128xf32>
    %143 = arith.addf %140, %142 : vector<8x128xf32>
    %c1_68 = arith.constant 1 : index
    %c0_69 = arith.constant 0 : index
    %c0_70 = arith.constant 0 : index
    %144 = vector.load %arg14[%c1_68, %c0_69, %c0_70] : memref<5x8x128xf32, #tpu.memory_space<vmem>>, vector<1x8x128xf32>
    %145 = vector.shape_cast %144 : vector<1x8x128xf32> to vector<8x128xf32>
    %146 = vector.shape_cast %143 : vector<8x128xf32> to vector<1x8x128xf32>
    tpu.vector_store %arg14[%c1_68, %c0_69, %c0_70], %146 {strides = array<i32>} : memref<5x8x128xf32, #tpu.memory_space<vmem>>, vector<1x8x128xf32>,
    %c2 = arith.constant 2 : index
    %147 = memref.load %arg1[%c2] : memref<5xi32, #tpu.memory_space<smem>>
    %c0_i32_71 = arith.constant 0 : i32
    %148 = arith.cmpi sgt, %147, %c0_i32_71 : i32
    %149 = arith.extui %148 : i1 to i32
    %c0_i32_72 = arith.constant 0 : i32
    %150 = arith.cmpi ne, %149, %c0_i32_72 : i32
    scf.if %150 {
      %c2_185 = arith.constant 2 : index
      %c0_186 = arith.constant 0 : index
      %c0_187 = arith.constant 0 : index
      %375 = vector.load %arg2[%c2_185, %c0_186, %c0_187] : memref<5x8x16xf32, #tpu.memory_space<vmem>>, vector<1x8x16xf32>
      %376 = vector.shape_cast %375 : vector<1x8x16xf32> to vector<8x16xf32>
      %c0_188 = arith.constant 0 : index
      %c0_189 = arith.constant 0 : index
      %377 = vector.load %arg15[%c0_188, %c0_189] : memref<8x16xf32, #tpu.memory_space<vmem>>, vector<8x16xf32>
      tpu.vector_store %arg15[%c0_188, %c0_189], %376 {strides = array<i32>} : memref<8x16xf32, #tpu.memory_space<vmem>>, vector<8x16xf32>,
    } else {
    }
    %true_73 = arith.constant true
    %151 = arith.xori %148, %true_73 : i1
    %152 = arith.extui %151 : i1 to i32
    %c0_i32_74 = arith.constant 0 : i32
    %153 = arith.cmpi ne, %152, %c0_i32_74 : i32
    scf.if %153 {
      %375 = tpu.iota {dimensions = array<i32: 1>} : vector<8x128xi32>
      %cst_185 = arith.constant dense<0xFF800000> : vector<8xf32>
      %376 = vector.multi_reduction <maximumf>, %143, %cst_185 [1] : vector<8x128xf32> to vector<8xf32>
      %377 = vector.shape_cast %376 : vector<8xf32> to vector<8x1xf32>
      %378 = vector.broadcast %377 : vector<8x1xf32> to vector<8x128xf32>
      %379 = arith.cmpf oge, %143, %378 : vector<8x128xf32>
      %c128_i32 = arith.constant 128 : i32
      %380 = vector.broadcast %c128_i32 : i32 to vector<8x128xi32>
      %381 = arith.select %379, %375, %380 : vector<8x128xi1>, vector<8x128xi32>
      %cst_186 = arith.constant dense<2147483647> : vector<8xi32>
      %382 = vector.multi_reduction <minsi>, %381, %cst_186 [1] : vector<8x128xi32> to vector<8xi32>
      %383 = vector.shape_cast %382 : vector<8xi32> to vector<8x1xi32>
      %384 = vector.broadcast %383 : vector<8x1xi32> to vector<8x128xi32>
      %385 = arith.cmpi eq, %375, %384 : vector<8x128xi32>
      %386 = arith.extui %385 : vector<8x128xi1> to vector<8x128xi32>
      %387 = arith.sitofp %386 : vector<8x128xi32> to vector<8x128xf32>
      %c0_187 = arith.constant 0 : index
      %c0_188 = arith.constant 0 : index
      %388 = vector.load %arg12[%c0_187, %c0_188] : memref<128x16xf32, #tpu.memory_space<vmem>>, vector<128x16xf32>
      %cst_189 = arith.constant dense<0.000000e+00> : vector<8x16xf32>
      %389 = tpu.matmul %387, %388, %cst_189 {dimension_numbers = #tpu.dot_dimension_numbers<[1], [0], [0], [1], [0, 0, 1, 1], [], []>} : vector<8x128xf32>, vector<128x16xf32>, vector<8x16xf32> -> vector<8x16xf32>
      %c0_190 = arith.constant 0 : index
      %c0_191 = arith.constant 0 : index
      %390 = vector.load %arg15[%c0_190, %c0_191] : memref<8x16xf32, #tpu.memory_space<vmem>>, vector<8x16xf32>
      tpu.vector_store %arg15[%c0_190, %c0_191], %389 {strides = array<i32>} : memref<8x16xf32, #tpu.memory_space<vmem>>, vector<8x16xf32>,
    } else {
    }
    %c0_75 = arith.constant 0 : index
    %c0_76 = arith.constant 0 : index
    %154 = vector.load %arg15[%c0_75, %c0_76] : memref<8x16xf32, #tpu.memory_space<vmem>>, vector<8x16xf32>
    %c0_77 = arith.constant 0 : index
    %c0_78 = arith.constant 0 : index
    %155 = vector.load %arg6[%c0_77, %c0_78] : memref<32x352xf32, #tpu.memory_space<vmem>>, vector<32x352xf32>
    %cst_79 = arith.constant dense<0.000000e+00> : vector<8x352xf32>
    %156 = tpu.matmul %137, %155, %cst_79 {dimension_numbers = #tpu.dot_dimension_numbers<[1], [0], [0], [1], [0, 0, 1, 1], [], []>} : vector<8x32xf32>, vector<32x352xf32>, vector<8x352xf32> -> vector<8x352xf32>
    %157 = vector.extract_strided_slice %156 {offsets = [0, 0], sizes = [8, 256], strides = [1, 1]} : vector<8x352xf32> to vector<8x256xf32>
    %158 = vector.extract_strided_slice %156 {offsets = [0, 256], sizes = [8, 96], strides = [1, 1]} : vector<8x352xf32> to vector<8x96xf32>
    %c0_80 = arith.constant 0 : index
    %c0_81 = arith.constant 0 : index
    %159 = vector.load %arg7[%c0_80, %c0_81] : memref<1x96xf32, #tpu.memory_space<vmem>>, vector<1x96xf32>
    %160 = vector.broadcast %159 : vector<1x96xf32> to vector<8x96xf32>
    %161 = arith.addf %158, %160 : vector<8x96xf32>
    %c0_82 = arith.constant 0 : index
    %c0_83 = arith.constant 0 : index
    %162 = vector.load %arg5[%c0_82, %c0_83] : memref<8x256xf32, #tpu.memory_space<vmem>>, vector<8x256xf32>
    %163 = arith.addf %162, %157 : vector<8x256xf32>
    %164 = math.tanh %163 : vector<8x256xf32>
    %c0_84 = arith.constant 0 : index
    %c0_85 = arith.constant 0 : index
    %165 = vector.load %arg13[%c0_84, %c0_85] : memref<256x8xf32, #tpu.memory_space<vmem>>, vector<256x8xf32>
    %cst_86 = arith.constant dense<0.000000e+00> : vector<8x8xf32>
    %166 = tpu.matmul %164, %165, %cst_86 {dimension_numbers = #tpu.dot_dimension_numbers<[1], [0], [0], [1], [0, 0, 1, 1], [], []>} : vector<8x256xf32>, vector<256x8xf32>, vector<8x8xf32> -> vector<8x8xf32>
    %cst_87 = arith.constant dense<0xFF800000> : vector<8xf32>
    %167 = vector.multi_reduction <maximumf>, %166, %cst_87 [1] : vector<8x8xf32> to vector<8xf32>
    %168 = vector.shape_cast %167 : vector<8xf32> to vector<8x1xf32>
    %169 = vector.broadcast %168 : vector<8x1xf32> to vector<8x8xf32>
    %170 = arith.subf %166, %169 : vector<8x8xf32>
    %171 = math.exp %170 : vector<8x8xf32>
    %cst_88 = arith.constant dense<0.000000e+00> : vector<8xf32>
    %172 = vector.multi_reduction <add>, %171, %cst_88 [1] : vector<8x8xf32> to vector<8xf32>
    %173 = vector.shape_cast %172 : vector<8xf32> to vector<8x1xf32>
    %174 = tpu.reciprocal %173 : vector<8x1xf32> -> vector<8x1xf32>
    %175 = vector.broadcast %174 : vector<8x1xf32> to vector<8x8xf32>
    %176 = arith.mulf %171, %175 : vector<8x8xf32>
    %177 = vector.shape_cast %176 : vector<8x8xf32> to vector<8x8x1xf32>
    %c0_89 = arith.constant 0 : index
    %c0_90 = arith.constant 0 : index
    %c0_91 = arith.constant 0 : index
    %178 = vector.load %arg4[%c0_89, %c0_90, %c0_91] : memref<8x8x32xf32, #tpu.memory_space<vmem>>, vector<8x8x32xf32>
    %179 = vector.broadcast %177 : vector<8x8x1xf32> to vector<8x8x32xf32>
    %180 = arith.mulf %179, %178 : vector<8x8x32xf32>
    %cst_92 = arith.constant dense<0.000000e+00> : vector<8x32xf32>
    %181 = vector.multi_reduction <add>, %180, %cst_92 [1] : vector<8x8x32xf32> to vector<8x32xf32>
    %182 = tpu.concatenate %154, %181 in 1 : vector<8x16xf32>, vector<8x32xf32> -> vector<8x48xf32>
    %c0_93 = arith.constant 0 : index
    %c0_94 = arith.constant 0 : index
    %183 = vector.load %arg8[%c0_93, %c0_94] : memref<48x96xf32, #tpu.memory_space<vmem>>, vector<48x96xf32>
    %cst_95 = arith.constant dense<0.000000e+00> : vector<8x96xf32>
    %184 = tpu.matmul %182, %183, %cst_95 {dimension_numbers = #tpu.dot_dimension_numbers<[1], [0], [0], [1], [0, 0, 1, 1], [], []>} : vector<8x48xf32>, vector<48x96xf32>, vector<8x96xf32> -> vector<8x96xf32>
    %c0_96 = arith.constant 0 : index
    %c0_97 = arith.constant 0 : index
    %185 = vector.load %arg9[%c0_96, %c0_97] : memref<1x96xf32, #tpu.memory_space<vmem>>, vector<1x96xf32>
    %186 = vector.broadcast %185 : vector<1x96xf32> to vector<8x96xf32>
    %187 = arith.addf %184, %186 : vector<8x96xf32>
    %188 = vector.extract_strided_slice %187 {offsets = [0, 0], sizes = [8, 32], strides = [1, 1]} : vector<8x96xf32> to vector<8x32xf32>
    %189 = vector.extract_strided_slice %161 {offsets = [0, 0], sizes = [8, 32], strides = [1, 1]} : vector<8x96xf32> to vector<8x32xf32>
    %190 = arith.addf %188, %189 : vector<8x32xf32>
    %191 = arith.negf %190 : vector<8x32xf32>
    %192 = math.exp %191 : vector<8x32xf32>
    %cst_98 = arith.constant 1.000000e+00 : f32
    %193 = vector.broadcast %cst_98 : f32 to vector<8x32xf32>
    %194 = arith.addf %193, %192 : vector<8x32xf32>
    %195 = arith.divf %193, %194 : vector<8x32xf32>
    %196 = vector.extract_strided_slice %187 {offsets = [0, 32], sizes = [8, 32], strides = [1, 1]} : vector<8x96xf32> to vector<8x32xf32>
    %197 = vector.extract_strided_slice %161 {offsets = [0, 32], sizes = [8, 32], strides = [1, 1]} : vector<8x96xf32> to vector<8x32xf32>
    %198 = arith.addf %196, %197 : vector<8x32xf32>
    %199 = arith.negf %198 : vector<8x32xf32>
    %200 = math.exp %199 : vector<8x32xf32>
    %cst_99 = arith.constant 1.000000e+00 : f32
    %201 = vector.broadcast %cst_99 : f32 to vector<8x32xf32>
    %202 = arith.addf %201, %200 : vector<8x32xf32>
    %203 = arith.divf %201, %202 : vector<8x32xf32>
    %204 = vector.extract_strided_slice %187 {offsets = [0, 64], sizes = [8, 32], strides = [1, 1]} : vector<8x96xf32> to vector<8x32xf32>
    %205 = vector.extract_strided_slice %161 {offsets = [0, 64], sizes = [8, 32], strides = [1, 1]} : vector<8x96xf32> to vector<8x32xf32>
    %206 = arith.mulf %195, %205 : vector<8x32xf32>
    %207 = arith.addf %204, %206 : vector<8x32xf32>
    %208 = math.tanh %207 : vector<8x32xf32>
    %cst_100 = arith.constant 1.000000e+00 : f32
    %209 = vector.broadcast %cst_100 : f32 to vector<8x32xf32>
    %210 = arith.subf %209, %203 : vector<8x32xf32>
    %211 = arith.mulf %210, %208 : vector<8x32xf32>
    %212 = arith.mulf %203, %137 : vector<8x32xf32>
    %213 = arith.addf %211, %212 : vector<8x32xf32>
    %214 = tpu.concatenate %213, %181, %154 in 1 : vector<8x32xf32>, vector<8x32xf32>, vector<8x16xf32> -> vector<8x80xf32>
    %c0_101 = arith.constant 0 : index
    %c0_102 = arith.constant 0 : index
    %215 = vector.load %arg10[%c0_101, %c0_102] : memref<80x128xf32, #tpu.memory_space<vmem>>, vector<80x128xf32>
    %cst_103 = arith.constant dense<0.000000e+00> : vector<8x128xf32>
    %216 = tpu.matmul %214, %215, %cst_103 {dimension_numbers = #tpu.dot_dimension_numbers<[1], [0], [0], [1], [0, 0, 1, 1], [], []>} : vector<8x80xf32>, vector<80x128xf32>, vector<8x128xf32> -> vector<8x128xf32>
    %c0_104 = arith.constant 0 : index
    %c0_105 = arith.constant 0 : index
    %217 = vector.load %arg11[%c0_104, %c0_105] : memref<1x128xf32, #tpu.memory_space<vmem>>, vector<1x128xf32>
    %218 = vector.broadcast %217 : vector<1x128xf32> to vector<8x128xf32>
    %219 = arith.addf %216, %218 : vector<8x128xf32>
    %c2_106 = arith.constant 2 : index
    %c0_107 = arith.constant 0 : index
    %c0_108 = arith.constant 0 : index
    %220 = vector.load %arg14[%c2_106, %c0_107, %c0_108] : memref<5x8x128xf32, #tpu.memory_space<vmem>>, vector<1x8x128xf32>
    %221 = vector.shape_cast %220 : vector<1x8x128xf32> to vector<8x128xf32>
    %222 = vector.shape_cast %219 : vector<8x128xf32> to vector<1x8x128xf32>
    tpu.vector_store %arg14[%c2_106, %c0_107, %c0_108], %222 {strides = array<i32>} : memref<5x8x128xf32, #tpu.memory_space<vmem>>, vector<1x8x128xf32>,
    %c3 = arith.constant 3 : index
    %223 = memref.load %arg1[%c3] : memref<5xi32, #tpu.memory_space<smem>>
    %c0_i32_109 = arith.constant 0 : i32
    %224 = arith.cmpi sgt, %223, %c0_i32_109 : i32
    %225 = arith.extui %224 : i1 to i32
    %c0_i32_110 = arith.constant 0 : i32
    %226 = arith.cmpi ne, %225, %c0_i32_110 : i32
    scf.if %226 {
      %c3_185 = arith.constant 3 : index
      %c0_186 = arith.constant 0 : index
      %c0_187 = arith.constant 0 : index
      %375 = vector.load %arg2[%c3_185, %c0_186, %c0_187] : memref<5x8x16xf32, #tpu.memory_space<vmem>>, vector<1x8x16xf32>
      %376 = vector.shape_cast %375 : vector<1x8x16xf32> to vector<8x16xf32>
      %c0_188 = arith.constant 0 : index
      %c0_189 = arith.constant 0 : index
      %377 = vector.load %arg15[%c0_188, %c0_189] : memref<8x16xf32, #tpu.memory_space<vmem>>, vector<8x16xf32>
      tpu.vector_store %arg15[%c0_188, %c0_189], %376 {strides = array<i32>} : memref<8x16xf32, #tpu.memory_space<vmem>>, vector<8x16xf32>,
    } else {
    }
    %true_111 = arith.constant true
    %227 = arith.xori %224, %true_111 : i1
    %228 = arith.extui %227 : i1 to i32
    %c0_i32_112 = arith.constant 0 : i32
    %229 = arith.cmpi ne, %228, %c0_i32_112 : i32
    scf.if %229 {
      %375 = tpu.iota {dimensions = array<i32: 1>} : vector<8x128xi32>
      %cst_185 = arith.constant dense<0xFF800000> : vector<8xf32>
      %376 = vector.multi_reduction <maximumf>, %219, %cst_185 [1] : vector<8x128xf32> to vector<8xf32>
      %377 = vector.shape_cast %376 : vector<8xf32> to vector<8x1xf32>
      %378 = vector.broadcast %377 : vector<8x1xf32> to vector<8x128xf32>
      %379 = arith.cmpf oge, %219, %378 : vector<8x128xf32>
      %c128_i32 = arith.constant 128 : i32
      %380 = vector.broadcast %c128_i32 : i32 to vector<8x128xi32>
      %381 = arith.select %379, %375, %380 : vector<8x128xi1>, vector<8x128xi32>
      %cst_186 = arith.constant dense<2147483647> : vector<8xi32>
      %382 = vector.multi_reduction <minsi>, %381, %cst_186 [1] : vector<8x128xi32> to vector<8xi32>
      %383 = vector.shape_cast %382 : vector<8xi32> to vector<8x1xi32>
      %384 = vector.broadcast %383 : vector<8x1xi32> to vector<8x128xi32>
      %385 = arith.cmpi eq, %375, %384 : vector<8x128xi32>
      %386 = arith.extui %385 : vector<8x128xi1> to vector<8x128xi32>
      %387 = arith.sitofp %386 : vector<8x128xi32> to vector<8x128xf32>
      %c0_187 = arith.constant 0 : index
      %c0_188 = arith.constant 0 : index
      %388 = vector.load %arg12[%c0_187, %c0_188] : memref<128x16xf32, #tpu.memory_space<vmem>>, vector<128x16xf32>
      %cst_189 = arith.constant dense<0.000000e+00> : vector<8x16xf32>
      %389 = tpu.matmul %387, %388, %cst_189 {dimension_numbers = #tpu.dot_dimension_numbers<[1], [0], [0], [1], [0, 0, 1, 1], [], []>} : vector<8x128xf32>, vector<128x16xf32>, vector<8x16xf32> -> vector<8x16xf32>
      %c0_190 = arith.constant 0 : index
      %c0_191 = arith.constant 0 : index
      %390 = vector.load %arg15[%c0_190, %c0_191] : memref<8x16xf32, #tpu.memory_space<vmem>>, vector<8x16xf32>
      tpu.vector_store %arg15[%c0_190, %c0_191], %389 {strides = array<i32>} : memref<8x16xf32, #tpu.memory_space<vmem>>, vector<8x16xf32>,
    } else {
    }
    %c0_113 = arith.constant 0 : index
    %c0_114 = arith.constant 0 : index
    %230 = vector.load %arg15[%c0_113, %c0_114] : memref<8x16xf32, #tpu.memory_space<vmem>>, vector<8x16xf32>
    %c0_115 = arith.constant 0 : index
    %c0_116 = arith.constant 0 : index
    %231 = vector.load %arg6[%c0_115, %c0_116] : memref<32x352xf32, #tpu.memory_space<vmem>>, vector<32x352xf32>
    %cst_117 = arith.constant dense<0.000000e+00> : vector<8x352xf32>
    %232 = tpu.matmul %213, %231, %cst_117 {dimension_numbers = #tpu.dot_dimension_numbers<[1], [0], [0], [1], [0, 0, 1, 1], [], []>} : vector<8x32xf32>, vector<32x352xf32>, vector<8x352xf32> -> vector<8x352xf32>
    %233 = vector.extract_strided_slice %232 {offsets = [0, 0], sizes = [8, 256], strides = [1, 1]} : vector<8x352xf32> to vector<8x256xf32>
    %234 = vector.extract_strided_slice %232 {offsets = [0, 256], sizes = [8, 96], strides = [1, 1]} : vector<8x352xf32> to vector<8x96xf32>
    %c0_118 = arith.constant 0 : index
    %c0_119 = arith.constant 0 : index
    %235 = vector.load %arg7[%c0_118, %c0_119] : memref<1x96xf32, #tpu.memory_space<vmem>>, vector<1x96xf32>
    %236 = vector.broadcast %235 : vector<1x96xf32> to vector<8x96xf32>
    %237 = arith.addf %234, %236 : vector<8x96xf32>
    %c0_120 = arith.constant 0 : index
    %c0_121 = arith.constant 0 : index
    %238 = vector.load %arg5[%c0_120, %c0_121] : memref<8x256xf32, #tpu.memory_space<vmem>>, vector<8x256xf32>
    %239 = arith.addf %238, %233 : vector<8x256xf32>
    %240 = math.tanh %239 : vector<8x256xf32>
    %c0_122 = arith.constant 0 : index
    %c0_123 = arith.constant 0 : index
    %241 = vector.load %arg13[%c0_122, %c0_123] : memref<256x8xf32, #tpu.memory_space<vmem>>, vector<256x8xf32>
    %cst_124 = arith.constant dense<0.000000e+00> : vector<8x8xf32>
    %242 = tpu.matmul %240, %241, %cst_124 {dimension_numbers = #tpu.dot_dimension_numbers<[1], [0], [0], [1], [0, 0, 1, 1], [], []>} : vector<8x256xf32>, vector<256x8xf32>, vector<8x8xf32> -> vector<8x8xf32>
    %cst_125 = arith.constant dense<0xFF800000> : vector<8xf32>
    %243 = vector.multi_reduction <maximumf>, %242, %cst_125 [1] : vector<8x8xf32> to vector<8xf32>
    %244 = vector.shape_cast %243 : vector<8xf32> to vector<8x1xf32>
    %245 = vector.broadcast %244 : vector<8x1xf32> to vector<8x8xf32>
    %246 = arith.subf %242, %245 : vector<8x8xf32>
    %247 = math.exp %246 : vector<8x8xf32>
    %cst_126 = arith.constant dense<0.000000e+00> : vector<8xf32>
    %248 = vector.multi_reduction <add>, %247, %cst_126 [1] : vector<8x8xf32> to vector<8xf32>
    %249 = vector.shape_cast %248 : vector<8xf32> to vector<8x1xf32>
    %250 = tpu.reciprocal %249 : vector<8x1xf32> -> vector<8x1xf32>
    %251 = vector.broadcast %250 : vector<8x1xf32> to vector<8x8xf32>
    %252 = arith.mulf %247, %251 : vector<8x8xf32>
    %253 = vector.shape_cast %252 : vector<8x8xf32> to vector<8x8x1xf32>
    %c0_127 = arith.constant 0 : index
    %c0_128 = arith.constant 0 : index
    %c0_129 = arith.constant 0 : index
    %254 = vector.load %arg4[%c0_127, %c0_128, %c0_129] : memref<8x8x32xf32, #tpu.memory_space<vmem>>, vector<8x8x32xf32>
    %255 = vector.broadcast %253 : vector<8x8x1xf32> to vector<8x8x32xf32>
    %256 = arith.mulf %255, %254 : vector<8x8x32xf32>
    %cst_130 = arith.constant dense<0.000000e+00> : vector<8x32xf32>
    %257 = vector.multi_reduction <add>, %256, %cst_130 [1] : vector<8x8x32xf32> to vector<8x32xf32>
    %258 = tpu.concatenate %230, %257 in 1 : vector<8x16xf32>, vector<8x32xf32> -> vector<8x48xf32>
    %c0_131 = arith.constant 0 : index
    %c0_132 = arith.constant 0 : index
    %259 = vector.load %arg8[%c0_131, %c0_132] : memref<48x96xf32, #tpu.memory_space<vmem>>, vector<48x96xf32>
    %cst_133 = arith.constant dense<0.000000e+00> : vector<8x96xf32>
    %260 = tpu.matmul %258, %259, %cst_133 {dimension_numbers = #tpu.dot_dimension_numbers<[1], [0], [0], [1], [0, 0, 1, 1], [], []>} : vector<8x48xf32>, vector<48x96xf32>, vector<8x96xf32> -> vector<8x96xf32>
    %c0_134 = arith.constant 0 : index
    %c0_135 = arith.constant 0 : index
    %261 = vector.load %arg9[%c0_134, %c0_135] : memref<1x96xf32, #tpu.memory_space<vmem>>, vector<1x96xf32>
    %262 = vector.broadcast %261 : vector<1x96xf32> to vector<8x96xf32>
    %263 = arith.addf %260, %262 : vector<8x96xf32>
    %264 = vector.extract_strided_slice %263 {offsets = [0, 0], sizes = [8, 32], strides = [1, 1]} : vector<8x96xf32> to vector<8x32xf32>
    %265 = vector.extract_strided_slice %237 {offsets = [0, 0], sizes = [8, 32], strides = [1, 1]} : vector<8x96xf32> to vector<8x32xf32>
    %266 = arith.addf %264, %265 : vector<8x32xf32>
    %267 = arith.negf %266 : vector<8x32xf32>
    %268 = math.exp %267 : vector<8x32xf32>
    %cst_136 = arith.constant 1.000000e+00 : f32
    %269 = vector.broadcast %cst_136 : f32 to vector<8x32xf32>
    %270 = arith.addf %269, %268 : vector<8x32xf32>
    %271 = arith.divf %269, %270 : vector<8x32xf32>
    %272 = vector.extract_strided_slice %263 {offsets = [0, 32], sizes = [8, 32], strides = [1, 1]} : vector<8x96xf32> to vector<8x32xf32>
    %273 = vector.extract_strided_slice %237 {offsets = [0, 32], sizes = [8, 32], strides = [1, 1]} : vector<8x96xf32> to vector<8x32xf32>
    %274 = arith.addf %272, %273 : vector<8x32xf32>
    %275 = arith.negf %274 : vector<8x32xf32>
    %276 = math.exp %275 : vector<8x32xf32>
    %cst_137 = arith.constant 1.000000e+00 : f32
    %277 = vector.broadcast %cst_137 : f32 to vector<8x32xf32>
    %278 = arith.addf %277, %276 : vector<8x32xf32>
    %279 = arith.divf %277, %278 : vector<8x32xf32>
    %280 = vector.extract_strided_slice %263 {offsets = [0, 64], sizes = [8, 32], strides = [1, 1]} : vector<8x96xf32> to vector<8x32xf32>
    %281 = vector.extract_strided_slice %237 {offsets = [0, 64], sizes = [8, 32], strides = [1, 1]} : vector<8x96xf32> to vector<8x32xf32>
    %282 = arith.mulf %271, %281 : vector<8x32xf32>
    %283 = arith.addf %280, %282 : vector<8x32xf32>
    %284 = math.tanh %283 : vector<8x32xf32>
    %cst_138 = arith.constant 1.000000e+00 : f32
    %285 = vector.broadcast %cst_138 : f32 to vector<8x32xf32>
    %286 = arith.subf %285, %279 : vector<8x32xf32>
    %287 = arith.mulf %286, %284 : vector<8x32xf32>
    %288 = arith.mulf %279, %213 : vector<8x32xf32>
    %289 = arith.addf %287, %288 : vector<8x32xf32>
    %290 = tpu.concatenate %289, %257, %230 in 1 : vector<8x32xf32>, vector<8x32xf32>, vector<8x16xf32> -> vector<8x80xf32>
    %c0_139 = arith.constant 0 : index
    %c0_140 = arith.constant 0 : index
    %291 = vector.load %arg10[%c0_139, %c0_140] : memref<80x128xf32, #tpu.memory_space<vmem>>, vector<80x128xf32>
    %cst_141 = arith.constant dense<0.000000e+00> : vector<8x128xf32>
    %292 = tpu.matmul %290, %291, %cst_141 {dimension_numbers = #tpu.dot_dimension_numbers<[1], [0], [0], [1], [0, 0, 1, 1], [], []>} : vector<8x80xf32>, vector<80x128xf32>, vector<8x128xf32> -> vector<8x128xf32>
    %c0_142 = arith.constant 0 : index
    %c0_143 = arith.constant 0 : index
    %293 = vector.load %arg11[%c0_142, %c0_143] : memref<1x128xf32, #tpu.memory_space<vmem>>, vector<1x128xf32>
    %294 = vector.broadcast %293 : vector<1x128xf32> to vector<8x128xf32>
    %295 = arith.addf %292, %294 : vector<8x128xf32>
    %c3_144 = arith.constant 3 : index
    %c0_145 = arith.constant 0 : index
    %c0_146 = arith.constant 0 : index
    %296 = vector.load %arg14[%c3_144, %c0_145, %c0_146] : memref<5x8x128xf32, #tpu.memory_space<vmem>>, vector<1x8x128xf32>
    %297 = vector.shape_cast %296 : vector<1x8x128xf32> to vector<8x128xf32>
    %298 = vector.shape_cast %295 : vector<8x128xf32> to vector<1x8x128xf32>
    tpu.vector_store %arg14[%c3_144, %c0_145, %c0_146], %298 {strides = array<i32>} : memref<5x8x128xf32, #tpu.memory_space<vmem>>, vector<1x8x128xf32>,
    %c4 = arith.constant 4 : index
    %299 = memref.load %arg1[%c4] : memref<5xi32, #tpu.memory_space<smem>>
    %c0_i32_147 = arith.constant 0 : i32
    %300 = arith.cmpi sgt, %299, %c0_i32_147 : i32
    %301 = arith.extui %300 : i1 to i32
    %c0_i32_148 = arith.constant 0 : i32
    %302 = arith.cmpi ne, %301, %c0_i32_148 : i32
    scf.if %302 {
      %c4_185 = arith.constant 4 : index
      %c0_186 = arith.constant 0 : index
      %c0_187 = arith.constant 0 : index
      %375 = vector.load %arg2[%c4_185, %c0_186, %c0_187] : memref<5x8x16xf32, #tpu.memory_space<vmem>>, vector<1x8x16xf32>
      %376 = vector.shape_cast %375 : vector<1x8x16xf32> to vector<8x16xf32>
      %c0_188 = arith.constant 0 : index
      %c0_189 = arith.constant 0 : index
      %377 = vector.load %arg15[%c0_188, %c0_189] : memref<8x16xf32, #tpu.memory_space<vmem>>, vector<8x16xf32>
      tpu.vector_store %arg15[%c0_188, %c0_189], %376 {strides = array<i32>} : memref<8x16xf32, #tpu.memory_space<vmem>>, vector<8x16xf32>,
    } else {
    }
    %true_149 = arith.constant true
    %303 = arith.xori %300, %true_149 : i1
    %304 = arith.extui %303 : i1 to i32
    %c0_i32_150 = arith.constant 0 : i32
    %305 = arith.cmpi ne, %304, %c0_i32_150 : i32
    scf.if %305 {
      %375 = tpu.iota {dimensions = array<i32: 1>} : vector<8x128xi32>
      %cst_185 = arith.constant dense<0xFF800000> : vector<8xf32>
      %376 = vector.multi_reduction <maximumf>, %295, %cst_185 [1] : vector<8x128xf32> to vector<8xf32>
      %377 = vector.shape_cast %376 : vector<8xf32> to vector<8x1xf32>
      %378 = vector.broadcast %377 : vector<8x1xf32> to vector<8x128xf32>
      %379 = arith.cmpf oge, %295, %378 : vector<8x128xf32>
      %c128_i32 = arith.constant 128 : i32
      %380 = vector.broadcast %c128_i32 : i32 to vector<8x128xi32>
      %381 = arith.select %379, %375, %380 : vector<8x128xi1>, vector<8x128xi32>
      %cst_186 = arith.constant dense<2147483647> : vector<8xi32>
      %382 = vector.multi_reduction <minsi>, %381, %cst_186 [1] : vector<8x128xi32> to vector<8xi32>
      %383 = vector.shape_cast %382 : vector<8xi32> to vector<8x1xi32>
      %384 = vector.broadcast %383 : vector<8x1xi32> to vector<8x128xi32>
      %385 = arith.cmpi eq, %375, %384 : vector<8x128xi32>
      %386 = arith.extui %385 : vector<8x128xi1> to vector<8x128xi32>
      %387 = arith.sitofp %386 : vector<8x128xi32> to vector<8x128xf32>
      %c0_187 = arith.constant 0 : index
      %c0_188 = arith.constant 0 : index
      %388 = vector.load %arg12[%c0_187, %c0_188] : memref<128x16xf32, #tpu.memory_space<vmem>>, vector<128x16xf32>
      %cst_189 = arith.constant dense<0.000000e+00> : vector<8x16xf32>
      %389 = tpu.matmul %387, %388, %cst_189 {dimension_numbers = #tpu.dot_dimension_numbers<[1], [0], [0], [1], [0, 0, 1, 1], [], []>} : vector<8x128xf32>, vector<128x16xf32>, vector<8x16xf32> -> vector<8x16xf32>
      %c0_190 = arith.constant 0 : index
      %c0_191 = arith.constant 0 : index
      %390 = vector.load %arg15[%c0_190, %c0_191] : memref<8x16xf32, #tpu.memory_space<vmem>>, vector<8x16xf32>
      tpu.vector_store %arg15[%c0_190, %c0_191], %389 {strides = array<i32>} : memref<8x16xf32, #tpu.memory_space<vmem>>, vector<8x16xf32>,
    } else {
    }
    %c0_151 = arith.constant 0 : index
    %c0_152 = arith.constant 0 : index
    %306 = vector.load %arg15[%c0_151, %c0_152] : memref<8x16xf32, #tpu.memory_space<vmem>>, vector<8x16xf32>
    %c0_153 = arith.constant 0 : index
    %c0_154 = arith.constant 0 : index
    %307 = vector.load %arg6[%c0_153, %c0_154] : memref<32x352xf32, #tpu.memory_space<vmem>>, vector<32x352xf32>
    %cst_155 = arith.constant dense<0.000000e+00> : vector<8x352xf32>
    %308 = tpu.matmul %289, %307, %cst_155 {dimension_numbers = #tpu.dot_dimension_numbers<[1], [0], [0], [1], [0, 0, 1, 1], [], []>} : vector<8x32xf32>, vector<32x352xf32>, vector<8x352xf32> -> vector<8x352xf32>
    %309 = vector.extract_strided_slice %308 {offsets = [0, 0], sizes = [8, 256], strides = [1, 1]} : vector<8x352xf32> to vector<8x256xf32>
    %310 = vector.extract_strided_slice %308 {offsets = [0, 256], sizes = [8, 96], strides = [1, 1]} : vector<8x352xf32> to vector<8x96xf32>
    %c0_156 = arith.constant 0 : index
    %c0_157 = arith.constant 0 : index
    %311 = vector.load %arg7[%c0_156, %c0_157] : memref<1x96xf32, #tpu.memory_space<vmem>>, vector<1x96xf32>
    %312 = vector.broadcast %311 : vector<1x96xf32> to vector<8x96xf32>
    %313 = arith.addf %310, %312 : vector<8x96xf32>
    %c0_158 = arith.constant 0 : index
    %c0_159 = arith.constant 0 : index
    %314 = vector.load %arg5[%c0_158, %c0_159] : memref<8x256xf32, #tpu.memory_space<vmem>>, vector<8x256xf32>
    %315 = arith.addf %314, %309 : vector<8x256xf32>
    %316 = math.tanh %315 : vector<8x256xf32>
    %c0_160 = arith.constant 0 : index
    %c0_161 = arith.constant 0 : index
    %317 = vector.load %arg13[%c0_160, %c0_161] : memref<256x8xf32, #tpu.memory_space<vmem>>, vector<256x8xf32>
    %cst_162 = arith.constant dense<0.000000e+00> : vector<8x8xf32>
    %318 = tpu.matmul %316, %317, %cst_162 {dimension_numbers = #tpu.dot_dimension_numbers<[1], [0], [0], [1], [0, 0, 1, 1], [], []>} : vector<8x256xf32>, vector<256x8xf32>, vector<8x8xf32> -> vector<8x8xf32>
    %cst_163 = arith.constant dense<0xFF800000> : vector<8xf32>
    %319 = vector.multi_reduction <maximumf>, %318, %cst_163 [1] : vector<8x8xf32> to vector<8xf32>
    %320 = vector.shape_cast %319 : vector<8xf32> to vector<8x1xf32>
    %321 = vector.broadcast %320 : vector<8x1xf32> to vector<8x8xf32>
    %322 = arith.subf %318, %321 : vector<8x8xf32>
    %323 = math.exp %322 : vector<8x8xf32>
    %cst_164 = arith.constant dense<0.000000e+00> : vector<8xf32>
    %324 = vector.multi_reduction <add>, %323, %cst_164 [1] : vector<8x8xf32> to vector<8xf32>
    %325 = vector.shape_cast %324 : vector<8xf32> to vector<8x1xf32>
    %326 = tpu.reciprocal %325 : vector<8x1xf32> -> vector<8x1xf32>
    %327 = vector.broadcast %326 : vector<8x1xf32> to vector<8x8xf32>
    %328 = arith.mulf %323, %327 : vector<8x8xf32>
    %329 = vector.shape_cast %328 : vector<8x8xf32> to vector<8x8x1xf32>
    %c0_165 = arith.constant 0 : index
    %c0_166 = arith.constant 0 : index
    %c0_167 = arith.constant 0 : index
    %330 = vector.load %arg4[%c0_165, %c0_166, %c0_167] : memref<8x8x32xf32, #tpu.memory_space<vmem>>, vector<8x8x32xf32>
    %331 = vector.broadcast %329 : vector<8x8x1xf32> to vector<8x8x32xf32>
    %332 = arith.mulf %331, %330 : vector<8x8x32xf32>
    %cst_168 = arith.constant dense<0.000000e+00> : vector<8x32xf32>
    %333 = vector.multi_reduction <add>, %332, %cst_168 [1] : vector<8x8x32xf32> to vector<8x32xf32>
    %334 = tpu.concatenate %306, %333 in 1 : vector<8x16xf32>, vector<8x32xf32> -> vector<8x48xf32>
    %c0_169 = arith.constant 0 : index
    %c0_170 = arith.constant 0 : index
    %335 = vector.load %arg8[%c0_169, %c0_170] : memref<48x96xf32, #tpu.memory_space<vmem>>, vector<48x96xf32>
    %cst_171 = arith.constant dense<0.000000e+00> : vector<8x96xf32>
    %336 = tpu.matmul %334, %335, %cst_171 {dimension_numbers = #tpu.dot_dimension_numbers<[1], [0], [0], [1], [0, 0, 1, 1], [], []>} : vector<8x48xf32>, vector<48x96xf32>, vector<8x96xf32> -> vector<8x96xf32>
    %c0_172 = arith.constant 0 : index
    %c0_173 = arith.constant 0 : index
    %337 = vector.load %arg9[%c0_172, %c0_173] : memref<1x96xf32, #tpu.memory_space<vmem>>, vector<1x96xf32>
    %338 = vector.broadcast %337 : vector<1x96xf32> to vector<8x96xf32>
    %339 = arith.addf %336, %338 : vector<8x96xf32>
    %340 = vector.extract_strided_slice %339 {offsets = [0, 0], sizes = [8, 32], strides = [1, 1]} : vector<8x96xf32> to vector<8x32xf32>
    %341 = vector.extract_strided_slice %313 {offsets = [0, 0], sizes = [8, 32], strides = [1, 1]} : vector<8x96xf32> to vector<8x32xf32>
    %342 = arith.addf %340, %341 : vector<8x32xf32>
    %343 = arith.negf %342 : vector<8x32xf32>
    %344 = math.exp %343 : vector<8x32xf32>
    %cst_174 = arith.constant 1.000000e+00 : f32
    %345 = vector.broadcast %cst_174 : f32 to vector<8x32xf32>
    %346 = arith.addf %345, %344 : vector<8x32xf32>
    %347 = arith.divf %345, %346 : vector<8x32xf32>
    %348 = vector.extract_strided_slice %339 {offsets = [0, 32], sizes = [8, 32], strides = [1, 1]} : vector<8x96xf32> to vector<8x32xf32>
    %349 = vector.extract_strided_slice %313 {offsets = [0, 32], sizes = [8, 32], strides = [1, 1]} : vector<8x96xf32> to vector<8x32xf32>
    %350 = arith.addf %348, %349 : vector<8x32xf32>
    %351 = arith.negf %350 : vector<8x32xf32>
    %352 = math.exp %351 : vector<8x32xf32>
    %cst_175 = arith.constant 1.000000e+00 : f32
    %353 = vector.broadcast %cst_175 : f32 to vector<8x32xf32>
    %354 = arith.addf %353, %352 : vector<8x32xf32>
    %355 = arith.divf %353, %354 : vector<8x32xf32>
    %356 = vector.extract_strided_slice %339 {offsets = [0, 64], sizes = [8, 32], strides = [1, 1]} : vector<8x96xf32> to vector<8x32xf32>
    %357 = vector.extract_strided_slice %313 {offsets = [0, 64], sizes = [8, 32], strides = [1, 1]} : vector<8x96xf32> to vector<8x32xf32>
    %358 = arith.mulf %347, %357 : vector<8x32xf32>
    %359 = arith.addf %356, %358 : vector<8x32xf32>
    %360 = math.tanh %359 : vector<8x32xf32>
    %cst_176 = arith.constant 1.000000e+00 : f32
    %361 = vector.broadcast %cst_176 : f32 to vector<8x32xf32>
    %362 = arith.subf %361, %355 : vector<8x32xf32>
    %363 = arith.mulf %362, %360 : vector<8x32xf32>
    %364 = arith.mulf %355, %289 : vector<8x32xf32>
    %365 = arith.addf %363, %364 : vector<8x32xf32>
    %366 = tpu.concatenate %365, %333, %306 in 1 : vector<8x32xf32>, vector<8x32xf32>, vector<8x16xf32> -> vector<8x80xf32>
    %c0_177 = arith.constant 0 : index
    %c0_178 = arith.constant 0 : index
    %367 = vector.load %arg10[%c0_177, %c0_178] : memref<80x128xf32, #tpu.memory_space<vmem>>, vector<80x128xf32>
    %cst_179 = arith.constant dense<0.000000e+00> : vector<8x128xf32>
    %368 = tpu.matmul %366, %367, %cst_179 {dimension_numbers = #tpu.dot_dimension_numbers<[1], [0], [0], [1], [0, 0, 1, 1], [], []>} : vector<8x80xf32>, vector<80x128xf32>, vector<8x128xf32> -> vector<8x128xf32>
    %c0_180 = arith.constant 0 : index
    %c0_181 = arith.constant 0 : index
    %369 = vector.load %arg11[%c0_180, %c0_181] : memref<1x128xf32, #tpu.memory_space<vmem>>, vector<1x128xf32>
    %370 = vector.broadcast %369 : vector<1x128xf32> to vector<8x128xf32>
    %371 = arith.addf %368, %370 : vector<8x128xf32>
    %c4_182 = arith.constant 4 : index
    %c0_183 = arith.constant 0 : index
    %c0_184 = arith.constant 0 : index
    %372 = vector.load %arg14[%c4_182, %c0_183, %c0_184] : memref<5x8x128xf32, #tpu.memory_space<vmem>>, vector<1x8x128xf32>
    %373 = vector.shape_cast %372 : vector<1x8x128xf32> to vector<8x128xf32>
    %374 = vector.shape_cast %371 : vector<8x128xf32> to vector<1x8x128xf32>
    tpu.vector_store %arg14[%c4_182, %c0_183, %c0_184], %374 {strides = array<i32>} : memref<5x8x128xf32, #tpu.memory_space<vmem>>, vector<1x8x128xf32>,
    return
  }
  func.func @transform_0(%arg0: i32, %arg1: memref<5xi32, #tpu.memory_space<smem>>) -> (i32, i32, i32) {
    %c0_i32 = arith.constant 0 : i32
    %c0_i32_0 = arith.constant 0 : i32
    %c0_i32_1 = arith.constant 0 : i32
    %c0_i32_2 = arith.constant 0 : i32
    return %c0_i32, %c0_i32_0, %c0_i32_1 : i32, i32, i32
  }
  func.func @transform_1(%arg0: i32, %arg1: memref<5xi32, #tpu.memory_space<smem>>) -> (i32, i32) {
    %c0_i32 = arith.constant 0 : i32
    %c0_i32_0 = arith.constant 0 : i32
    %c0_i32_1 = arith.constant 0 : i32
    return %c0_i32, %c0_i32_0 : i32, i32
  }
  func.func @transform_2(%arg0: i32, %arg1: memref<5xi32, #tpu.memory_space<smem>>) -> (i32, i32, i32) {
    %c0_i32 = arith.constant 0 : i32
    %c0_i32_0 = arith.constant 0 : i32
    %c0_i32_1 = arith.constant 0 : i32
    %c0_i32_2 = arith.constant 0 : i32
    return %c0_i32, %c0_i32_0, %c0_i32_1 : i32, i32, i32
  }
  func.func @transform_3(%arg0: i32, %arg1: memref<5xi32, #tpu.memory_space<smem>>) -> (i32, i32) {
    %c0_i32 = arith.constant 0 : i32
    %c0_i32_0 = arith.constant 0 : i32
    %c0_i32_1 = arith.constant 0 : i32
    return %c0_i32, %c0_i32_0 : i32, i32
  }
  func.func @transform_4(%arg0: i32, %arg1: memref<5xi32, #tpu.memory_space<smem>>) -> (i32, i32) {
    %c0_i32 = arith.constant 0 : i32
    %c0_i32_0 = arith.constant 0 : i32
    %c0_i32_1 = arith.constant 0 : i32
    return %c0_i32, %c0_i32_0 : i32, i32
  }
  func.func @transform_5(%arg0: i32, %arg1: memref<5xi32, #tpu.memory_space<smem>>) -> (i32, i32) {
    %c0_i32 = arith.constant 0 : i32
    %c0_i32_0 = arith.constant 0 : i32
    %c0_i32_1 = arith.constant 0 : i32
    return %c0_i32, %c0_i32_0 : i32, i32
  }
  func.func @transform_6(%arg0: i32, %arg1: memref<5xi32, #tpu.memory_space<smem>>) -> (i32, i32) {
    %c0_i32 = arith.constant 0 : i32
    %c0_i32_0 = arith.constant 0 : i32
    %c0_i32_1 = arith.constant 0 : i32
    return %c0_i32, %c0_i32_0 : i32, i32
  }
  func.func @transform_7(%arg0: i32, %arg1: memref<5xi32, #tpu.memory_space<smem>>) -> (i32, i32) {
    %c0_i32 = arith.constant 0 : i32
    %c0_i32_0 = arith.constant 0 : i32
    %c0_i32_1 = arith.constant 0 : i32
    return %c0_i32, %c0_i32_0 : i32, i32
  }
  func.func @transform_8(%arg0: i32, %arg1: memref<5xi32, #tpu.memory_space<smem>>) -> (i32, i32) {
    %c0_i32 = arith.constant 0 : i32
    %c0_i32_0 = arith.constant 0 : i32
    %c0_i32_1 = arith.constant 0 : i32
    return %c0_i32, %c0_i32_0 : i32, i32
  }
  func.func @transform_9(%arg0: i32, %arg1: memref<5xi32, #tpu.memory_space<smem>>) -> (i32, i32) {
    %c0_i32 = arith.constant 0 : i32
    %c0_i32_0 = arith.constant 0 : i32
    %c0_i32_1 = arith.constant 0 : i32
    return %c0_i32, %c0_i32_0 : i32, i32
  }
  func.func @transform_10(%arg0: i32, %arg1: memref<5xi32, #tpu.memory_space<smem>>) -> (i32, i32) {
    %c0_i32 = arith.constant 0 : i32
    %c0_i32_0 = arith.constant 0 : i32
    %c0_i32_1 = arith.constant 0 : i32
    return %c0_i32, %c0_i32_0 : i32, i32
  }
  func.func @transform_11(%arg0: i32, %arg1: memref<5xi32, #tpu.memory_space<smem>>) -> (i32, i32) {
    %c0_i32 = arith.constant 0 : i32
    %c0_i32_0 = arith.constant 0 : i32
    %c0_i32_1 = arith.constant 0 : i32
    return %c0_i32, %c0_i32_0 : i32, i32
  }
  func.func @transform_12(%arg0: i32, %arg1: memref<5xi32, #tpu.memory_space<smem>>) -> (i32, i32, i32) {
    %c0_i32 = arith.constant 0 : i32
    %c0_i32_0 = arith.constant 0 : i32
    %c0_i32_1 = arith.constant 0 : i32
    %c0_i32_2 = arith.constant 0 : i32
    return %c0_i32, %c0_i32_0, %c0_i32_1 : i32, i32, i32
  }
}

</mosaic_0001>

<bundles_post_ra>
// kernel: tpu_custom_call.1
= control target key start
LH: loop header
LB: loop body
LE: loop exit
PB: predicated region body
PF: predicated region fallthrough
CT: control target
= control target key end

     0   :  { %s6977_s0 = inlined_call_operand.vmem [shape: s32[5], index: 0, kind: input, shape index: {}]   ;;  %s6978_s1 = inlined_call_operand.vmem [shape: f32[5,8,16], index: 1, kind: input, shape index: {}]   ;;  %s6979_s2 = inlined_call_operand.vmem [shape: f32[8,32], index: 2, kind: input, shape index: {}]   ;;  %s6980_s3 = inlined_call_operand.vmem [shape: f32[8,8,32], index: 3, kind: input, shape index: {}]   ;;  %s6981_s4 = inlined_call_operand.vmem [shape: f32[8,256], index: 4, kind: input, shape index: {}]   ;;  %s6982_s5 = inlined_call_operand.vmem [shape: f32[32,352], index: 5, kind: input, shape index: {}]   ;;  %s6983_s6 = inlined_call_operand.vmem [shape: f32[1,96], index: 6, kind: input, shape index: {}]   ;;  %s6984_s7 = inlined_call_operand.vmem [shape: f32[48,96], index: 7, kind: input, shape index: {}]   ;;  %s6985_s8 = inlined_call_operand.vmem [shape: f32[1,96], index: 8, kind: input, shape index: {}]   ;;  %s6986_s9 = inlined_call_operand.vmem [shape: f32[80,128], index: 9, kind: input, shape index: {}]   ;;  %s6987_s10 = inlined_call_operand.vmem [shape: f32[1,128], index: 10, kind: input, shape index: {}]   ;;  %s6988_s11 = inlined_call_operand.vmem [shape: f32[128,16], index: 11, kind: input, shape index: {}]   ;;  %s6989_s12 = inlined_call_operand.vmem [shape: f32[256,8], index: 12, kind: input, shape index: {}]   ;;  %s6990_s13 = inlined_call_operand.hbm [shape: f32[5,8,128], index: 13, kind: output, shape index: {}]  }
   0x1   :  { %s18_s27 = sshll.u32 %s6977_s0, 4  ;;  %s19_s27 = int_to_ptr.vmem [resolvable:$true] %s18_s27 }
   0x2   :  { %s5155_s28 = scalar_lea.vmem %s19_s27, 16  ;;  %p5160_p1 = scmp.lt.s32.totalorder %s19_s27, %s19_s27 }
   0x3   :  { %p5156_p0 = scmp.ne.s32.totalorder %s19_s27, %s5155_s28  ;;  %p5161_p2 = scmp.lt.s32.totalorder %s5155_s28, %s5155_s28 }
   0x5   :  { %p5162_p3 = por %p5161_p2, %p5160_p1 }
   0x7   :  { %p5163_p4 = pnand %p5162_p3, %p5156_p0 }
   0x9   :  { %5166 = shalt.err (!%p5163_p4)  }
   0xa   :  { %s5193_s29 = smov [#allocation4]  }
   0xb   :  { %21 = dma.vmem_to_smem %s19_s27, 16, %s5193_s29, [#allocation3] }
   0xc   :  { %5189 = dma.done.wait [#allocation3], 16 }
   0xd   :  { %5190 = vsyncadd [#allocation3], 4294967280 }
   0xe   :  { %23 = sfence }
   0xf   :  { %24 = vsyncpa [#allocation6], 0  ;;  %v52_v0 = vld [vmem:[%s6982_s5 + $0x8] sm:$0xff]  ;;  %v55_v1 = vld [vmem:[%s6982_s5 + $0x20] sm:$0xff]  ;;  %v5194_v6 = vmov 0.0   ;;  %vm63_vm0 = vcmask 261120  }
  0x10   :  { %v4612_v2 = vpack.c.bf16 %v55_v1, %v52_v0  ;;  %v51_v3 = vld [vmem:[%s6982_s5] sm:$0xff]  ;;  %v54_v4 = vld [vmem:[%s6982_s5 + $0x18] sm:$0xff]  ;;  %131 = vmatprep.mubr.f32.mxu0 %v5194_v6  ;;  %v61_v8 = vld [vmem:[%s6982_s5 + $0x50] sm:$0xff]  ;;  %vm324_vm1 = vcmask 64512   ;;  %vm5196_vm2 = vmmov 0   ;;  %vm472_vm3 = vcmask 1041409  }
  0x11   :  { %v58_v5 = vld [vmem:[%s6982_s5 + $0x38] sm:$0xff]  ;;  %v4614_v7 = vpack.c.bf16 %v54_v4, %v51_v3  ;;  %v57_v9 = vld [vmem:[%s6982_s5 + $0x30] sm:$0xff]  ;;  %v60_v10 = vld [vmem:[%s6982_s5 + $0x48] sm:$0xff]  ;;  %4235 = vmatprep.mubr.msk.f32.mxu1 %vm5196_vm2, %v5194_v6  ;;  %vm474_vm4 = vcmask 1042434   ;;  %vm476_vm5 = vcmask 1043459   ;;  %vm478_vm6 = vcmask 1044484  }
  0x12   :  { %4613 = vmatprep.subr.bf16.mxu0 %v4612_v2  ;;  %v4616_v11 = vpack.c.bf16 %v61_v8, %v58_v5  ;;  %v238_v12 = vld [vmem:[%s6989_s12 + $0x80] sm:$0xff]  ;;  %v239_v13 = vld [vmem:[%s6989_s12 + $0x88] sm:$0xff]  ;;  %v4618_v14 = vpack.c.bf16 %v60_v10, %v57_v9  ;;  %v240_v18 = vld [vmem:[%s6989_s12 + $0x90] sm:$0xff]  ;;  %vm480_vm7 = vcmask 1045509   ;;  %vm482_vm8 = vcmask 1046534   ;;  %s5197_s21 = smov 16  }
  0x13   :  { %4615 = vmatpush1.bf16.msra.mxu0 %v4614_v7  ;;  %v4626_v15 = vpack.c.bf16 %v239_v13, %v238_v12  ;;  %v222_v16 = vld [vmem:[%s6989_s12] sm:$0xff]  ;;  %v223_v17 = vld [vmem:[%s6989_s12 + $0x8] sm:$0xff]  ;;  %v241_v19 = vld [vmem:[%s6989_s12 + $0x98] sm:$0xff]  ;;  %vm484_vm9 = vcmask 1047559   ;;  %s5198_s24 = smov 64   ;;  %vm489_vm10 = vcmask 130048  }
  0x14   :  { %4617 = vmatprep.subr.bf16.mxu0 %v4616_v11  ;;  %v5339_v20 = vld [vmem:[%s6979_s2] sm:$0xff]  ;;  %v4628_v21 = vpack.c.bf16 %v223_v17, %v222_v16  ;;  %v4630_v22 = vpack.c.bf16 %v241_v19, %v240_v18  ;;  %v224_v23 = vld [vmem:[%s6989_s12 + $0x10] sm:$0xff]  ;;  %v225_v24 = vld [vmem:[%s6989_s12 + $0x18] sm:$0xff]  ;;  %v336_v17 = vlaneseq  ;;  %vm504_vm11 = vcmask 392192   ;;  %s5199_s29 = smov 32   ;;  %s5200_s25 = smov 96  }
  0x15   :  { %v242_v25 = vld [vmem:[%s6989_s12 + $0xa0] sm:$0xff]  ;;  %v243_v26 = vld [vmem:[%s6989_s12 + $0xa8] sm:$0xff]  ;;  %v4632_v27 = vpack.c.bf16 %v225_v24, %v224_v23  ;;  %v244_v31 = vld [vmem:[%s6989_s12 + $0xb0] sm:$0xff]  ;;  %vm619_vm12 = vcmask 523264   ;;  %vm638_vm13 = vcmask 654336   ;;  %s3813_s16 = sld [smem:[#allocation4 + $0x1]] }
  0x16   :  { %v4634_v28 = vpack.c.bf16 %v243_v26, %v242_v25  ;;  %v226_v29 = vld [vmem:[%s6989_s12 + $0x20] sm:$0xff]  ;;  %v227_v30 = vld [vmem:[%s6989_s12 + $0x28] sm:$0xff]  ;;  %v245_v32 = vld [vmem:[%s6989_s12 + $0xb8] sm:$0xff]  ;;  %v337_v18 = vshrl.u32 %v336_v17, 7 }
  0x17   :  { %4619 = vmatpush1.bf16.msra.mxu0 %v4618_v14  ;;  %v4636_v33 = vpack.c.bf16 %v227_v30, %v226_v29  ;;  %v4638_v34 = vpack.c.bf16 %v245_v32, %v244_v31  ;;  %v228_v35 = vld [vmem:[%s6989_s12 + $0x30] sm:$0xff]  ;;  %v229_v36 = vld [vmem:[%s6989_s12 + $0x38] sm:$0xff]  ;;  %v246_v38 = vld [vmem:[%s6989_s12 + $0xc0] sm:$0xff] }
  0x18   :  { %4627 = vmatprep.subr.bf16.mxu0 %v4626_v15  ;;  %v4640_v37 = vpack.c.bf16 %v229_v36, %v228_v35  ;;  %v247_v39 = vld [vmem:[%s6989_s12 + $0xc8] sm:$0xff]  ;;  %v230_v41 = vld [vmem:[%s6989_s12 + $0x40] sm:$0xff]  ;;  %v248_v44 = vld [vmem:[%s6989_s12 + $0xd0] sm:$0xff]  ;;  %v5430_v19 = vsub.s32 2, %v337_v18  ;;  %v5436_v26 = vsub.s32 1, %v337_v18  ;;  %v5442_v30 = vsub.s32 4, %v337_v18 }
  0x19   :  { %v4642_v40 = vpack.c.bf16 %v247_v39, %v246_v38  ;;  %v231_v42 = vld [vmem:[%s6989_s12 + $0x48] sm:$0xff]  ;;  %v249_v45 = vld [vmem:[%s6989_s12 + $0xd8] sm:$0xff]  ;;  %v232_v47 = vld [vmem:[%s6989_s12 + $0x50] sm:$0xff]  ;;  %v5445_v32 = vsub.s32 5, %v337_v18  ;;  %v5451_v36 = vsub.s32 7, %v337_v18 }
  0x1a   :  { %3805 = vmatmul.mubr.msk.f32.vlgmr.msra.gmra.mrb[0].mxu0 %vm63_vm0, %v5339_v20  ;;  %v4644_v43 = vpack.c.bf16 %v231_v42, %v230_v41  ;;  %v4646_v46 = vpack.c.bf16 %v249_v45, %v248_v44  ;;  %v233_v48 = vld [vmem:[%s6989_s12 + $0x58] sm:$0xff]  ;;  %v250_v50 = vld [vmem:[%s6989_s12 + $0xe0] sm:$0xff]  ;;  %v251_v51 = vld [vmem:[%s6989_s12 + $0xe8] sm:$0xff]  ;;  %v5195_v41 = vmov 0.0|0.0  }
  0x1b   :  { %4629 = vmatpush3.bf16.msra.mxu0 %v4628_v21  ;;  %v4648_v49 = vpack.c.bf16 %v233_v48, %v232_v47  ;;  %v234_v52 = vld [vmem:[%s6989_s12 + $0x60] sm:$0xff]  ;;  %v4650_v53 = vpack.c.bf16 %v251_v51, %v250_v50  ;;  %v235_v54 = vld [vmem:[%s6989_s12 + $0x68] sm:$0xff]  ;;  %v252_v55 = vld [vmem:[%s6989_s12 + $0xf0] sm:$0xff]  ;;  %v5432_v21 = vsub.s32 0, %v337_v18  ;;  %4620 = vmatprep.subr.bf16.mxu1 %v5195_v41  ;;  %p3814_p5 = scmp.le.s32.totalorder %s3813_s16, 0 }
  0x1c   :  { %4631 = vmatprep.subr.bf16.mxu0 %v4630_v22  ;;  %v253_v56 = vld [vmem:[%s6989_s12 + $0xf8] sm:$0xff]  ;;  %v4652_v57 = vpack.c.bf16 %v235_v54, %v234_v52  ;;  %v236_v59 = vld [vmem:[%s6989_s12 + $0x70] sm:$0xff]  ;;  %v216_v62 = vld [vmem:[%s6981_s4] sm:$0xff] }
  0x1d   :  { %v4654_v58 = vpack.c.bf16 %v253_v56, %v252_v55  ;;  %v237_v60 = vld [vmem:[%s6989_s12 + $0x78] sm:$0xff]  ;;  %v217_v63 = vld [vmem:[%s6981_s4 + $0x8] sm:$0xff]  ;;  %v53_v38 = vld [vmem:[%s6982_s5 + $0x10] sm:$0xff] }
  0x1e   :  { %v4656_v61 = vpack.c.bf16 %v237_v60, %v236_v59  ;;  %v56_v39 = vld [vmem:[%s6982_s5 + $0x28] sm:$0xff]  ;;  %v491_v45 = vld [vmem:[%s6984_s7] sm:$0xff]  ;;  %v493_v48 = vld [vmem:[%s6984_s7 + $0x10] sm:$0xff] }
  0x1f   :  { %4633 = vmatpush3.bf16.msra.mxu0 %v4632_v27  ;;  %v4621_v42 = vpack.c.bf16 %v56_v39, %v53_v38  ;;  %v495_v51 = vld [vmem:[%s6984_s7 + $0x20] sm:$0xff]  ;;  %v496_v52 = vld [vmem:[%s6984_s7 + $0x28] sm:$0xff] }
  0x20   :  { %4635 = vmatprep.subr.bf16.mxu0 %v4634_v28  ;;  %v5439_v28 = vsub.s32 3, %v337_v18  ;;  %v392_v54 = vld [vmem:[%s6980_s3] sm:$0xff]  ;;  %v393_v56 = vld [vmem:[%s6980_s3 + $0x8] sm:$0xff] }
  0x21   :  { %4622 = vmatpush3.bf16.msra.mxu1 %v4621_v42 }
  0x22   :  { %4623 = vmatprep.subr.bf16.mxu1 %v5195_v41 }
  0x23   :  { %4637 = vmatpush3.bf16.msra.mxu0 %v4636_v33 }
  0x24   :  { %4639 = vmatprep.subr.bf16.mxu0 %v4638_v34  ;;  %v5448_v34 = vsub.s32 6, %v337_v18 }
  0x27   :  { %4641 = vmatpush3.bf16.msra.mxu0 %v4640_v37 }
  0x28   :  { %4643 = vmatprep.subr.bf16.mxu0 %v4642_v40  ;;  %v59_v40 = vld [vmem:[%s6982_s5 + $0x40] sm:$0xff] }
  0x2b   :  { %4645 = vmatpush3.bf16.msra.mxu0 %v4644_v43  ;;  %v62_v43 = vld [vmem:[%s6982_s5 + $0x58] sm:$0xff] }
  0x2c   :  { %4647 = vmatprep.subr.bf16.mxu0 %v4646_v46  ;;  %v4624_v44 = vpack.c.bf16 %v62_v43, %v59_v40  ;;  %v492_v46 = vld [vmem:[%s6984_s7 + $0x8] sm:$0xff] }
  0x2d   :  { %v4659_v47 = vpack.c.bf16 %v492_v46, %v491_v45 }
  0x2e   :  { %4625 = vmatpush3.bf16.msra.mxu1 %v4624_v44 }
  0x2f   :  { %4649 = vmatpush3.bf16.msra.mxu0 %v4648_v49  ;;  %4658 = vmatprep.subr.bf16.mxu1 %v5195_v41  ;;  %v494_v49 = vld [vmem:[%s6984_s7 + $0x18] sm:$0xff] }
  0x30   :  { %4651 = vmatprep.subr.bf16.mxu0 %v4650_v53  ;;  %v4662_v50 = vpack.c.bf16 %v494_v49, %v493_v48  ;;  %v4665_v53 = vpack.c.bf16 %v496_v52, %v495_v51  ;;  %v399_v48 = vld [vmem:[%s6980_s3 + $0x38] sm:$0xff] }
  0x31   :  { %4236 = vmatmul.mubr.msk.f32.vlgmr.msra.gmra.mrb[0].mxu1 %vm63_vm0, %v5339_v20 }
  0x32   :  { %4660 = vmatpush3.bf16.msra.mxu1 %v4659_v47  ;;  %4250 = vmatprep.mubr.msk.f32.mxu1 %vm5196_vm2, %v5194_v6 }
  0x33   :  { %4653 = vmatpush3.bf16.msra.mxu0 %v4652_v57  ;;  %4661 = vmatprep.subr.bf16.mxu1 %v5195_v41  ;;  %v394_v57 = vld [vmem:[%s6980_s3 + $0x10] sm:$0xff] }
  0x34   :  { %4655 = vmatprep.subr.bf16.mxu0 %v4654_v58 }
  0x36   :  { %4663 = vmatpush3.bf16.msra.mxu1 %v4662_v50 }
  0x37   :  { %4657 = vmatpush3.bf16.msra.mxu0 %v4656_v61  ;;  %4664 = vmatprep.subr.bf16.mxu1 %v5195_v41 }
  0x3a   :  { %4666 = vmatpush3.bf16.msra.mxu1 %v4665_v53 }
  0x3b   :  { %4667 = vmatprep.subr.bf16.mxu1 %v5195_v41 }
  0xed   :  { %v133_v0 = vpop.f32.mrb[0].mxu0 }
  0xee   :  { %v218_v1 = vadd.f32 %v216_v62, %v133_v0  ;;  %v135_v2 = vpop.f32.mrb[1].mxu0 }
  0xef   :  { %v219_v3 = vadd.f32 %v217_v63, %v135_v2  ;;  %v395_v63 = vld [vmem:[%s6980_s3 + $0x18] sm:$0xff] }
  0xf1   :  { %5085 = vtanh.f32 %v219_v3 }
  0xf2   :  { %5087 = vtanh.f32 %v218_v1 }
  0xfb   :  { %v5086_v4 = vpop.eup %5085 }
  0xfc   :  { %v5088_v5 = vpop.eup %5087  ;;  %318 = vmatprep.mubr.f32.mxu0 %v5086_v4 }
  0xfd   :  { %319 = vmatmul.mubr.f32.vlgmr.msra.gmra.mrb[2].mxu0 %v5088_v5 }
 0x1d0   :  { %v3906_v7 = vpop.f32.mrb[2].mxu0 }
 0x1d1   :  { %v3907_v8 = vpop.f32.mrb[3].mxu0 }
 0x1d2   :  { %v3908_v9 = vadd.f32 %v3907_v8, %v3906_v7  ;;  %v396_v8 = vld [vmem:[%s6980_s3 + $0x20] sm:$0xff] }
 0x1d4   :  { %v325_v10 = vsel %vm324_vm1, %v3908_v9, -inf }
 0x1d5   :  { %326 = vmax.xlane.f32.xlu0 %v325_v10 }
 0x262   :  { %v327_v11 = vpop.xlane.xlu0 %326 }
 0x263   :  { %v328_v12 = vsub.f32 %v3908_v9, %v327_v11 }
 0x265   :  { %v329_v13 = vmul.f32 1.442695, %v328_v12 }
 0x267   :  { %5089 = vpow2.f32 %v329_v13 }
 0x271   :  { %v5090_v14 = vpop.eup %5089 }
 0x272   :  { %v331_v15 = vsel %vm324_vm1, %v5090_v14, 0.0 }
 0x273   :  { %332 = vadd.xlane.f32.xlu0 %v331_v15 }
 0x300   :  { %v333_v16 = vpop.xlane.xlu0 %332 }
 0x301   :  { %5091 = vrcp.f32 %v333_v16  ;;  %v397_v16 = vld [vmem:[%s6980_s3 + $0x28] sm:$0xff] }
 0x30b   :  { %v5092_v22 = vpop.eup %5091 }
 0x30c   :  { %v335_v23 = vmul.f32 %v5092_v22, %v5090_v14 }
 0x30e   :  { %v353_v24 = vrot.slane %v335_v23, %v5430_v19  ;;  %v339_v25 = vrot.slane %v335_v23, %v5432_v21  ;;  %v346_v27 = vrot.slane %v335_v23, %v5436_v26  ;;  %v360_v29 = vrot.slane %v335_v23, %v5439_v28 }
 0x30f   :  { %v367_v31 = vrot.slane %v335_v23, %v5442_v30  ;;  %v374_v33 = vrot.slane %v335_v23, %v5445_v32  ;;  %v381_v35 = vrot.slane %v335_v23, %v5448_v34  ;;  %v388_v37 = vrot.slane %v335_v23, %v5451_v36 }
 0x310   :  { %355 = vbcast.lane.b32.xlu0 %v353_v24, 256  ;;  %341 = vbcast.lane.b32.xlu1 %v339_v25, 256 }
 0x314   :  { %348 = vbcast.lane.b32.xlu1 %v346_v27, 256 }
 0x318   :  { %362 = vbcast.lane.b32.xlu1 %v360_v29, 256 }
 0x31c   :  { %369 = vbcast.lane.b32.xlu1 %v367_v31, 256 }
 0x320   :  { %376 = vbcast.lane.b32.xlu1 %v374_v33, 256 }
 0x324   :  { %383 = vbcast.lane.b32.xlu1 %v381_v35, 256  ;;  %v398_v35 = vld [vmem:[%s6980_s3 + $0x30] sm:$0xff] }
 0x328   :  { %390 = vbcast.lane.b32.xlu1 %v388_v37, 256 }
 0x382   :  { %v342_v55 = vpop.permute.xlu1 %341  ;;  %v356_v58 = vpop.permute.xlu0 %355 }
 0x383   :  { %v400_v59 = vmul.f32 %v392_v54, %v342_v55  ;;  %v402_v62 = vmul.f32 %v394_v57, %v356_v58 }
 0x385   :  { %v408_v0 = vsel %vm63_vm0, %v400_v59, 0.0  ;;  %v422_v5 = vsel %vm63_vm0, %v402_v62, 0.0 }
 0x386   :  { %v349_v60 = vpop.permute.xlu1 %348  ;;  %v409_v7 = vrot.slane %v408_v0, 4  ;;  %v423_v13 = vrot.slane %v422_v5, 4 }
 0x387   :  { %v401_v61 = vmul.f32 %v393_v56, %v349_v60 }
 0x388   :  { %v410_v15 = vadd.f32 %v409_v7, %v408_v0  ;;  %v424_v27 = vadd.f32 %v423_v13, %v422_v5 }
 0x389   :  { %v415_v1 = vsel %vm63_vm0, %v401_v61, 0.0 }
 0x38a   :  { %v416_v2 = vrot.slane %v415_v1, 4  ;;  %v363_v3 = vpop.permute.xlu1 %362  ;;  %v411_v31 = vrot.slane %v410_v15, 2  ;;  %v425_v43 = vrot.slane %v424_v27, 2 }
 0x38b   :  { %v403_v4 = vmul.f32 %v395_v63, %v363_v3 }
 0x38c   :  { %v417_v10 = vadd.f32 %v416_v2, %v415_v1  ;;  %v412_v46 = vadd.f32 %v411_v31, %v410_v15  ;;  %v426_v55 = vadd.f32 %v425_v43, %v424_v27 }
 0x38d   :  { %v429_v9 = vsel %vm63_vm0, %v403_v4, 0.0 }
 0x38e   :  { %v430_v11 = vrot.slane %v429_v9, 4  ;;  %v370_v12 = vpop.permute.xlu1 %369  ;;  %v418_v22 = vrot.slane %v417_v10, 2  ;;  %v413_v58 = vrot.slane %v412_v46, 1  ;;  %v427_v2 = vrot.slane %v426_v55, 1 }
 0x38f   :  { %v404_v14 = vmul.f32 %v396_v8, %v370_v12 }
 0x390   :  { %v431_v23 = vadd.f32 %v430_v11, %v429_v9  ;;  %v419_v38 = vadd.f32 %v418_v22, %v417_v10  ;;  %v414_v4 = vadd.f32 %v413_v58, %v412_v46  ;;  %v428_v13 = vadd.f32 %v427_v2, %v426_v55  ;;  %v622_v58 = vld [vmem:[%s6986_s9 + $0x8] sm:$0xff]  ;;  %v627_v2 = vld [vmem:[%s6986_s9 + $0x30] sm:$0xff] }
 0x391   :  { %v436_v18 = vsel %vm63_vm0, %v404_v14, 0.0 }
 0x392   :  { %v437_v24 = vrot.slane %v436_v18, 4  ;;  %v377_v25 = vpop.permute.xlu1 %376  ;;  %v432_v39 = vrot.slane %v431_v23, 2  ;;  %v420_v50 = vrot.slane %v419_v38, 1 }
 0x393   :  { %v405_v29 = vmul.f32 %v397_v16, %v377_v25 }
 0x394   :  { %v438_v33 = vadd.f32 %v437_v24, %v436_v18  ;;  %v433_v51 = vadd.f32 %v432_v39, %v431_v23  ;;  %v421_v62 = vadd.f32 %v420_v50, %v419_v38 }
 0x395   :  { %v443_v37 = vsel %vm63_vm0, %v405_v29, 0.0 }
 0x396   :  { %v444_v40 = vrot.slane %v443_v37, 4  ;;  %v384_v42 = vpop.permute.xlu1 %383  ;;  %v439_v44 = vrot.slane %v438_v33, 2  ;;  %v434_v63 = vrot.slane %v433_v51, 1  ;;  %v473_v9 = vsel %vm472_vm3, %v421_v62, %v414_v4 }
 0x397   :  { %v406_v45 = vmul.f32 %v398_v35, %v384_v42  ;;  %v475_v22 = vsel %vm474_vm4, %v428_v13, %v473_v9  ;;  %v3807_v35 = vld [vmem:[%s6983_s6] ss:$0 sm:$0xff] }
 0x398   :  { %v445_v47 = vadd.f32 %v444_v40, %v443_v37  ;;  %v440_v56 = vadd.f32 %v439_v44, %v438_v33  ;;  %v435_v10 = vadd.f32 %v434_v63, %v433_v51  ;;  %v204_v37 = vpop.f32.mrb[0].mxu1  ;;  %v50_v40 = vld [vmem:[%s6978_s1] sm:$0xff] }
 0x399   :  { %v450_v49 = vsel %vm63_vm0, %v406_v45, 0.0  ;;  %v215_v38 = vadd.f32 %v3807_v35, %v204_v37  ;;  %v4237_v39 = vpop.f32.mrb[1].mxu1  ;;  %v3808_v44 = vld [vmem:[%s6985_s8] ss:$0 sm:$0xff] }
 0x39a   :  { %v446_v52 = vrot.slane %v445_v47, 2  ;;  %v451_v53 = vrot.slane %v450_v49, 4  ;;  %v391_v54 = vpop.permute.xlu1 %390  ;;  %v441_v3 = vrot.slane %v440_v56, 1  ;;  %v477_v24 = vsel %vm476_vm5, %v435_v10, %v475_v22  ;;  %v625_v63 = vld [vmem:[%s6986_s9 + $0x20] sm:$0xff] }
 0x39b   :  { %v407_v57 = vmul.f32 %v399_v48, %v391_v54  ;;  %586 = vrot.lane.b32.xlu0 %v215_v38, %s5198_s24 }
 0x39c   :  { %v447_v59 = vadd.f32 %v446_v52, %v445_v47  ;;  %v452_v60 = vadd.f32 %v451_v53, %v450_v49  ;;  %v442_v14 = vadd.f32 %v441_v3, %v440_v56  ;;  %v628_v3 = vld [vmem:[%s6986_s9 + $0x38] sm:$0xff] }
 0x39d   :  { %v457_v61 = vsel %vm63_vm0, %v407_v57, 0.0  ;;  %v621_v57 = vld [vmem:[%s6986_s9] sm:$0xff]  ;;  %v4677_v4 = vpack.c.bf16 %v628_v3, %v627_v2 }
 0x39e   :  { %v453_v0 = vrot.slane %v452_v60, 2  ;;  %v458_v1 = vrot.slane %v457_v61, 4  ;;  %v448_v5 = vrot.slane %v447_v59, 1  ;;  %v479_v25 = vsel %vm478_vm6, %v442_v14, %v477_v24  ;;  %v3811_v24 = vld [vmem:[%s6987_s10] ss:$0 sm:$0xff] }
 0x3a0   :  { %v454_v7 = vadd.f32 %v453_v0, %v452_v60  ;;  %v459_v8 = vadd.f32 %v458_v1, %v457_v61  ;;  %v449_v15 = vadd.f32 %v448_v5, %v447_v59  ;;  %v623_v59 = vld [vmem:[%s6986_s9 + $0x10] sm:$0xff]  ;;  %v4668_v60 = vpack.c.bf16 %v622_v58, %v621_v57  ;;  %v626_v0 = vld [vmem:[%s6986_s9 + $0x28] sm:$0xff]  ;;  %v629_v5 = vld [vmem:[%s6986_s9 + $0x40] sm:$0xff] }
 0x3a1   :  { %v4674_v1 = vpack.c.bf16 %v626_v0, %v625_v63 }
 0x3a2   :  { %v455_v11 = vrot.slane %v454_v7, 1  ;;  %v460_v12 = vrot.slane %v459_v8, 2  ;;  %v481_v29 = vsel %vm480_vm7, %v449_v15, %v479_v25 }
 0x3a4   :  { %v461_v16 = vadd.f32 %v460_v12, %v459_v8  ;;  %v456_v18 = vadd.f32 %v455_v11, %v454_v7  ;;  %v630_v7 = vld [vmem:[%s6986_s9 + $0x48] sm:$0xff] }
 0x3a5   :  { %v4680_v8 = vpack.c.bf16 %v630_v7, %v629_v5 }
 0x3a6   :  { %v462_v23 = vrot.slane %v461_v16, 1  ;;  %v483_v31 = vsel %vm482_vm8, %v456_v18, %v481_v29 }
 0x3a8   :  { %v463_v27 = vadd.f32 %v462_v23, %v461_v16 }
 0x3aa   :  { %v485_v33 = vsel %vm484_vm9, %v463_v27, %v483_v31  ;;  %v3815_v31 = vld [vmem:[%s6978_s1 + $0x8] sm:$0xff] (!%p3814_p5) }
 0x3ab   :  { %486 = vrot.lane.b32.xlu1 %v485_v33, %s5197_s21  ;;  %720 = vst.msk [vmem:[#allocation2] sm:$0xff] (!%p3814_p5), %vm489_vm10, %v3815_v31 }
 0x40d   :  { %v587_v52 = vpop.permute.xlu0 %586 }
 0x41d   :  { %v487_v42 = vpop.permute.xlu1 %486 }
 0x41e   :  { %v490_v43 = vsel %vm489_vm10, %v50_v40, %v487_v42 }
 0x41f   :  { %4251 = vmatmul.mubr.msk.f32.vlgmr.msra.gmra.mrb[2].mxu1 %vm504_vm11, %v490_v43 }
 0x420   :  { %4273 = vmatprep.mubr.msk.f32.mxu1 %vm5196_vm2, %v5194_v6  ;;  %4669 = vmatpush3.bf16.msra.mxu1 %v4668_v60 }
 0x421   :  { %4670 = vmatprep.subr.bf16.mxu1 %v5195_v41 }
 0x4f2   :  { %v574_v45 = vpop.f32.mrb[2].mxu1 }
 0x4f3   :  { %v575_v46 = vadd.f32 %v3808_v44, %v574_v45  ;;  %v4252_v47 = vpop.f32.mrb[3].mxu1 }
 0x4f5   :  { %v578_v48 = vadd.f32 %v575_v46, %v215_v38 }
 0x4f7   :  { %v3810_v49 = vmul.f32 -1.442695, %v578_v48 }
 0x4f9   :  { %5093 = vpow2.f32 %v3810_v49 }
 0x503   :  { %v5094_v50 = vpop.eup %5093 }
 0x504   :  { %v582_v51 = vadd.f32 1.0, %v5094_v50 }
 0x506   :  { %5095 = vrcp.f32 %v582_v51 }
 0x510   :  { %v5096_v53 = vpop.eup %5095 }
 0x511   :  { %v589_v54 = vmul.f32 %v5096_v53, %v587_v52  ;;  %v596_v10 = vsub.f32 1.0, %v5096_v53 }
 0x513   :  { %591 = vrot.lane.b32.xlu1 %v589_v54, %s5198_s24 }
 0x517   :  { %602 = vrot.lane.b32.xlu1 %v5339_v20, %s5199_s29  ;;  %v624_v20 = vld [vmem:[%s6986_s9 + $0x18] sm:$0xff] }
 0x518   :  { %v4671_v61 = vpack.c.bf16 %v624_v20, %v623_v59 }
 0x51a   :  { %4672 = vmatpush3.bf16.msra.mxu1 %v4671_v61 }
 0x51b   :  { %611 = vrot.lane.b32.xlu1 %v485_v33, %s5199_s29  ;;  %4673 = vmatprep.subr.bf16.mxu1 %v5195_v41 }
 0x51e   :  { %4675 = vmatpush3.bf16.msra.mxu1 %v4674_v1 }
 0x51f   :  { %4676 = vmatprep.subr.bf16.mxu1 %v5195_v41 }
 0x522   :  { %4678 = vmatpush3.bf16.msra.mxu1 %v4677_v4 }
 0x523   :  { %4679 = vmatprep.subr.bf16.mxu1 %v5195_v41 }
 0x526   :  { %4681 = vmatpush3.bf16.msra.mxu1 %v4680_v8 }
 0x585   :  { %v592_v55 = vpop.permute.xlu1 %591 }
 0x586   :  { %v594_v56 = vadd.f32 %v592_v55, %v575_v46 }
 0x588   :  { %5097 = vtanh.f32 %v594_v56 }
 0x589   :  { %v603_v9 = vpop.permute.xlu1 %602 }
 0x58a   :  { %v605_v12 = vmul.f32 %v5096_v53, %v603_v9 }
 0x58d   :  { %v612_v16 = vpop.permute.xlu1 %611 }
 0x592   :  { %v5098_v62 = vpop.eup %5097 }
 0x593   :  { %598 = vrot.lane.b32.xlu0 %v5098_v62, %s5200_s25 }
 0x605   :  { %v599_v11 = vpop.permute.xlu0 %598 }
 0x606   :  { %v601_v13 = vmul.f32 %v599_v11, %v596_v10 }
 0x608   :  { %v5589_v14 = vadd.f32 %v605_v12, %v601_v13 }
 0x60a   :  { %608 = vrot.lane.b32.xlu0 %v5589_v14, %s5200_s25 }
 0x60e   :  { %615 = vrot.lane.b32.xlu0 %v50_v40, %s5198_s24 }
 0x67c   :  { %v5594_v15 = vpop.permute.xlu0 %608 }
 0x67d   :  { %v618_v18 = vsel %vm63_vm0, %v5594_v15, %v612_v16 }
 0x680   :  { %v616_v22 = vpop.permute.xlu0 %615 }
 0x681   :  { %v620_v23 = vsel %vm619_vm12, %v618_v18, %v616_v22 }
 0x682   :  { %4274 = vmatmul.mubr.msk.f32.vlgmr.msra.gmra.mrb[4].mxu1 %vm638_vm13, %v620_v23 }
 0x752   :  { %717 = sbr.rel (%p3814_p5) target bundleno = 1881 (0x759), region = 53 }
 0x755   :  { %v708_v25 = vpop.f32.mrb[4].mxu1 }
 0x756   :  { %v709_v27 = vadd.f32 %v3811_v24, %v708_v25  ;;  %v4275_v29 = vpop.f32.mrb[5].mxu1 }
 0x758   :  { %712 = vst [vmem:[#allocation5] sm:$0xff] %v709_v27 }
 0x759 PF:  { %p3816_p6 = scmp.gt.s32.totalorder %s3813_s16, 0 }
 0x75a   :  { %727 = vmax.xlane.f32.xlu0 (!%p3816_p6), %v709_v27  ;;  %v5608_v33 = vand.u32 (!%p3816_p6), 127, %v336_v17  ;;  %v748_v40 = vld [vmem:[%s6988_s11] sm:$0xff] (!%p3816_p6)  ;;  %v749_v42 = vld [vmem:[%s6988_s11 + $0x8] sm:$0xff] (!%p3816_p6)  ;;  %v750_v43 = vld [vmem:[%s6988_s11 + $0x10] sm:$0xff] (!%p3816_p6)  ;;  %v5201_v44 = vmov (!%p3816_p6), 0.0|0.0   ;;  %v5203_v5 = vmov (!%p3816_p6), 0.0  }
 0x75b   :  { %724 = sbr.rel (%p3816_p6) target bundleno = 2534 (0x9e6), region = 57  ;;  %4682 = vmatprep.subr.bf16.mxu0 (!%p3816_p6), %v5201_v44  ;;  %v4683_v45 = vpack.c.bf16 (!%p3816_p6), %v749_v42, %v748_v40  ;;  %v751_v46 = vld [vmem:[%s6988_s11 + $0x18] sm:$0xff] (!%p3816_p6)  ;;  %v752_v48 = vld [vmem:[%s6988_s11 + $0x20] sm:$0xff] (!%p3816_p6)  ;;  %v753_v49 = vld [vmem:[%s6988_s11 + $0x28] sm:$0xff] (!%p3816_p6)  ;;  %v5204_v12 = vmov (!%p3816_p6), 1.0  }
 0x75c   :  { %v4686_v47 = vpack.c.bf16 (!%p3816_p6), %v751_v46, %v750_v43  ;;  %v4689_v50 = vpack.c.bf16 (!%p3816_p6), %v753_v49, %v752_v48  ;;  %v754_v51 = vld [vmem:[%s6988_s11 + $0x30] sm:$0xff] (!%p3816_p6)  ;;  %v755_v52 = vld [vmem:[%s6988_s11 + $0x38] sm:$0xff] (!%p3816_p6)  ;;  %v756_v54 = vld [vmem:[%s6988_s11 + $0x40] sm:$0xff] (!%p3816_p6) }
 0x75d   :  { %4684 = vmatpush3.bf16.msra.mxu0 (!%p3816_p6), %v4683_v45  ;;  %v4692_v53 = vpack.c.bf16 (!%p3816_p6), %v755_v52, %v754_v51  ;;  %v757_v55 = vld [vmem:[%s6988_s11 + $0x48] sm:$0xff] (!%p3816_p6)  ;;  %v758_v57 = vld [vmem:[%s6988_s11 + $0x50] sm:$0xff] (!%p3816_p6)  ;;  %v759_v58 = vld [vmem:[%s6988_s11 + $0x58] sm:$0xff] (!%p3816_p6) }
 0x75e   :  { %4685 = vmatprep.subr.bf16.mxu0 (!%p3816_p6), %v5201_v44  ;;  %v4695_v56 = vpack.c.bf16 (!%p3816_p6), %v757_v55, %v756_v54  ;;  %v4698_v59 = vpack.c.bf16 (!%p3816_p6), %v759_v58, %v758_v57  ;;  %v760_v60 = vld [vmem:[%s6988_s11 + $0x60] sm:$0xff] (!%p3816_p6)  ;;  %v761_v20 = vld [vmem:[%s6988_s11 + $0x68] sm:$0xff] (!%p3816_p6)  ;;  %v762_v2 = vld [vmem:[%s6988_s11 + $0x70] sm:$0xff] (!%p3816_p6) }
 0x75f   :  { %v4701_v61 = vpack.c.bf16 (!%p3816_p6), %v761_v20, %v760_v60  ;;  %v763_v3 = vld [vmem:[%s6988_s11 + $0x78] sm:$0xff] (!%p3816_p6) }
 0x760   :  { %v4704_v4 = vpack.c.bf16 (!%p3816_p6), %v763_v3, %v762_v2 }
 0x761   :  { %4687 = vmatpush3.bf16.msra.mxu0 (!%p3816_p6), %v4686_v47 }
 0x762   :  { %4688 = vmatprep.subr.bf16.mxu0 %v5201_v44 }
 0x765   :  { %4690 = vmatpush3.bf16.msra.mxu0 %v4689_v50 }
 0x766   :  { %4691 = vmatprep.subr.bf16.mxu0 %v5201_v44 }
 0x769   :  { %4693 = vmatpush3.bf16.msra.mxu0 %v4692_v53 }
 0x76a   :  { %4694 = vmatprep.subr.bf16.mxu0 %v5201_v44 }
 0x76d   :  { %4696 = vmatpush3.bf16.msra.mxu0 %v4695_v56 }
 0x76e   :  { %4697 = vmatprep.subr.bf16.mxu0 %v5201_v44 }
 0x771   :  { %4699 = vmatpush3.bf16.msra.mxu0 %v4698_v59 }
 0x772   :  { %4700 = vmatprep.subr.bf16.mxu0 %v5201_v44 }
 0x775   :  { %4702 = vmatpush3.bf16.msra.mxu0 %v4701_v61 }
 0x776   :  { %4703 = vmatprep.subr.bf16.mxu0 %v5201_v44 }
 0x779   :  { %4705 = vmatpush3.bf16.msra.mxu0 %v4704_v4 }
 0x7e7   :  { %v728_v35 = vpop.xlane.xlu0 %727 }
 0x7e8   :  { %vm729_vm14 = vcmp.ge.f32.partialorder %v709_v27, %v728_v35 }
 0x7e9   :  { %v730_v37 = vsel %vm729_vm14, %v5608_v33, 128  ;;  %vm5202_vm14 = vmmov 0  }
 0x7ea   :  { %v732_v38 = vshra.s32 %v730_v37, 16  ;;  %v731_v62 = vand.u32 65535, %v730_v37  ;;  %4308 = vmatprep.mubr.msk.f32.mxu0 %vm5202_vm14, %v5203_v5 }
 0x7ec   :  { %v734_v39 = vcvt.s32.f32 %v732_v38  ;;  %v733_v0 = vcvt.s32.f32 %v731_v62 }
 0x7ee   :  { %735 = vmin.xlane.f32.xlu0 %v734_v39 }
 0x87b   :  { %v736_v63 = vpop.xlane.xlu0 %735 }
 0x87c   :  { %vm737_vm15 = vcmp.eq.f32.partialorder %v734_v39, %v736_v63  ;;  %v742_v7 = vcvt.f32.s32 %v736_v63 }
 0x87d   :  { %v738_v1 = vsel %vm737_vm15, %v733_v0, inf }
 0x87e   :  { %739 = vmin.xlane.f32.xlu1 %v738_v1  ;;  %v743_v9 = vshll.u32 %v742_v7, 16 }
 0x90b   :  { %v740_v8 = vpop.xlane.xlu1 %739 }
 0x90c   :  { %v741_v10 = vcvt.f32.s32 %v740_v8 }
 0x90e   :  { %v744_v11 = vadd.s32 %v743_v9, %v741_v10 }
 0x910   :  { %vm745_vm15 = vcmp.eq.s32.totalorder %v5608_v33, %v744_v11 }
 0x911   :  { %4309 = vmatmul.mubr.msk.f32.vlgmr.msra.gmra.mrb[0].mxu0 %vm745_vm15, %v5204_v12 }
 0x9e4   :  { %v830_v13 = vpop.f32.mrb[0].mxu0 }
 0x9e5   :  { %834 = vst.msk [vmem:[#allocation2] sm:$0xff] %vm489_vm10, %v830_v13  ;;  %v4310_v16 = vpop.f32.mrb[1].mxu0 }
 0x9e6 PF:  { %v837_v18 = vld [vmem:[%s6982_s5 + $0x8] sm:$0xff]  ;;  %v840_v22 = vld [vmem:[%s6982_s5 + $0x20] sm:$0xff]  ;;  %914 = vmatprep.mubr.f32.mxu0 %v5194_v6  ;;  %4714 = vmatprep.subr.bf16.mxu1 %v5195_v41  ;;  %v839_v25 = vld [vmem:[%s6982_s5 + $0x18] sm:$0xff]  ;;  %s3827_s17 = sld [smem:[#allocation4 + $0x2]] }
 0x9e7   :  { %v836_v23 = vld [vmem:[%s6982_s5] sm:$0xff]  ;;  %v4706_v24 = vpack.c.bf16 %v840_v22, %v837_v18  ;;  %v843_v27 = vld [vmem:[%s6982_s5 + $0x38] sm:$0xff]  ;;  %v846_v29 = vld [vmem:[%s6982_s5 + $0x50] sm:$0xff]  ;;  %4319 = vmatprep.mubr.msk.f32.mxu1 %vm5196_vm2, %v5194_v6 }
 0x9e8   :  { %v4708_v31 = vpack.c.bf16 %v839_v25, %v836_v23  ;;  %v4710_v33 = vpack.c.bf16 %v846_v29, %v843_v27  ;;  %v842_v35 = vld [vmem:[%s6982_s5 + $0x30] sm:$0xff]  ;;  %v845_v37 = vld [vmem:[%s6982_s5 + $0x48] sm:$0xff]  ;;  %v1021_v38 = vld [vmem:[%s6989_s12 + $0x80] sm:$0xff] }
 0x9e9   :  { %4707 = vmatprep.subr.bf16.mxu0 %v4706_v24  ;;  %v1022_v39 = vld [vmem:[%s6989_s12 + $0x88] sm:$0xff]  ;;  %v4712_v40 = vpack.c.bf16 %v845_v37, %v842_v35  ;;  %v1005_v43 = vld [vmem:[%s6989_s12] sm:$0xff]  ;;  %v1023_v45 = vld [vmem:[%s6989_s12 + $0x90] sm:$0xff] }
 0x9ea   :  { %4709 = vmatpush1.bf16.msra.mxu0 %v4708_v31  ;;  %v4720_v42 = vpack.c.bf16 %v1022_v39, %v1021_v38  ;;  %v1006_v44 = vld [vmem:[%s6989_s12 + $0x8] sm:$0xff]  ;;  %v1024_v46 = vld [vmem:[%s6989_s12 + $0x98] sm:$0xff]  ;;  %v1007_v49 = vld [vmem:[%s6989_s12 + $0x10] sm:$0xff] }
 0x9eb   :  { %4711 = vmatprep.subr.bf16.mxu0 %v4710_v33  ;;  %v4722_v47 = vpack.c.bf16 %v1006_v44, %v1005_v43  ;;  %v4724_v48 = vpack.c.bf16 %v1024_v46, %v1023_v45  ;;  %v1008_v50 = vld [vmem:[%s6989_s12 + $0x18] sm:$0xff]  ;;  %v1025_v51 = vld [vmem:[%s6989_s12 + $0xa0] sm:$0xff]  ;;  %v1026_v52 = vld [vmem:[%s6989_s12 + $0xa8] sm:$0xff] }
 0x9ec   :  { %v4726_v53 = vpack.c.bf16 %v1008_v50, %v1007_v49  ;;  %v4728_v54 = vpack.c.bf16 %v1026_v52, %v1025_v51  ;;  %v1009_v55 = vld [vmem:[%s6989_s12 + $0x20] sm:$0xff]  ;;  %v1010_v56 = vld [vmem:[%s6989_s12 + $0x28] sm:$0xff]  ;;  %v1027_v57 = vld [vmem:[%s6989_s12 + $0xb0] sm:$0xff]  ;;  %p3828_p7 = scmp.le.s32.totalorder %s3827_s17, 0 }
 0x9ed   :  { %v1028_v58 = vld [vmem:[%s6989_s12 + $0xb8] sm:$0xff]  ;;  %v4730_v59 = vpack.c.bf16 %v1010_v56, %v1009_v55  ;;  %v1011_v20 = vld [vmem:[%s6989_s12 + $0x30] sm:$0xff]  ;;  %v1029_v63 = vld [vmem:[%s6989_s12 + $0xc0] sm:$0xff] }
 0x9ee   :  { %4713 = vmatpush1.bf16.msra.mxu0 %v4712_v40  ;;  %v4732_v60 = vpack.c.bf16 %v1028_v58, %v1027_v57  ;;  %v1012_v61 = vld [vmem:[%s6989_s12 + $0x38] sm:$0xff]  ;;  %v1030_v0 = vld [vmem:[%s6989_s12 + $0xc8] sm:$0xff]  ;;  %v1013_v2 = vld [vmem:[%s6989_s12 + $0x40] sm:$0xff] }
 0x9ef   :  { %4721 = vmatprep.subr.bf16.mxu0 %v4720_v42  ;;  %v4734_v62 = vpack.c.bf16 %v1012_v61, %v1011_v20  ;;  %v4736_v1 = vpack.c.bf16 %v1030_v0, %v1029_v63  ;;  %v1014_v3 = vld [vmem:[%s6989_s12 + $0x48] sm:$0xff]  ;;  %v1031_v5 = vld [vmem:[%s6989_s12 + $0xd0] sm:$0xff]  ;;  %v1032_v7 = vld [vmem:[%s6989_s12 + $0xd8] sm:$0xff] }
 0x9f0   :  { %v4738_v4 = vpack.c.bf16 %v1014_v3, %v1013_v2  ;;  %v4740_v8 = vpack.c.bf16 %v1032_v7, %v1031_v5  ;;  %v1015_v9 = vld [vmem:[%s6989_s12 + $0x50] sm:$0xff]  ;;  %v1016_v10 = vld [vmem:[%s6989_s12 + $0x58] sm:$0xff]  ;;  %v1033_v12 = vld [vmem:[%s6989_s12 + $0xe0] sm:$0xff] }
 0x9f1   :  { %3819 = vmatmul.mubr.msk.f32.vlgmr.msra.gmra.mrb[0].mxu0 %vm63_vm0, %v5594_v15  ;;  %v4742_v11 = vpack.c.bf16 %v1016_v10, %v1015_v9  ;;  %v1034_v13 = vld [vmem:[%s6989_s12 + $0xe8] sm:$0xff]  ;;  %v1017_v16 = vld [vmem:[%s6989_s12 + $0x60] sm:$0xff]  ;;  %v1035_v23 = vld [vmem:[%s6989_s12 + $0xf0] sm:$0xff] }
 0x9f2   :  { %4723 = vmatpush3.bf16.msra.mxu0 %v4722_v47  ;;  %v4744_v18 = vpack.c.bf16 %v1034_v13, %v1033_v12  ;;  %v1018_v22 = vld [vmem:[%s6989_s12 + $0x68] sm:$0xff]  ;;  %v1036_v24 = vld [vmem:[%s6989_s12 + $0xf8] sm:$0xff]  ;;  %v1019_v29 = vld [vmem:[%s6989_s12 + $0x70] sm:$0xff] }
 0x9f3   :  { %4725 = vmatprep.subr.bf16.mxu0 %v4724_v48  ;;  %v4746_v25 = vpack.c.bf16 %v1018_v22, %v1017_v16  ;;  %v4748_v27 = vpack.c.bf16 %v1036_v24, %v1035_v23  ;;  %v1020_v31 = vld [vmem:[%s6989_s12 + $0x78] sm:$0xff]  ;;  %v999_v35 = vld [vmem:[%s6981_s4] sm:$0xff]  ;;  %v1000_v37 = vld [vmem:[%s6981_s4 + $0x8] sm:$0xff] }
 0x9f4   :  { %v4750_v33 = vpack.c.bf16 %v1020_v31, %v1019_v29  ;;  %v838_v0 = vld [vmem:[%s6982_s5 + $0x10] sm:$0xff]  ;;  %v844_v2 = vld [vmem:[%s6982_s5 + $0x40] sm:$0xff]  ;;  %v1270_v16 = vld [vmem:[%s6984_s7 + $0x28] sm:$0xff] }
 0x9f5   :  { %v1265_v7 = vld [vmem:[%s6984_s7] sm:$0xff]  ;;  %v1267_v10 = vld [vmem:[%s6984_s7 + $0x10] sm:$0xff]  ;;  %v1175_v23 = vld [vmem:[%s6980_s3 + $0x8] sm:$0xff] }
 0x9f6   :  { %4727 = vmatpush3.bf16.msra.mxu0 %v4726_v53  ;;  %v1269_v13 = vld [vmem:[%s6984_s7 + $0x20] sm:$0xff]  ;;  %v1176_v24 = vld [vmem:[%s6980_s3 + $0x10] sm:$0xff] }
 0x9f7   :  { %4729 = vmatprep.subr.bf16.mxu0 %v4728_v54 }
 0x9fa   :  { %4731 = vmatpush3.bf16.msra.mxu0 %v4730_v59 }
 0x9fb   :  { %4733 = vmatprep.subr.bf16.mxu0 %v4732_v60 }
 0x9fe   :  { %4735 = vmatpush3.bf16.msra.mxu0 %v4734_v62 }
 0x9ff   :  { %4737 = vmatprep.subr.bf16.mxu0 %v4736_v1  ;;  %v841_v1 = vld [vmem:[%s6982_s5 + $0x28] sm:$0xff] }
 0xa00   :  { %v4715_v3 = vpack.c.bf16 %v841_v1, %v838_v0 }
 0xa02   :  { %4739 = vmatpush3.bf16.msra.mxu0 %v4738_v4  ;;  %v847_v4 = vld [vmem:[%s6982_s5 + $0x58] sm:$0xff]  ;;  %4716 = vmatpush3.bf16.msra.mxu1 %v4715_v3 }
 0xa03   :  { %4741 = vmatprep.subr.bf16.mxu0 %v4740_v8  ;;  %v4718_v5 = vpack.c.bf16 %v847_v4, %v844_v2  ;;  %4717 = vmatprep.subr.bf16.mxu1 %v5195_v41  ;;  %v1266_v8 = vld [vmem:[%s6984_s7 + $0x8] sm:$0xff] }
 0xa04   :  { %v4753_v9 = vpack.c.bf16 %v1266_v8, %v1265_v7 }
 0xa06   :  { %4743 = vmatpush3.bf16.msra.mxu0 %v4742_v11  ;;  %4719 = vmatpush3.bf16.msra.mxu1 %v4718_v5  ;;  %v1268_v11 = vld [vmem:[%s6984_s7 + $0x18] sm:$0xff] }
 0xa07   :  { %4745 = vmatprep.subr.bf16.mxu0 %v4744_v18  ;;  %4752 = vmatprep.subr.bf16.mxu1 %v5195_v41  ;;  %v4756_v12 = vpack.c.bf16 %v1268_v11, %v1267_v10  ;;  %v4759_v18 = vpack.c.bf16 %v1270_v16, %v1269_v13  ;;  %v1181_v10 = vld [vmem:[%s6980_s3 + $0x38] sm:$0xff] }
 0xa09   :  { %4320 = vmatmul.mubr.msk.f32.vlgmr.msra.gmra.mrb[0].mxu1 %vm63_vm0, %v5594_v15  ;;  %v1174_v15 = vld [vmem:[%s6980_s3] sm:$0xff] }
 0xa0a   :  { %4747 = vmatpush3.bf16.msra.mxu0 %v4746_v25  ;;  %4754 = vmatpush3.bf16.msra.mxu1 %v4753_v9 }
 0xa0b   :  { %4749 = vmatprep.subr.bf16.mxu0 %v4748_v27  ;;  %4334 = vmatprep.mubr.msk.f32.mxu1 %vm5196_vm2, %v5194_v6 }
 0xa0c   :  { %4755 = vmatprep.subr.bf16.mxu1 %v5195_v41 }
 0xa0e   :  { %4751 = vmatpush3.bf16.msra.mxu0 %v4750_v33  ;;  %4757 = vmatpush3.bf16.msra.mxu1 %v4756_v12 }
 0xa0f   :  { %4758 = vmatprep.subr.bf16.mxu1 %v5195_v41 }
 0xa12   :  { %4760 = vmatpush3.bf16.msra.mxu1 %v4759_v18 }
 0xa13   :  { %4761 = vmatprep.subr.bf16.mxu1 %v5195_v41 }
 0xac4   :  { %v916_v38 = vpop.f32.mrb[0].mxu0 }
 0xac5   :  { %v1001_v39 = vadd.f32 %v999_v35, %v916_v38  ;;  %v918_v40 = vpop.f32.mrb[1].mxu0  ;;  %v1177_v35 = vld [vmem:[%s6980_s3 + $0x18] sm:$0xff] }
 0xac6   :  { %v1002_v42 = vadd.f32 %v1000_v37, %v918_v40 }
 0xac8   :  { %5099 = vtanh.f32 %v1002_v42 }
 0xac9   :  { %5101 = vtanh.f32 %v1001_v39 }
 0xad2   :  { %v5100_v43 = vpop.eup %5099 }
 0xad3   :  { %v5102_v44 = vpop.eup %5101  ;;  %1101 = vmatprep.mubr.f32.mxu0 %v5100_v43 }
 0xad4   :  { %1102 = vmatmul.mubr.f32.vlgmr.msra.gmra.mrb[2].mxu0 %v5102_v44 }
 0xba7   :  { %v3981_v45 = vpop.f32.mrb[2].mxu0 }
 0xba8   :  { %v3982_v46 = vpop.f32.mrb[3].mxu0 }
 0xba9   :  { %v3983_v47 = vadd.f32 %v3982_v46, %v3981_v45  ;;  %v1178_v45 = vld [vmem:[%s6980_s3 + $0x20] sm:$0xff] }
 0xbab   :  { %v1107_v48 = vsel %vm324_vm1, %v3983_v47, -inf }
 0xbac   :  { %1108 = vmax.xlane.f32.xlu0 %v1107_v48 }
 0xc39   :  { %v1109_v49 = vpop.xlane.xlu0 %1108 }
 0xc3a   :  { %v1110_v50 = vsub.f32 %v3983_v47, %v1109_v49 }
 0xc3c   :  { %v1111_v51 = vmul.f32 1.442695, %v1110_v50 }
 0xc3e   :  { %5103 = vpow2.f32 %v1111_v51 }
 0xc48   :  { %v5104_v52 = vpop.eup %5103 }
 0xc49   :  { %v1113_v53 = vsel %vm324_vm1, %v5104_v52, 0.0 }
 0xc4a   :  { %1114 = vadd.xlane.f32.xlu0 %v1113_v53  ;;  %v1179_v53 = vld [vmem:[%s6980_s3 + $0x28] sm:$0xff] }
 0xcd7   :  { %v1115_v54 = vpop.xlane.xlu0 %1114 }
 0xcd8   :  { %5105 = vrcp.f32 %v1115_v54 }
 0xce2   :  { %v5106_v55 = vpop.eup %5105 }
 0xce3   :  { %v1117_v56 = vmul.f32 %v5106_v55, %v5104_v52 }
 0xce5   :  { %v1135_v57 = vrot.slane %v1117_v56, %v5430_v19  ;;  %v1121_v58 = vrot.slane %v1117_v56, %v5432_v21  ;;  %v1128_v59 = vrot.slane %v1117_v56, %v5436_v26  ;;  %v1142_v60 = vrot.slane %v1117_v56, %v5439_v28 }
 0xce6   :  { %v1149_v20 = vrot.slane %v1117_v56, %v5442_v30  ;;  %v1156_v61 = vrot.slane %v1117_v56, %v5445_v32  ;;  %v1163_v62 = vrot.slane %v1117_v56, %v5448_v34  ;;  %v1170_v63 = vrot.slane %v1117_v56, %v5451_v36 }
 0xce7   :  { %1137 = vbcast.lane.b32.xlu0 %v1135_v57, 256  ;;  %1123 = vbcast.lane.b32.xlu1 %v1121_v58, 256 }
 0xceb   :  { %1130 = vbcast.lane.b32.xlu1 %v1128_v59, 256 }
 0xcef   :  { %1144 = vbcast.lane.b32.xlu1 %v1142_v60, 256 }
 0xcf3   :  { %1151 = vbcast.lane.b32.xlu1 %v1149_v20, 256 }
 0xcf7   :  { %1158 = vbcast.lane.b32.xlu1 %v1156_v61, 256 }
 0xcfb   :  { %1165 = vbcast.lane.b32.xlu1 %v1163_v62, 256  ;;  %v1180_v62 = vld [vmem:[%s6980_s3 + $0x30] sm:$0xff] }
 0xcff   :  { %1172 = vbcast.lane.b32.xlu1 %v1170_v63, 256 }
 0xd59   :  { %v1124_v22 = vpop.permute.xlu1 %1123  ;;  %v1138_v25 = vpop.permute.xlu0 %1137 }
 0xd5a   :  { %v1182_v27 = vmul.f32 %v1174_v15, %v1124_v22  ;;  %v1184_v33 = vmul.f32 %v1176_v24, %v1138_v25 }
 0xd5c   :  { %v1190_v37 = vsel %vm63_vm0, %v1182_v27, 0.0  ;;  %v1204_v43 = vsel %vm63_vm0, %v1184_v33, 0.0 }
 0xd5d   :  { %v1131_v29 = vpop.permute.xlu1 %1130  ;;  %v1191_v44 = vrot.slane %v1190_v37, 4  ;;  %v1205_v50 = vrot.slane %v1204_v43, 4 }
 0xd5e   :  { %v1183_v31 = vmul.f32 %v1175_v23, %v1131_v29 }
 0xd5f   :  { %v1192_v52 = vadd.f32 %v1191_v44, %v1190_v37  ;;  %v1206_v59 = vadd.f32 %v1205_v50, %v1204_v43 }
 0xd60   :  { %v1197_v38 = vsel %vm63_vm0, %v1183_v31, 0.0 }
 0xd61   :  { %v1198_v39 = vrot.slane %v1197_v38, 4  ;;  %v1145_v40 = vpop.permute.xlu1 %1144  ;;  %v1193_v20 = vrot.slane %v1192_v52, 2  ;;  %v1207_v4 = vrot.slane %v1206_v59, 2 }
 0xd62   :  { %v1185_v42 = vmul.f32 %v1177_v35, %v1145_v40 }
 0xd63   :  { %v1199_v47 = vadd.f32 %v1198_v39, %v1197_v38  ;;  %v1194_v8 = vadd.f32 %v1193_v20, %v1192_v52  ;;  %v1208_v22 = vadd.f32 %v1207_v4, %v1206_v59 }
 0xd64   :  { %v1211_v46 = vsel %vm63_vm0, %v1185_v42, 0.0 }
 0xd65   :  { %v1212_v48 = vrot.slane %v1211_v46, 4  ;;  %v1152_v49 = vpop.permute.xlu1 %1151  ;;  %v1200_v55 = vrot.slane %v1199_v47, 2  ;;  %v1195_v25 = vrot.slane %v1194_v8, 1  ;;  %v1209_v39 = vrot.slane %v1208_v22, 1 }
 0xd66   :  { %v1186_v51 = vmul.f32 %v1178_v45, %v1152_v49 }
 0xd67   :  { %v1213_v56 = vadd.f32 %v1212_v48, %v1211_v46  ;;  %v1201_v0 = vadd.f32 %v1200_v55, %v1199_v47  ;;  %v1196_v42 = vadd.f32 %v1195_v25, %v1194_v8  ;;  %v1210_v50 = vadd.f32 %v1209_v39, %v1208_v22  ;;  %v1391_v25 = vld [vmem:[%s6986_s9 + $0x8] sm:$0xff] }
 0xd68   :  { %v1218_v54 = vsel %vm63_vm0, %v1186_v51, 0.0 }
 0xd69   :  { %v1219_v57 = vrot.slane %v1218_v54, 4  ;;  %v1159_v58 = vpop.permute.xlu1 %1158  ;;  %v1214_v1 = vrot.slane %v1213_v56, 2  ;;  %v1202_v12 = vrot.slane %v1201_v0, 1 }
 0xd6a   :  { %v1187_v60 = vmul.f32 %v1179_v53, %v1159_v58 }
 0xd6b   :  { %v1220_v61 = vadd.f32 %v1219_v57, %v1218_v54  ;;  %v1215_v13 = vadd.f32 %v1214_v1, %v1213_v56  ;;  %v1203_v33 = vadd.f32 %v1202_v12, %v1201_v0 }
 0xd6c   :  { %v1225_v63 = vsel %vm63_vm0, %v1187_v60, 0.0 }
 0xd6d   :  { %v1226_v2 = vrot.slane %v1225_v63, 4  ;;  %v1166_v3 = vpop.permute.xlu1 %1165  ;;  %v1221_v5 = vrot.slane %v1220_v61, 2  ;;  %v1216_v35 = vrot.slane %v1215_v13, 1  ;;  %v1254_v49 = vsel %vm472_vm3, %v1203_v33, %v1196_v42  ;;  %v1397_v42 = vld [vmem:[%s6986_s9 + $0x38] sm:$0xff] }
 0xd6e   :  { %v1188_v7 = vmul.f32 %v1180_v62, %v1166_v3  ;;  %v1255_v55 = vsel %vm474_vm4, %v1210_v50, %v1254_v49  ;;  %v3821_v62 = vld [vmem:[%s6983_s6] ss:$0 sm:$0xff] }
 0xd6f   :  { %v1227_v9 = vadd.f32 %v1226_v2, %v1225_v63  ;;  %v1222_v23 = vadd.f32 %v1221_v5, %v1220_v61  ;;  %v1217_v46 = vadd.f32 %v1216_v35, %v1215_v13  ;;  %v987_v63 = vpop.f32.mrb[0].mxu1  ;;  %v835_v2 = vld [vmem:[#allocation2] sm:$0xff] }
 0xd70   :  { %v1232_v11 = vsel %vm63_vm0, %v1188_v7, 0.0  ;;  %v998_v0 = vadd.f32 %v3821_v62, %v987_v63  ;;  %v4321_v1 = vpop.f32.mrb[1].mxu1  ;;  %v3822_v5 = vld [vmem:[%s6985_s8] ss:$0 sm:$0xff] }
 0xd71   :  { %v1228_v16 = vrot.slane %v1227_v9, 2  ;;  %v1233_v18 = vrot.slane %v1232_v11, 4  ;;  %v1173_v15 = vpop.permute.xlu1 %1172  ;;  %v1223_v40 = vrot.slane %v1222_v23, 1  ;;  %v1256_v57 = vsel %vm476_vm5, %v1217_v46, %v1255_v55 }
 0xd72   :  { %v1189_v24 = vmul.f32 %v1181_v10, %v1173_v15  ;;  %1359 = vrot.lane.b32.xlu0 %v998_v0, %s5198_s24 }
 0xd73   :  { %v1229_v27 = vadd.f32 %v1228_v16, %v1227_v9  ;;  %v1234_v29 = vadd.f32 %v1233_v18, %v1232_v11  ;;  %v1224_v51 = vadd.f32 %v1223_v40, %v1222_v23  ;;  %v1396_v40 = vld [vmem:[%s6986_s9 + $0x30] sm:$0xff] }
 0xd74   :  { %v1239_v31 = vsel %vm63_vm0, %v1189_v24, 0.0  ;;  %v1390_v24 = vld [vmem:[%s6986_s9] sm:$0xff] }
 0xd75   :  { %v1235_v37 = vrot.slane %v1234_v29, 2  ;;  %v1240_v38 = vrot.slane %v1239_v31, 4  ;;  %v1230_v43 = vrot.slane %v1229_v27, 1  ;;  %v1257_v58 = vsel %vm478_vm6, %v1224_v51, %v1256_v57 }
 0xd77   :  { %v1236_v44 = vadd.f32 %v1235_v37, %v1234_v29  ;;  %v1241_v45 = vadd.f32 %v1240_v38, %v1239_v31  ;;  %v1231_v53 = vadd.f32 %v1230_v43, %v1229_v27  ;;  %v1392_v27 = vld [vmem:[%s6986_s9 + $0x10] sm:$0xff]  ;;  %v4762_v29 = vpack.c.bf16 %v1391_v25, %v1390_v24  ;;  %v1393_v31 = vld [vmem:[%s6986_s9 + $0x18] sm:$0xff]  ;;  %v1394_v37 = vld [vmem:[%s6986_s9 + $0x20] sm:$0xff] }
 0xd78   :  { %v4765_v33 = vpack.c.bf16 %v1393_v31, %v1392_v27  ;;  %v1395_v38 = vld [vmem:[%s6986_s9 + $0x28] sm:$0xff]  ;;  %v4771_v43 = vpack.c.bf16 %v1397_v42, %v1396_v40 }
 0xd79   :  { %v1242_v47 = vrot.slane %v1241_v45, 2  ;;  %v1237_v48 = vrot.slane %v1236_v44, 1  ;;  %v1258_v60 = vsel %vm480_vm7, %v1231_v53, %v1257_v58  ;;  %v4768_v39 = vpack.c.bf16 %v1395_v38, %v1394_v37 }
 0xd7b   :  { %v1243_v52 = vadd.f32 %v1242_v47, %v1241_v45  ;;  %v1238_v54 = vadd.f32 %v1237_v48, %v1236_v44  ;;  %v1398_v44 = vld [vmem:[%s6986_s9 + $0x40] sm:$0xff]  ;;  %v1399_v45 = vld [vmem:[%s6986_s9 + $0x48] sm:$0xff] }
 0xd7c   :  { %v4774_v46 = vpack.c.bf16 %v1399_v45, %v1398_v44 }
 0xd7d   :  { %v1244_v56 = vrot.slane %v1243_v52, 1  ;;  %v1259_v20 = vsel %vm482_vm8, %v1238_v54, %v1258_v60  ;;  %v3829_v60 = vld [vmem:[%s6978_s1 + $0x10] sm:$0xff] (!%p3828_p7) }
 0xd7e   :  { %1489 = vst.msk [vmem:[#allocation2] sm:$0xff] (!%p3828_p7), %vm489_vm10, %v3829_v60 }
 0xd7f   :  { %v1245_v59 = vadd.f32 %v1244_v56, %v1243_v52 }
 0xd81   :  { %v1260_v61 = vsel %vm484_vm9, %v1245_v59, %v1259_v20 }
 0xd82   :  { %1261 = vrot.lane.b32.xlu1 %v1260_v61, %s5197_s21 }
 0xde4   :  { %v1360_v16 = vpop.permute.xlu0 %1359 }
 0xdf4   :  { %v1262_v3 = vpop.permute.xlu1 %1261 }
 0xdf5   :  { %v1264_v4 = vsel %vm489_vm10, %v835_v2, %v1262_v3 }
 0xdf6   :  { %4335 = vmatmul.mubr.msk.f32.vlgmr.msra.gmra.mrb[2].mxu1 %vm504_vm11, %v1264_v4 }
 0xdf7   :  { %4357 = vmatprep.mubr.msk.f32.mxu1 %vm5196_vm2, %v5194_v6  ;;  %4763 = vmatpush3.bf16.msra.mxu1 %v4762_v29 }
 0xdf8   :  { %4764 = vmatprep.subr.bf16.mxu1 %v5195_v41 }
 0xdfb   :  { %4766 = vmatpush3.bf16.msra.mxu1 %v4765_v33 }
 0xdfc   :  { %4767 = vmatprep.subr.bf16.mxu1 %v5195_v41 }
 0xdff   :  { %4769 = vmatpush3.bf16.msra.mxu1 %v4768_v39 }
 0xe00   :  { %4770 = vmatprep.subr.bf16.mxu1 %v5195_v41 }
 0xe03   :  { %4772 = vmatpush3.bf16.msra.mxu1 %v4771_v43 }
 0xe04   :  { %4773 = vmatprep.subr.bf16.mxu1 %v5195_v41 }
 0xe07   :  { %4775 = vmatpush3.bf16.msra.mxu1 %v4774_v46 }
 0xec9   :  { %v1347_v7 = vpop.f32.mrb[2].mxu1 }
 0xeca   :  { %v1348_v8 = vadd.f32 %v3822_v5, %v1347_v7  ;;  %v4336_v9 = vpop.f32.mrb[3].mxu1 }
 0xecc   :  { %v1351_v10 = vadd.f32 %v1348_v8, %v998_v0 }
 0xece   :  { %v3824_v11 = vmul.f32 -1.442695, %v1351_v10 }
 0xed0   :  { %5107 = vpow2.f32 %v3824_v11 }
 0xeda   :  { %v5108_v12 = vpop.eup %5107 }
 0xedb   :  { %v1355_v13 = vadd.f32 1.0, %v5108_v12 }
 0xedd   :  { %5109 = vrcp.f32 %v1355_v13 }
 0xee7   :  { %v5110_v18 = vpop.eup %5109 }
 0xee8   :  { %v1362_v15 = vmul.f32 %v5110_v18, %v1360_v16  ;;  %v1369_v47 = vsub.f32 1.0, %v5110_v18  ;;  %v1375_v50 = vmul.f32 %v5110_v18, %v5589_v14  ;;  %v3825_v14 = vld [vmem:[%s6987_s10] ss:$0 sm:$0xff] }
 0xeea   :  { %1364 = vrot.lane.b32.xlu1 %v1362_v15, %s5198_s24 }
 0xf5c   :  { %v1365_v22 = vpop.permute.xlu1 %1364 }
 0xf5d   :  { %v1367_v23 = vadd.f32 %v1365_v22, %v1348_v8 }
 0xf5f   :  { %5111 = vtanh.f32 %v1367_v23 }
 0xf69   :  { %v5112_v35 = vpop.eup %5111 }
 0xf6a   :  { %1371 = vrot.lane.b32.xlu0 %v5112_v35, %s5200_s25 }
 0xf6e   :  { %1381 = vrot.lane.b32.xlu0 %v1260_v61, %s5199_s29 }
 0xfdc   :  { %v1372_v48 = vpop.permute.xlu0 %1371 }
 0xfdd   :  { %v1374_v49 = vmul.f32 %v1372_v48, %v1369_v47 }
 0xfdf   :  { %v5931_v51 = vadd.f32 %v1375_v50, %v1374_v49 }
 0xfe0   :  { %v1382_v53 = vpop.permute.xlu0 %1381 }
 0xfe1   :  { %1378 = vrot.lane.b32.xlu1 %v5931_v51, %s5200_s25 }
 0xfe5   :  { %1385 = vrot.lane.b32.xlu1 %v835_v2, %s5198_s24 }
0x1053   :  { %v5936_v52 = vpop.permute.xlu1 %1378 }
0x1054   :  { %v1388_v54 = vsel %vm63_vm0, %v5936_v52, %v1382_v53 }
0x1057   :  { %v1386_v55 = vpop.permute.xlu1 %1385 }
0x1058   :  { %v1389_v56 = vsel %vm619_vm12, %v1388_v54, %v1386_v55 }
0x1059   :  { %4358 = vmatmul.mubr.msk.f32.vlgmr.msra.gmra.mrb[4].mxu1 %vm638_vm13, %v1389_v56 }
0x1129   :  { %1486 = sbr.rel (%p3828_p7) target bundleno = 4400 (0x1130), region = 61 }
0x112c   :  { %v1476_v57 = vpop.f32.mrb[4].mxu1 }
0x112d   :  { %v1477_v58 = vadd.f32 %v3825_v14, %v1476_v57  ;;  %v4359_v59 = vpop.f32.mrb[5].mxu1 }
0x112f   :  { %1481 = vst [vmem:[#allocation5 + $0x8] sm:$0xff] %v1477_v58 }
0x1130 PF:  { %p3830_p8 = scmp.gt.s32.totalorder %s3827_s17, 0 }
0x1131   :  { %1496 = vmax.xlane.f32.xlu0 (!%p3830_p8), %v1477_v58  ;;  %v5950_v20 = vand.u32 (!%p3830_p8), 127, %v336_v17  ;;  %v1517_v1 = vld [vmem:[%s6988_s11] sm:$0xff] (!%p3830_p8)  ;;  %v1518_v2 = vld [vmem:[%s6988_s11 + $0x8] sm:$0xff] (!%p3830_p8)  ;;  %v1519_v3 = vld [vmem:[%s6988_s11 + $0x10] sm:$0xff] (!%p3830_p8)  ;;  %v5205_v4 = vmov (!%p3830_p8), 0.0|0.0   ;;  %v5207_v43 = vmov (!%p3830_p8), 0.0  }
0x1132   :  { %1493 = sbr.rel (%p3830_p8) target bundleno = 5053 (0x13bd), region = 65  ;;  %4776 = vmatprep.subr.bf16.mxu0 (!%p3830_p8), %v5205_v4  ;;  %v4777_v5 = vpack.c.bf16 (!%p3830_p8), %v1518_v2, %v1517_v1  ;;  %v1520_v7 = vld [vmem:[%s6988_s11 + $0x18] sm:$0xff] (!%p3830_p8)  ;;  %v1521_v9 = vld [vmem:[%s6988_s11 + $0x20] sm:$0xff] (!%p3830_p8)  ;;  %v1522_v10 = vld [vmem:[%s6988_s11 + $0x28] sm:$0xff] (!%p3830_p8)  ;;  %v5208_v49 = vmov (!%p3830_p8), 1.0  }
0x1133   :  { %v4780_v8 = vpack.c.bf16 (!%p3830_p8), %v1520_v7, %v1519_v3  ;;  %v4783_v11 = vpack.c.bf16 (!%p3830_p8), %v1522_v10, %v1521_v9  ;;  %v1523_v12 = vld [vmem:[%s6988_s11 + $0x30] sm:$0xff] (!%p3830_p8)  ;;  %v1524_v13 = vld [vmem:[%s6988_s11 + $0x38] sm:$0xff] (!%p3830_p8)  ;;  %v1525_v18 = vld [vmem:[%s6988_s11 + $0x40] sm:$0xff] (!%p3830_p8) }
0x1134   :  { %4778 = vmatpush3.bf16.msra.mxu0 (!%p3830_p8), %v4777_v5  ;;  %v4786_v16 = vpack.c.bf16 (!%p3830_p8), %v1524_v13, %v1523_v12  ;;  %v1526_v15 = vld [vmem:[%s6988_s11 + $0x48] sm:$0xff] (!%p3830_p8)  ;;  %v1527_v23 = vld [vmem:[%s6988_s11 + $0x50] sm:$0xff] (!%p3830_p8)  ;;  %v1528_v24 = vld [vmem:[%s6988_s11 + $0x58] sm:$0xff] (!%p3830_p8) }
0x1135   :  { %4779 = vmatprep.subr.bf16.mxu0 (!%p3830_p8), %v5205_v4  ;;  %v4789_v22 = vpack.c.bf16 (!%p3830_p8), %v1526_v15, %v1525_v18  ;;  %v4792_v25 = vpack.c.bf16 (!%p3830_p8), %v1528_v24, %v1527_v23  ;;  %v1529_v27 = vld [vmem:[%s6988_s11 + $0x60] sm:$0xff] (!%p3830_p8)  ;;  %v1530_v29 = vld [vmem:[%s6988_s11 + $0x68] sm:$0xff] (!%p3830_p8)  ;;  %v1531_v39 = vld [vmem:[%s6988_s11 + $0x70] sm:$0xff] (!%p3830_p8) }
0x1136   :  { %v4795_v31 = vpack.c.bf16 (!%p3830_p8), %v1530_v29, %v1529_v27  ;;  %v1532_v40 = vld [vmem:[%s6988_s11 + $0x78] sm:$0xff] (!%p3830_p8) }
0x1137   :  { %v4798_v42 = vpack.c.bf16 (!%p3830_p8), %v1532_v40, %v1531_v39 }
0x1138   :  { %4781 = vmatpush3.bf16.msra.mxu0 (!%p3830_p8), %v4780_v8 }
0x1139   :  { %4782 = vmatprep.subr.bf16.mxu0 %v5205_v4 }
0x113c   :  { %4784 = vmatpush3.bf16.msra.mxu0 %v4783_v11 }
0x113d   :  { %4785 = vmatprep.subr.bf16.mxu0 %v5205_v4 }
0x1140   :  { %4787 = vmatpush3.bf16.msra.mxu0 %v4786_v16 }
0x1141   :  { %4788 = vmatprep.subr.bf16.mxu0 %v5205_v4 }
0x1144   :  { %4790 = vmatpush3.bf16.msra.mxu0 %v4789_v22 }
0x1145   :  { %4791 = vmatprep.subr.bf16.mxu0 %v5205_v4 }
0x1148   :  { %4793 = vmatpush3.bf16.msra.mxu0 %v4792_v25 }
0x1149   :  { %4794 = vmatprep.subr.bf16.mxu0 %v5205_v4 }
0x114c   :  { %4796 = vmatpush3.bf16.msra.mxu0 %v4795_v31 }
0x114d   :  { %4797 = vmatprep.subr.bf16.mxu0 %v5205_v4 }
0x1150   :  { %4799 = vmatpush3.bf16.msra.mxu0 %v4798_v42 }
0x11be   :  { %v1497_v61 = vpop.xlane.xlu0 %1496 }
0x11bf   :  { %vm1498_vm14 = vcmp.ge.f32.partialorder %v1477_v58, %v1497_v61 }
0x11c0   :  { %v1499_v62 = vsel %vm1498_vm14, %v5950_v20, 128  ;;  %vm5206_vm14 = vmmov 0  }
0x11c1   :  { %v1501_v63 = vshra.s32 %v1499_v62, 16  ;;  %v1500_v33 = vand.u32 65535, %v1499_v62  ;;  %4392 = vmatprep.mubr.msk.f32.mxu0 %vm5206_vm14, %v5207_v43 }
0x11c3   :  { %v1503_v0 = vcvt.s32.f32 %v1501_v63  ;;  %v1502_v37 = vcvt.s32.f32 %v1500_v33 }
0x11c5   :  { %1504 = vmin.xlane.f32.xlu0 %v1503_v0 }
0x1252   :  { %v1505_v35 = vpop.xlane.xlu0 %1504 }
0x1253   :  { %vm1506_vm15 = vcmp.eq.f32.partialorder %v1503_v0, %v1505_v35  ;;  %v1511_v44 = vcvt.f32.s32 %v1505_v35 }
0x1254   :  { %v1507_v38 = vsel %vm1506_vm15, %v1502_v37, inf }
0x1255   :  { %1508 = vmin.xlane.f32.xlu1 %v1507_v38  ;;  %v1512_v46 = vshll.u32 %v1511_v44, 16 }
0x12e2   :  { %v1509_v45 = vpop.xlane.xlu1 %1508 }
0x12e3   :  { %v1510_v47 = vcvt.f32.s32 %v1509_v45 }
0x12e5   :  { %v1513_v48 = vadd.s32 %v1512_v46, %v1510_v47 }
0x12e7   :  { %vm1514_vm15 = vcmp.eq.s32.totalorder %v5950_v20, %v1513_v48 }
0x12e8   :  { %4393 = vmatmul.mubr.msk.f32.vlgmr.msra.gmra.mrb[0].mxu0 %vm1514_vm15, %v5208_v49 }
0x13bb   :  { %v1599_v50 = vpop.f32.mrb[0].mxu0 }
0x13bc   :  { %1603 = vst.msk [vmem:[#allocation2] sm:$0xff] %vm489_vm10, %v1599_v50  ;;  %v4394_v53 = vpop.f32.mrb[1].mxu0 }
0x13bd PF:  { %v1606_v54 = vld [vmem:[%s6982_s5 + $0x8] sm:$0xff]  ;;  %v1609_v55 = vld [vmem:[%s6982_s5 + $0x20] sm:$0xff]  ;;  %1683 = vmatprep.mubr.f32.mxu0 %v5194_v6  ;;  %4808 = vmatprep.subr.bf16.mxu1 %v5195_v41  ;;  %v1608_v57 = vld [vmem:[%s6982_s5 + $0x18] sm:$0xff]  ;;  %s3841_s18 = sld [smem:[#allocation4 + $0x3]] }
0x13be   :  { %v1605_v56 = vld [vmem:[%s6982_s5] sm:$0xff]  ;;  %v4800_v14 = vpack.c.bf16 %v1609_v55, %v1606_v54  ;;  %v1612_v58 = vld [vmem:[%s6982_s5 + $0x38] sm:$0xff]  ;;  %v1615_v59 = vld [vmem:[%s6982_s5 + $0x50] sm:$0xff]  ;;  %4403 = vmatprep.mubr.msk.f32.mxu1 %vm5196_vm2, %v5194_v6 }
0x13bf   :  { %v4802_v60 = vpack.c.bf16 %v1608_v57, %v1605_v56  ;;  %v4804_v20 = vpack.c.bf16 %v1615_v59, %v1612_v58  ;;  %v1611_v61 = vld [vmem:[%s6982_s5 + $0x30] sm:$0xff]  ;;  %v1614_v62 = vld [vmem:[%s6982_s5 + $0x48] sm:$0xff]  ;;  %v1790_v63 = vld [vmem:[%s6989_s12 + $0x80] sm:$0xff] }
0x13c0   :  { %4801 = vmatprep.subr.bf16.mxu0 %v4800_v14  ;;  %v1791_v0 = vld [vmem:[%s6989_s12 + $0x88] sm:$0xff]  ;;  %v4806_v1 = vpack.c.bf16 %v1614_v62, %v1611_v61  ;;  %v1774_v3 = vld [vmem:[%s6989_s12] sm:$0xff]  ;;  %v1792_v5 = vld [vmem:[%s6989_s12 + $0x90] sm:$0xff] }
0x13c1   :  { %4803 = vmatpush1.bf16.msra.mxu0 %v4802_v60  ;;  %v4814_v2 = vpack.c.bf16 %v1791_v0, %v1790_v63  ;;  %v1775_v4 = vld [vmem:[%s6989_s12 + $0x8] sm:$0xff]  ;;  %v1793_v7 = vld [vmem:[%s6989_s12 + $0x98] sm:$0xff]  ;;  %v1776_v10 = vld [vmem:[%s6989_s12 + $0x10] sm:$0xff] }
0x13c2   :  { %4805 = vmatprep.subr.bf16.mxu0 %v4804_v20  ;;  %v4816_v8 = vpack.c.bf16 %v1775_v4, %v1774_v3  ;;  %v4818_v9 = vpack.c.bf16 %v1793_v7, %v1792_v5  ;;  %v1777_v11 = vld [vmem:[%s6989_s12 + $0x18] sm:$0xff]  ;;  %v1794_v12 = vld [vmem:[%s6989_s12 + $0xa0] sm:$0xff]  ;;  %v1795_v13 = vld [vmem:[%s6989_s12 + $0xa8] sm:$0xff] }
0x13c3   :  { %v4820_v16 = vpack.c.bf16 %v1777_v11, %v1776_v10  ;;  %v4822_v18 = vpack.c.bf16 %v1795_v13, %v1794_v12  ;;  %v1778_v15 = vld [vmem:[%s6989_s12 + $0x20] sm:$0xff]  ;;  %v1779_v22 = vld [vmem:[%s6989_s12 + $0x28] sm:$0xff]  ;;  %v1796_v23 = vld [vmem:[%s6989_s12 + $0xb0] sm:$0xff]  ;;  %p3842_p9 = scmp.le.s32.totalorder %s3841_s18, 0 }
0x13c4   :  { %v1797_v24 = vld [vmem:[%s6989_s12 + $0xb8] sm:$0xff]  ;;  %v4824_v25 = vpack.c.bf16 %v1779_v22, %v1778_v15  ;;  %v1780_v29 = vld [vmem:[%s6989_s12 + $0x30] sm:$0xff]  ;;  %v1798_v35 = vld [vmem:[%s6989_s12 + $0xc0] sm:$0xff] }
0x13c5   :  { %4807 = vmatpush1.bf16.msra.mxu0 %v4806_v1  ;;  %v4826_v27 = vpack.c.bf16 %v1797_v24, %v1796_v23  ;;  %v1781_v31 = vld [vmem:[%s6989_s12 + $0x38] sm:$0xff]  ;;  %v1799_v37 = vld [vmem:[%s6989_s12 + $0xc8] sm:$0xff]  ;;  %v1782_v39 = vld [vmem:[%s6989_s12 + $0x40] sm:$0xff] }
0x13c6   :  { %4815 = vmatprep.subr.bf16.mxu0 %v4814_v2  ;;  %v4828_v33 = vpack.c.bf16 %v1781_v31, %v1780_v29  ;;  %v4830_v38 = vpack.c.bf16 %v1799_v37, %v1798_v35  ;;  %v1783_v40 = vld [vmem:[%s6989_s12 + $0x48] sm:$0xff]  ;;  %v1800_v43 = vld [vmem:[%s6989_s12 + $0xd0] sm:$0xff]  ;;  %v1801_v44 = vld [vmem:[%s6989_s12 + $0xd8] sm:$0xff] }
0x13c7   :  { %v4832_v42 = vpack.c.bf16 %v1783_v40, %v1782_v39  ;;  %v4834_v45 = vpack.c.bf16 %v1801_v44, %v1800_v43  ;;  %v1784_v46 = vld [vmem:[%s6989_s12 + $0x50] sm:$0xff]  ;;  %v1785_v47 = vld [vmem:[%s6989_s12 + $0x58] sm:$0xff]  ;;  %v1802_v49 = vld [vmem:[%s6989_s12 + $0xe0] sm:$0xff] }
0x13c8   :  { %3833 = vmatmul.mubr.msk.f32.vlgmr.msra.gmra.mrb[0].mxu0 %vm63_vm0, %v5936_v52  ;;  %v4836_v48 = vpack.c.bf16 %v1785_v47, %v1784_v46  ;;  %v1803_v50 = vld [vmem:[%s6989_s12 + $0xe8] sm:$0xff]  ;;  %v1786_v53 = vld [vmem:[%s6989_s12 + $0x60] sm:$0xff]  ;;  %v1804_v56 = vld [vmem:[%s6989_s12 + $0xf0] sm:$0xff] }
0x13c9   :  { %4817 = vmatpush3.bf16.msra.mxu0 %v4816_v8  ;;  %v4838_v54 = vpack.c.bf16 %v1803_v50, %v1802_v49  ;;  %v1787_v55 = vld [vmem:[%s6989_s12 + $0x68] sm:$0xff]  ;;  %v1805_v14 = vld [vmem:[%s6989_s12 + $0xf8] sm:$0xff]  ;;  %v1788_v59 = vld [vmem:[%s6989_s12 + $0x70] sm:$0xff] }
0x13ca   :  { %4819 = vmatprep.subr.bf16.mxu0 %v4818_v9  ;;  %v4840_v57 = vpack.c.bf16 %v1787_v55, %v1786_v53  ;;  %v4842_v58 = vpack.c.bf16 %v1805_v14, %v1804_v56  ;;  %v1789_v60 = vld [vmem:[%s6989_s12 + $0x78] sm:$0xff]  ;;  %v1768_v61 = vld [vmem:[%s6981_s4] sm:$0xff]  ;;  %v1769_v62 = vld [vmem:[%s6981_s4 + $0x8] sm:$0xff] }
0x13cb   :  { %v4844_v20 = vpack.c.bf16 %v1789_v60, %v1788_v59  ;;  %v1607_v37 = vld [vmem:[%s6982_s5 + $0x10] sm:$0xff]  ;;  %v1613_v39 = vld [vmem:[%s6982_s5 + $0x40] sm:$0xff]  ;;  %v2039_v53 = vld [vmem:[%s6984_s7 + $0x28] sm:$0xff] }
0x13cc   :  { %v2034_v44 = vld [vmem:[%s6984_s7] sm:$0xff]  ;;  %v2036_v47 = vld [vmem:[%s6984_s7 + $0x10] sm:$0xff]  ;;  %v1944_v56 = vld [vmem:[%s6980_s3 + $0x8] sm:$0xff] }
0x13cd   :  { %4821 = vmatpush3.bf16.msra.mxu0 %v4820_v16  ;;  %v2038_v50 = vld [vmem:[%s6984_s7 + $0x20] sm:$0xff]  ;;  %v1945_v14 = vld [vmem:[%s6980_s3 + $0x10] sm:$0xff] }
0x13ce   :  { %4823 = vmatprep.subr.bf16.mxu0 %v4822_v18 }
0x13d1   :  { %4825 = vmatpush3.bf16.msra.mxu0 %v4824_v25 }
0x13d2   :  { %4827 = vmatprep.subr.bf16.mxu0 %v4826_v27 }
0x13d5   :  { %4829 = vmatpush3.bf16.msra.mxu0 %v4828_v33 }
0x13d6   :  { %4831 = vmatprep.subr.bf16.mxu0 %v4830_v38  ;;  %v1610_v38 = vld [vmem:[%s6982_s5 + $0x28] sm:$0xff] }
0x13d7   :  { %v4809_v40 = vpack.c.bf16 %v1610_v38, %v1607_v37 }
0x13d9   :  { %4833 = vmatpush3.bf16.msra.mxu0 %v4832_v42  ;;  %v1616_v42 = vld [vmem:[%s6982_s5 + $0x58] sm:$0xff]  ;;  %4810 = vmatpush3.bf16.msra.mxu1 %v4809_v40 }
0x13da   :  { %4835 = vmatprep.subr.bf16.mxu0 %v4834_v45  ;;  %v4812_v43 = vpack.c.bf16 %v1616_v42, %v1613_v39  ;;  %4811 = vmatprep.subr.bf16.mxu1 %v5195_v41  ;;  %v2035_v45 = vld [vmem:[%s6984_s7 + $0x8] sm:$0xff] }
0x13db   :  { %v4847_v46 = vpack.c.bf16 %v2035_v45, %v2034_v44 }
0x13dd   :  { %4837 = vmatpush3.bf16.msra.mxu0 %v4836_v48  ;;  %4813 = vmatpush3.bf16.msra.mxu1 %v4812_v43  ;;  %v2037_v48 = vld [vmem:[%s6984_s7 + $0x18] sm:$0xff] }
0x13de   :  { %4839 = vmatprep.subr.bf16.mxu0 %v4838_v54  ;;  %4846 = vmatprep.subr.bf16.mxu1 %v5195_v41  ;;  %v4850_v49 = vpack.c.bf16 %v2037_v48, %v2036_v47  ;;  %v4853_v54 = vpack.c.bf16 %v2039_v53, %v2038_v50  ;;  %v1950_v47 = vld [vmem:[%s6980_s3 + $0x38] sm:$0xff] }
0x13e0   :  { %4404 = vmatmul.mubr.msk.f32.vlgmr.msra.gmra.mrb[0].mxu1 %vm63_vm0, %v5936_v52  ;;  %v1943_v52 = vld [vmem:[%s6980_s3] sm:$0xff] }
0x13e1   :  { %4841 = vmatpush3.bf16.msra.mxu0 %v4840_v57  ;;  %4848 = vmatpush3.bf16.msra.mxu1 %v4847_v46 }
0x13e2   :  { %4843 = vmatprep.subr.bf16.mxu0 %v4842_v58  ;;  %4418 = vmatprep.mubr.msk.f32.mxu1 %vm5196_vm2, %v5194_v6 }
0x13e3   :  { %4849 = vmatprep.subr.bf16.mxu1 %v5195_v41 }
0x13e5   :  { %4845 = vmatpush3.bf16.msra.mxu0 %v4844_v20  ;;  %4851 = vmatpush3.bf16.msra.mxu1 %v4850_v49 }
0x13e6   :  { %4852 = vmatprep.subr.bf16.mxu1 %v5195_v41 }
0x13e9   :  { %4854 = vmatpush3.bf16.msra.mxu1 %v4853_v54 }
0x13ea   :  { %4855 = vmatprep.subr.bf16.mxu1 %v5195_v41 }
0x149b   :  { %v1685_v63 = vpop.f32.mrb[0].mxu0 }
0x149c   :  { %v1770_v0 = vadd.f32 %v1768_v61, %v1685_v63  ;;  %v1687_v1 = vpop.f32.mrb[1].mxu0  ;;  %v1946_v61 = vld [vmem:[%s6980_s3 + $0x18] sm:$0xff] }
0x149d   :  { %v1771_v2 = vadd.f32 %v1769_v62, %v1687_v1 }
0x149f   :  { %5113 = vtanh.f32 %v1771_v2 }
0x14a0   :  { %5115 = vtanh.f32 %v1770_v0 }
0x14a9   :  { %v5114_v3 = vpop.eup %5113 }
0x14aa   :  { %v5116_v4 = vpop.eup %5115  ;;  %1870 = vmatprep.mubr.f32.mxu0 %v5114_v3 }
0x14ab   :  { %1871 = vmatmul.mubr.f32.vlgmr.msra.gmra.mrb[2].mxu0 %v5116_v4 }
0x157e   :  { %v4056_v5 = vpop.f32.mrb[2].mxu0 }
0x157f   :  { %v4057_v7 = vpop.f32.mrb[3].mxu0 }
0x1580   :  { %v4058_v8 = vadd.f32 %v4057_v7, %v4056_v5  ;;  %v1947_v5 = vld [vmem:[%s6980_s3 + $0x20] sm:$0xff] }
0x1582   :  { %v1876_v9 = vsel %vm324_vm1, %v4058_v8, -inf }
0x1583   :  { %1877 = vmax.xlane.f32.xlu0 %v1876_v9 }
0x1610   :  { %v1878_v10 = vpop.xlane.xlu0 %1877 }
0x1611   :  { %v1879_v11 = vsub.f32 %v4058_v8, %v1878_v10 }
0x1613   :  { %v1880_v12 = vmul.f32 1.442695, %v1879_v11 }
0x1615   :  { %5117 = vpow2.f32 %v1880_v12 }
0x161f   :  { %v5118_v13 = vpop.eup %5117 }
0x1620   :  { %v1882_v16 = vsel %vm324_vm1, %v5118_v13, 0.0 }
0x1621   :  { %1883 = vadd.xlane.f32.xlu0 %v1882_v16  ;;  %v1948_v16 = vld [vmem:[%s6980_s3 + $0x28] sm:$0xff] }
0x16ae   :  { %v1884_v18 = vpop.xlane.xlu0 %1883 }
0x16af   :  { %5119 = vrcp.f32 %v1884_v18 }
0x16b9   :  { %v5120_v15 = vpop.eup %5119 }
0x16ba   :  { %v1886_v22 = vmul.f32 %v5120_v15, %v5118_v13 }
0x16bc   :  { %v1904_v23 = vrot.slane %v1886_v22, %v5430_v19  ;;  %v1890_v24 = vrot.slane %v1886_v22, %v5432_v21  ;;  %v1897_v25 = vrot.slane %v1886_v22, %v5436_v26  ;;  %v1911_v27 = vrot.slane %v1886_v22, %v5439_v28 }
0x16bd   :  { %v1918_v29 = vrot.slane %v1886_v22, %v5442_v30  ;;  %v1925_v31 = vrot.slane %v1886_v22, %v5445_v32  ;;  %v1932_v33 = vrot.slane %v1886_v22, %v5448_v34  ;;  %v1939_v35 = vrot.slane %v1886_v22, %v5451_v36 }
0x16be   :  { %1906 = vbcast.lane.b32.xlu0 %v1904_v23, 256  ;;  %1892 = vbcast.lane.b32.xlu1 %v1890_v24, 256 }
0x16c2   :  { %1899 = vbcast.lane.b32.xlu1 %v1897_v25, 256 }
0x16c6   :  { %1913 = vbcast.lane.b32.xlu1 %v1911_v27, 256 }
0x16ca   :  { %1920 = vbcast.lane.b32.xlu1 %v1918_v29, 256 }
0x16ce   :  { %1927 = vbcast.lane.b32.xlu1 %v1925_v31, 256 }
0x16d2   :  { %1934 = vbcast.lane.b32.xlu1 %v1932_v33, 256  ;;  %v1949_v33 = vld [vmem:[%s6980_s3 + $0x30] sm:$0xff] }
0x16d6   :  { %1941 = vbcast.lane.b32.xlu1 %v1939_v35, 256 }
0x1730   :  { %v1893_v55 = vpop.permute.xlu1 %1892  ;;  %v1907_v57 = vpop.permute.xlu0 %1906 }
0x1731   :  { %v1951_v58 = vmul.f32 %v1943_v52, %v1893_v55  ;;  %v1953_v20 = vmul.f32 %v1945_v14, %v1907_v57 }
0x1733   :  { %v1959_v62 = vsel %vm63_vm0, %v1951_v58, 0.0  ;;  %v1973_v3 = vsel %vm63_vm0, %v1953_v20, 0.0 }
0x1734   :  { %v1900_v59 = vpop.permute.xlu1 %1899  ;;  %v1960_v4 = vrot.slane %v1959_v62, 4  ;;  %v1974_v11 = vrot.slane %v1973_v3, 4 }
0x1735   :  { %v1952_v60 = vmul.f32 %v1944_v56, %v1900_v59 }
0x1736   :  { %v1961_v13 = vadd.f32 %v1960_v4, %v1959_v62  ;;  %v1975_v25 = vadd.f32 %v1974_v11, %v1973_v3 }
0x1737   :  { %v1966_v63 = vsel %vm63_vm0, %v1952_v60, 0.0 }
0x1738   :  { %v1967_v0 = vrot.slane %v1966_v63, 4  ;;  %v1914_v1 = vpop.permute.xlu1 %1913  ;;  %v1962_v29 = vrot.slane %v1961_v13, 2  ;;  %v1976_v42 = vrot.slane %v1975_v25, 2 }
0x1739   :  { %v1954_v2 = vmul.f32 %v1946_v61, %v1914_v1 }
0x173a   :  { %v1968_v8 = vadd.f32 %v1967_v0, %v1966_v63  ;;  %v1963_v45 = vadd.f32 %v1962_v29, %v1961_v13  ;;  %v1977_v55 = vadd.f32 %v1976_v42, %v1975_v25 }
0x173b   :  { %v1980_v7 = vsel %vm63_vm0, %v1954_v2, 0.0 }
0x173c   :  { %v1981_v9 = vrot.slane %v1980_v7, 4  ;;  %v1921_v10 = vpop.permute.xlu1 %1920  ;;  %v1969_v15 = vrot.slane %v1968_v8, 2  ;;  %v1964_v57 = vrot.slane %v1963_v45, 1  ;;  %v1978_v0 = vrot.slane %v1977_v55, 1 }
0x173d   :  { %v1955_v12 = vmul.f32 %v1947_v5, %v1921_v10 }
0x173e   :  { %v1982_v22 = vadd.f32 %v1981_v9, %v1980_v7  ;;  %v1970_v37 = vadd.f32 %v1969_v15, %v1968_v8  ;;  %v1965_v2 = vadd.f32 %v1964_v57, %v1963_v45  ;;  %v1979_v11 = vadd.f32 %v1978_v0, %v1977_v55  ;;  %v2160_v57 = vld [vmem:[%s6986_s9 + $0x8] sm:$0xff] }
0x173f   :  { %v1987_v18 = vsel %vm63_vm0, %v1955_v12, 0.0 }
0x1740   :  { %v1988_v23 = vrot.slane %v1987_v18, 4  ;;  %v1928_v24 = vpop.permute.xlu1 %1927  ;;  %v1983_v38 = vrot.slane %v1982_v22, 2  ;;  %v1971_v49 = vrot.slane %v1970_v37, 1 }
0x1741   :  { %v1956_v27 = vmul.f32 %v1948_v16, %v1928_v24 }
0x1742   :  { %v1989_v31 = vadd.f32 %v1988_v23, %v1987_v18  ;;  %v1984_v50 = vadd.f32 %v1983_v38, %v1982_v22  ;;  %v1972_v20 = vadd.f32 %v1971_v49, %v1970_v37 }
0x1743   :  { %v1994_v35 = vsel %vm63_vm0, %v1956_v27, 0.0 }
0x1744   :  { %v1995_v39 = vrot.slane %v1994_v35, 4  ;;  %v1935_v40 = vpop.permute.xlu1 %1934  ;;  %v1990_v43 = vrot.slane %v1989_v31, 2  ;;  %v1985_v61 = vrot.slane %v1984_v50, 1  ;;  %v2023_v10 = vsel %vm472_vm3, %v1972_v20, %v1965_v2  ;;  %v2166_v2 = vld [vmem:[%s6986_s9 + $0x38] sm:$0xff] }
0x1745   :  { %v1957_v44 = vmul.f32 %v1949_v33, %v1935_v40  ;;  %v2024_v15 = vsel %vm474_vm4, %v1979_v11, %v2023_v10  ;;  %v3835_v33 = vld [vmem:[%s6983_s6] ss:$0 sm:$0xff] }
0x1746   :  { %v1996_v46 = vadd.f32 %v1995_v39, %v1994_v35  ;;  %v1991_v56 = vadd.f32 %v1990_v43, %v1989_v31  ;;  %v1986_v7 = vadd.f32 %v1985_v61, %v1984_v50  ;;  %v1756_v35 = vpop.f32.mrb[0].mxu1  ;;  %v1604_v39 = vld [vmem:[#allocation2] sm:$0xff] }
0x1747   :  { %v2001_v48 = vsel %vm63_vm0, %v1957_v44, 0.0  ;;  %v1767_v37 = vadd.f32 %v3835_v33, %v1756_v35  ;;  %v4405_v38 = vpop.f32.mrb[1].mxu1  ;;  %v3836_v43 = vld [vmem:[%s6985_s8] ss:$0 sm:$0xff] }
0x1748   :  { %v1997_v53 = vrot.slane %v1996_v46, 2  ;;  %v2002_v54 = vrot.slane %v2001_v48, 4  ;;  %v1942_v52 = vpop.permute.xlu1 %1941  ;;  %v1992_v1 = vrot.slane %v1991_v56, 1  ;;  %v2025_v23 = vsel %vm476_vm5, %v1986_v7, %v2024_v15 }
0x1749   :  { %v1958_v14 = vmul.f32 %v1950_v47, %v1942_v52  ;;  %2128 = vrot.lane.b32.xlu0 %v1767_v37, %s5198_s24 }
0x174a   :  { %v1998_v58 = vadd.f32 %v1997_v53, %v1996_v46  ;;  %v2003_v59 = vadd.f32 %v2002_v54, %v2001_v48  ;;  %v1993_v12 = vadd.f32 %v1992_v1, %v1991_v56  ;;  %v2165_v1 = vld [vmem:[%s6986_s9 + $0x30] sm:$0xff] }
0x174b   :  { %v2008_v60 = vsel %vm63_vm0, %v1958_v14, 0.0  ;;  %v2159_v14 = vld [vmem:[%s6986_s9] sm:$0xff] }
0x174c   :  { %v2004_v62 = vrot.slane %v2003_v59, 2  ;;  %v2009_v63 = vrot.slane %v2008_v60, 4  ;;  %v1999_v3 = vrot.slane %v1998_v58, 1  ;;  %v2026_v24 = vsel %vm478_vm6, %v1993_v12, %v2025_v23 }
0x174e   :  { %v2005_v4 = vadd.f32 %v2004_v62, %v2003_v59  ;;  %v2010_v5 = vadd.f32 %v2009_v63, %v2008_v60  ;;  %v2000_v16 = vadd.f32 %v1999_v3, %v1998_v58  ;;  %v2161_v58 = vld [vmem:[%s6986_s9 + $0x10] sm:$0xff]  ;;  %v4856_v59 = vpack.c.bf16 %v2160_v57, %v2159_v14  ;;  %v2162_v60 = vld [vmem:[%s6986_s9 + $0x18] sm:$0xff]  ;;  %v2163_v62 = vld [vmem:[%s6986_s9 + $0x20] sm:$0xff] }
0x174f   :  { %v4859_v20 = vpack.c.bf16 %v2162_v60, %v2161_v58  ;;  %v2164_v63 = vld [vmem:[%s6986_s9 + $0x28] sm:$0xff]  ;;  %v4865_v3 = vpack.c.bf16 %v2166_v2, %v2165_v1 }
0x1750   :  { %v2011_v8 = vrot.slane %v2010_v5, 2  ;;  %v2006_v9 = vrot.slane %v2005_v4, 1  ;;  %v2027_v27 = vsel %vm480_vm7, %v2000_v16, %v2026_v24  ;;  %v4862_v0 = vpack.c.bf16 %v2164_v63, %v2163_v62 }
0x1752   :  { %v2012_v13 = vadd.f32 %v2011_v8, %v2010_v5  ;;  %v2007_v18 = vadd.f32 %v2006_v9, %v2005_v4  ;;  %v2167_v4 = vld [vmem:[%s6986_s9 + $0x40] sm:$0xff]  ;;  %v2168_v5 = vld [vmem:[%s6986_s9 + $0x48] sm:$0xff] }
0x1753   :  { %v4868_v7 = vpack.c.bf16 %v2168_v5, %v2167_v4 }
0x1754   :  { %v2013_v22 = vrot.slane %v2012_v13, 1  ;;  %v2028_v29 = vsel %vm482_vm8, %v2007_v18, %v2027_v27  ;;  %v3843_v27 = vld [vmem:[%s6978_s1 + $0x18] sm:$0xff] (!%p3842_p9) }
0x1755   :  { %2258 = vst.msk [vmem:[#allocation2] sm:$0xff] (!%p3842_p9), %vm489_vm10, %v3843_v27 }
0x1756   :  { %v2014_v25 = vadd.f32 %v2013_v22, %v2012_v13 }
0x1758   :  { %v2029_v31 = vsel %vm484_vm9, %v2014_v25, %v2028_v29 }
0x1759   :  { %2030 = vrot.lane.b32.xlu1 %v2029_v31, %s5197_s21 }
0x17bb   :  { %v2129_v53 = vpop.permute.xlu0 %2128 }
0x17cb   :  { %v2031_v40 = vpop.permute.xlu1 %2030 }
0x17cc   :  { %v2033_v42 = vsel %vm489_vm10, %v1604_v39, %v2031_v40 }
0x17cd   :  { %4419 = vmatmul.mubr.msk.f32.vlgmr.msra.gmra.mrb[2].mxu1 %vm504_vm11, %v2033_v42 }
0x17ce   :  { %4441 = vmatprep.mubr.msk.f32.mxu1 %vm5196_vm2, %v5194_v6  ;;  %4857 = vmatpush3.bf16.msra.mxu1 %v4856_v59 }
0x17cf   :  { %4858 = vmatprep.subr.bf16.mxu1 %v5195_v41 }
0x17d2   :  { %4860 = vmatpush3.bf16.msra.mxu1 %v4859_v20 }
0x17d3   :  { %4861 = vmatprep.subr.bf16.mxu1 %v5195_v41 }
0x17d6   :  { %4863 = vmatpush3.bf16.msra.mxu1 %v4862_v0 }
0x17d7   :  { %4864 = vmatprep.subr.bf16.mxu1 %v5195_v41 }
0x17da   :  { %4866 = vmatpush3.bf16.msra.mxu1 %v4865_v3 }
0x17db   :  { %4867 = vmatprep.subr.bf16.mxu1 %v5195_v41 }
0x17de   :  { %4869 = vmatpush3.bf16.msra.mxu1 %v4868_v7 }
0x18a0   :  { %v2116_v44 = vpop.f32.mrb[2].mxu1 }
0x18a1   :  { %v2117_v45 = vadd.f32 %v3836_v43, %v2116_v44  ;;  %v4420_v46 = vpop.f32.mrb[3].mxu1 }
0x18a3   :  { %v2120_v47 = vadd.f32 %v2117_v45, %v1767_v37 }
0x18a5   :  { %v3838_v48 = vmul.f32 -1.442695, %v2120_v47 }
0x18a7   :  { %5121 = vpow2.f32 %v3838_v48 }
0x18b1   :  { %v5122_v49 = vpop.eup %5121 }
0x18b2   :  { %v2124_v50 = vadd.f32 1.0, %v5122_v49 }
0x18b4   :  { %5123 = vrcp.f32 %v2124_v50 }
0x18be   :  { %v5124_v54 = vpop.eup %5123 }
0x18bf   :  { %v2131_v52 = vmul.f32 %v5124_v54, %v2129_v53  ;;  %v2138_v8 = vsub.f32 1.0, %v5124_v54  ;;  %v2144_v11 = vmul.f32 %v5124_v54, %v5931_v51  ;;  %v3839_v51 = vld [vmem:[%s6987_s10] ss:$0 sm:$0xff] }
0x18c1   :  { %2133 = vrot.lane.b32.xlu1 %v2131_v52, %s5198_s24 }
0x1933   :  { %v2134_v55 = vpop.permute.xlu1 %2133 }
0x1934   :  { %v2136_v56 = vadd.f32 %v2134_v55, %v2117_v45 }
0x1936   :  { %5125 = vtanh.f32 %v2136_v56 }
0x1940   :  { %v5126_v61 = vpop.eup %5125 }
0x1941   :  { %2140 = vrot.lane.b32.xlu0 %v5126_v61, %s5200_s25 }
0x1945   :  { %2150 = vrot.lane.b32.xlu0 %v2029_v31, %s5199_s29 }
0x19b3   :  { %v2141_v9 = vpop.permute.xlu0 %2140 }
0x19b4   :  { %v2143_v10 = vmul.f32 %v2141_v9, %v2138_v8 }
0x19b6   :  { %v6273_v12 = vadd.f32 %v2144_v11, %v2143_v10 }
0x19b7   :  { %v2151_v16 = vpop.permute.xlu0 %2150 }
0x19b8   :  { %2147 = vrot.lane.b32.xlu1 %v6273_v12, %s5200_s25 }
0x19bc   :  { %2154 = vrot.lane.b32.xlu1 %v1604_v39, %s5198_s24 }
0x1a2a   :  { %v6278_v13 = vpop.permute.xlu1 %2147 }
0x1a2b   :  { %v2157_v18 = vsel %vm63_vm0, %v6278_v13, %v2151_v16 }
0x1a2e   :  { %v2155_v15 = vpop.permute.xlu1 %2154 }
0x1a2f   :  { %v2158_v22 = vsel %vm619_vm12, %v2157_v18, %v2155_v15 }
0x1a30   :  { %4442 = vmatmul.mubr.msk.f32.vlgmr.msra.gmra.mrb[4].mxu1 %vm638_vm13, %v2158_v22 }
0x1b00   :  { %2255 = sbr.rel (%p3842_p9) target bundleno = 6919 (0x1b07), region = 69 }
0x1b03   :  { %v2245_v23 = vpop.f32.mrb[4].mxu1 }
0x1b04   :  { %v2246_v24 = vadd.f32 %v3839_v51, %v2245_v23  ;;  %v4443_v25 = vpop.f32.mrb[5].mxu1 }
0x1b06   :  { %2250 = vst [vmem:[#allocation5 + $0x10] sm:$0xff] %v2246_v24 }
0x1b07 PF:  { %p3844_p10 = scmp.gt.s32.totalorder %s3841_s18, 0 }
0x1b08   :  { %2265 = vmax.xlane.f32.xlu0 (!%p3844_p10), %v2246_v24  ;;  %v6292_v29 = vand.u32 (!%p3844_p10), 127, %v336_v17  ;;  %v2286_v38 = vld [vmem:[%s6988_s11] sm:$0xff] (!%p3844_p10)  ;;  %v2287_v39 = vld [vmem:[%s6988_s11 + $0x8] sm:$0xff] (!%p3844_p10)  ;;  %v2288_v40 = vld [vmem:[%s6988_s11 + $0x10] sm:$0xff] (!%p3844_p10)  ;;  %v5209_v42 = vmov (!%p3844_p10), 0.0|0.0   ;;  %v5211_v3 = vmov (!%p3844_p10), 0.0  }
0x1b09   :  { %2262 = sbr.rel (%p3844_p10) target bundleno = 7572 (0x1d94), region = 73  ;;  %4870 = vmatprep.subr.bf16.mxu0 (!%p3844_p10), %v5209_v42  ;;  %v4871_v43 = vpack.c.bf16 (!%p3844_p10), %v2287_v39, %v2286_v38  ;;  %v2289_v44 = vld [vmem:[%s6988_s11 + $0x18] sm:$0xff] (!%p3844_p10)  ;;  %v2290_v46 = vld [vmem:[%s6988_s11 + $0x20] sm:$0xff] (!%p3844_p10)  ;;  %v2291_v47 = vld [vmem:[%s6988_s11 + $0x28] sm:$0xff] (!%p3844_p10)  ;;  %v5212_v10 = vmov (!%p3844_p10), 1.0  }
0x1b0a   :  { %v4874_v45 = vpack.c.bf16 (!%p3844_p10), %v2289_v44, %v2288_v40  ;;  %v4877_v48 = vpack.c.bf16 (!%p3844_p10), %v2291_v47, %v2290_v46  ;;  %v2292_v49 = vld [vmem:[%s6988_s11 + $0x30] sm:$0xff] (!%p3844_p10)  ;;  %v2293_v50 = vld [vmem:[%s6988_s11 + $0x38] sm:$0xff] (!%p3844_p10)  ;;  %v2294_v54 = vld [vmem:[%s6988_s11 + $0x40] sm:$0xff] (!%p3844_p10) }
0x1b0b   :  { %4872 = vmatpush3.bf16.msra.mxu0 (!%p3844_p10), %v4871_v43  ;;  %v4880_v53 = vpack.c.bf16 (!%p3844_p10), %v2293_v50, %v2292_v49  ;;  %v2295_v52 = vld [vmem:[%s6988_s11 + $0x48] sm:$0xff] (!%p3844_p10)  ;;  %v2296_v56 = vld [vmem:[%s6988_s11 + $0x50] sm:$0xff] (!%p3844_p10)  ;;  %v2297_v14 = vld [vmem:[%s6988_s11 + $0x58] sm:$0xff] (!%p3844_p10) }
0x1b0c   :  { %4873 = vmatprep.subr.bf16.mxu0 (!%p3844_p10), %v5209_v42  ;;  %v4883_v55 = vpack.c.bf16 (!%p3844_p10), %v2295_v52, %v2294_v54  ;;  %v4886_v57 = vpack.c.bf16 (!%p3844_p10), %v2297_v14, %v2296_v56  ;;  %v2298_v58 = vld [vmem:[%s6988_s11 + $0x60] sm:$0xff] (!%p3844_p10)  ;;  %v2299_v59 = vld [vmem:[%s6988_s11 + $0x68] sm:$0xff] (!%p3844_p10)  ;;  %v2300_v0 = vld [vmem:[%s6988_s11 + $0x70] sm:$0xff] (!%p3844_p10) }
0x1b0d   :  { %v4889_v60 = vpack.c.bf16 (!%p3844_p10), %v2299_v59, %v2298_v58  ;;  %v2301_v1 = vld [vmem:[%s6988_s11 + $0x78] sm:$0xff] (!%p3844_p10) }
0x1b0e   :  { %v4892_v2 = vpack.c.bf16 (!%p3844_p10), %v2301_v1, %v2300_v0 }
0x1b0f   :  { %4875 = vmatpush3.bf16.msra.mxu0 (!%p3844_p10), %v4874_v45 }
0x1b10   :  { %4876 = vmatprep.subr.bf16.mxu0 %v5209_v42 }
0x1b13   :  { %4878 = vmatpush3.bf16.msra.mxu0 %v4877_v48 }
0x1b14   :  { %4879 = vmatprep.subr.bf16.mxu0 %v5209_v42 }
0x1b17   :  { %4881 = vmatpush3.bf16.msra.mxu0 %v4880_v53 }
0x1b18   :  { %4882 = vmatprep.subr.bf16.mxu0 %v5209_v42 }
0x1b1b   :  { %4884 = vmatpush3.bf16.msra.mxu0 %v4883_v55 }
0x1b1c   :  { %4885 = vmatprep.subr.bf16.mxu0 %v5209_v42 }
0x1b1f   :  { %4887 = vmatpush3.bf16.msra.mxu0 %v4886_v57 }
0x1b20   :  { %4888 = vmatprep.subr.bf16.mxu0 %v5209_v42 }
0x1b23   :  { %4890 = vmatpush3.bf16.msra.mxu0 %v4889_v60 }
0x1b24   :  { %4891 = vmatprep.subr.bf16.mxu0 %v5209_v42 }
0x1b27   :  { %4893 = vmatpush3.bf16.msra.mxu0 %v4892_v2 }
0x1b95   :  { %v2266_v31 = vpop.xlane.xlu0 %2265 }
0x1b96   :  { %vm2267_vm14 = vcmp.ge.f32.partialorder %v2246_v24, %v2266_v31 }
0x1b97   :  { %v2268_v33 = vsel %vm2267_vm14, %v6292_v29, 128  ;;  %vm5210_vm14 = vmmov 0  }
0x1b98   :  { %v2270_v35 = vshra.s32 %v2268_v33, 16  ;;  %v2269_v20 = vand.u32 65535, %v2268_v33  ;;  %4476 = vmatprep.mubr.msk.f32.mxu0 %vm5210_vm14, %v5211_v3 }
0x1b9a   :  { %v2272_v37 = vcvt.s32.f32 %v2270_v35  ;;  %v2271_v62 = vcvt.s32.f32 %v2269_v20 }
0x1b9c   :  { %2273 = vmin.xlane.f32.xlu0 %v2272_v37 }
0x1c29   :  { %v2274_v61 = vpop.xlane.xlu0 %2273 }
0x1c2a   :  { %vm2275_vm15 = vcmp.eq.f32.partialorder %v2272_v37, %v2274_v61  ;;  %v2280_v4 = vcvt.f32.s32 %v2274_v61 }
0x1c2b   :  { %v2276_v63 = vsel %vm2275_vm15, %v2271_v62, inf }
0x1c2c   :  { %2277 = vmin.xlane.f32.xlu1 %v2276_v63  ;;  %v2281_v7 = vshll.u32 %v2280_v4, 16 }
0x1cb9   :  { %v2278_v5 = vpop.xlane.xlu1 %2277 }
0x1cba   :  { %v2279_v8 = vcvt.f32.s32 %v2278_v5 }
0x1cbc   :  { %v2282_v9 = vadd.s32 %v2281_v7, %v2279_v8 }
0x1cbe   :  { %vm2283_vm15 = vcmp.eq.s32.totalorder %v6292_v29, %v2282_v9 }
0x1cbf   :  { %4477 = vmatmul.mubr.msk.f32.vlgmr.msra.gmra.mrb[0].mxu0 %vm2283_vm15, %v5212_v10 }
0x1d92   :  { %v2368_v11 = vpop.f32.mrb[0].mxu0 }
0x1d93   :  { %2372 = vst.msk [vmem:[#allocation2] sm:$0xff] %vm489_vm10, %v2368_v11  ;;  %v4478_v16 = vpop.f32.mrb[1].mxu0 }
0x1d94 PF:  { %v2375_v18 = vld [vmem:[%s6982_s5 + $0x8] sm:$0xff]  ;;  %v2378_v15 = vld [vmem:[%s6982_s5 + $0x20] sm:$0xff]  ;;  %2452 = vmatprep.mubr.f32.mxu0 %v5194_v6  ;;  %4902 = vmatprep.subr.bf16.mxu1 %v5195_v41  ;;  %v2377_v23 = vld [vmem:[%s6982_s5 + $0x18] sm:$0xff]  ;;  %s3855_s19 = sld [smem:[#allocation4 + $0x4]] }
0x1d95   :  { %v2374_v22 = vld [vmem:[%s6982_s5] sm:$0xff]  ;;  %v4894_v51 = vpack.c.bf16 %v2378_v15, %v2375_v18  ;;  %v2381_v24 = vld [vmem:[%s6982_s5 + $0x38] sm:$0xff]  ;;  %v2384_v25 = vld [vmem:[%s6982_s5 + $0x50] sm:$0xff]  ;;  %4487 = vmatprep.mubr.msk.f32.mxu1 %vm5196_vm2, %v5194_v6 }
0x1d96   :  { %v4896_v27 = vpack.c.bf16 %v2377_v23, %v2374_v22  ;;  %v4898_v29 = vpack.c.bf16 %v2384_v25, %v2381_v24  ;;  %v2380_v31 = vld [vmem:[%s6982_s5 + $0x30] sm:$0xff]  ;;  %v2383_v33 = vld [vmem:[%s6982_s5 + $0x48] sm:$0xff]  ;;  %v2559_v35 = vld [vmem:[%s6989_s12 + $0x80] sm:$0xff] }
0x1d97   :  { %4895 = vmatprep.subr.bf16.mxu0 %v4894_v51  ;;  %v2560_v37 = vld [vmem:[%s6989_s12 + $0x88] sm:$0xff]  ;;  %v4900_v38 = vpack.c.bf16 %v2383_v33, %v2380_v31  ;;  %v2543_v40 = vld [vmem:[%s6989_s12] sm:$0xff]  ;;  %v2561_v43 = vld [vmem:[%s6989_s12 + $0x90] sm:$0xff] }
0x1d98   :  { %4897 = vmatpush1.bf16.msra.mxu0 %v4896_v27  ;;  %v4908_v39 = vpack.c.bf16 %v2560_v37, %v2559_v35  ;;  %v2544_v42 = vld [vmem:[%s6989_s12 + $0x8] sm:$0xff]  ;;  %v2562_v44 = vld [vmem:[%s6989_s12 + $0x98] sm:$0xff]  ;;  %v2545_v47 = vld [vmem:[%s6989_s12 + $0x10] sm:$0xff] }
0x1d99   :  { %4899 = vmatprep.subr.bf16.mxu0 %v4898_v29  ;;  %v4910_v45 = vpack.c.bf16 %v2544_v42, %v2543_v40  ;;  %v4912_v46 = vpack.c.bf16 %v2562_v44, %v2561_v43  ;;  %v2546_v48 = vld [vmem:[%s6989_s12 + $0x18] sm:$0xff]  ;;  %v2563_v49 = vld [vmem:[%s6989_s12 + $0xa0] sm:$0xff]  ;;  %v2564_v50 = vld [vmem:[%s6989_s12 + $0xa8] sm:$0xff] }
0x1d9a   :  { %v4914_v53 = vpack.c.bf16 %v2546_v48, %v2545_v47  ;;  %v4916_v54 = vpack.c.bf16 %v2564_v50, %v2563_v49  ;;  %v2547_v52 = vld [vmem:[%s6989_s12 + $0x20] sm:$0xff]  ;;  %v2548_v55 = vld [vmem:[%s6989_s12 + $0x28] sm:$0xff]  ;;  %v2565_v56 = vld [vmem:[%s6989_s12 + $0xb0] sm:$0xff]  ;;  %p3856_p11 = scmp.le.s32.totalorder %s3855_s19, 0 }
0x1d9b   :  { %v2566_v14 = vld [vmem:[%s6989_s12 + $0xb8] sm:$0xff]  ;;  %v4918_v57 = vpack.c.bf16 %v2548_v55, %v2547_v52  ;;  %v2549_v59 = vld [vmem:[%s6989_s12 + $0x30] sm:$0xff]  ;;  %v2567_v61 = vld [vmem:[%s6989_s12 + $0xc0] sm:$0xff] }
0x1d9c   :  { %4901 = vmatpush1.bf16.msra.mxu0 %v4900_v38  ;;  %v4920_v58 = vpack.c.bf16 %v2566_v14, %v2565_v56  ;;  %v2550_v60 = vld [vmem:[%s6989_s12 + $0x38] sm:$0xff]  ;;  %v2568_v62 = vld [vmem:[%s6989_s12 + $0xc8] sm:$0xff]  ;;  %v2551_v0 = vld [vmem:[%s6989_s12 + $0x40] sm:$0xff] }
0x1d9d   :  { %4909 = vmatprep.subr.bf16.mxu0 %v4908_v39  ;;  %v4922_v20 = vpack.c.bf16 %v2550_v60, %v2549_v59  ;;  %v4924_v63 = vpack.c.bf16 %v2568_v62, %v2567_v61  ;;  %v2552_v1 = vld [vmem:[%s6989_s12 + $0x48] sm:$0xff]  ;;  %v2569_v3 = vld [vmem:[%s6989_s12 + $0xd0] sm:$0xff]  ;;  %v2570_v4 = vld [vmem:[%s6989_s12 + $0xd8] sm:$0xff] }
0x1d9e   :  { %v4926_v2 = vpack.c.bf16 %v2552_v1, %v2551_v0  ;;  %v4928_v5 = vpack.c.bf16 %v2570_v4, %v2569_v3  ;;  %v2553_v7 = vld [vmem:[%s6989_s12 + $0x50] sm:$0xff]  ;;  %v2554_v8 = vld [vmem:[%s6989_s12 + $0x58] sm:$0xff]  ;;  %v2571_v10 = vld [vmem:[%s6989_s12 + $0xe0] sm:$0xff] }
0x1d9f   :  { %3847 = vmatmul.mubr.msk.f32.vlgmr.msra.gmra.mrb[0].mxu0 %vm63_vm0, %v6278_v13  ;;  %v4930_v9 = vpack.c.bf16 %v2554_v8, %v2553_v7  ;;  %v2572_v11 = vld [vmem:[%s6989_s12 + $0xe8] sm:$0xff]  ;;  %v2555_v16 = vld [vmem:[%s6989_s12 + $0x60] sm:$0xff]  ;;  %v2573_v22 = vld [vmem:[%s6989_s12 + $0xf0] sm:$0xff] }
0x1da0   :  { %4911 = vmatpush3.bf16.msra.mxu0 %v4910_v45  ;;  %v4932_v18 = vpack.c.bf16 %v2572_v11, %v2571_v10  ;;  %v2556_v15 = vld [vmem:[%s6989_s12 + $0x68] sm:$0xff]  ;;  %v2574_v51 = vld [vmem:[%s6989_s12 + $0xf8] sm:$0xff]  ;;  %v2557_v25 = vld [vmem:[%s6989_s12 + $0x70] sm:$0xff] }
0x1da1   :  { %4913 = vmatprep.subr.bf16.mxu0 %v4912_v46  ;;  %v4934_v23 = vpack.c.bf16 %v2556_v15, %v2555_v16  ;;  %v4936_v24 = vpack.c.bf16 %v2574_v51, %v2573_v22  ;;  %v2558_v27 = vld [vmem:[%s6989_s12 + $0x78] sm:$0xff]  ;;  %v2537_v31 = vld [vmem:[%s6981_s4] sm:$0xff]  ;;  %v2538_v33 = vld [vmem:[%s6981_s4 + $0x8] sm:$0xff] }
0x1da2   :  { %v4938_v29 = vpack.c.bf16 %v2558_v27, %v2557_v25  ;;  %v2376_v62 = vld [vmem:[%s6982_s5 + $0x10] sm:$0xff]  ;;  %v2382_v0 = vld [vmem:[%s6982_s5 + $0x40] sm:$0xff]  ;;  %v2808_v16 = vld [vmem:[%s6984_s7 + $0x28] sm:$0xff] }
0x1da3   :  { %v2803_v4 = vld [vmem:[%s6984_s7] sm:$0xff]  ;;  %v2805_v8 = vld [vmem:[%s6984_s7 + $0x10] sm:$0xff]  ;;  %v2713_v22 = vld [vmem:[%s6980_s3 + $0x8] sm:$0xff] }
0x1da4   :  { %4915 = vmatpush3.bf16.msra.mxu0 %v4914_v53  ;;  %v2807_v11 = vld [vmem:[%s6984_s7 + $0x20] sm:$0xff]  ;;  %v2714_v51 = vld [vmem:[%s6980_s3 + $0x10] sm:$0xff] }
0x1da5   :  { %4917 = vmatprep.subr.bf16.mxu0 %v4916_v54 }
0x1da8   :  { %4919 = vmatpush3.bf16.msra.mxu0 %v4918_v57 }
0x1da9   :  { %4921 = vmatprep.subr.bf16.mxu0 %v4920_v58 }
0x1dac   :  { %4923 = vmatpush3.bf16.msra.mxu0 %v4922_v20 }
0x1dad   :  { %4925 = vmatprep.subr.bf16.mxu0 %v4924_v63  ;;  %v2379_v63 = vld [vmem:[%s6982_s5 + $0x28] sm:$0xff] }
0x1dae   :  { %v4903_v1 = vpack.c.bf16 %v2379_v63, %v2376_v62 }
0x1db0   :  { %4927 = vmatpush3.bf16.msra.mxu0 %v4926_v2  ;;  %v2385_v2 = vld [vmem:[%s6982_s5 + $0x58] sm:$0xff]  ;;  %4904 = vmatpush3.bf16.msra.mxu1 %v4903_v1 }
0x1db1   :  { %4929 = vmatprep.subr.bf16.mxu0 %v4928_v5  ;;  %v4906_v3 = vpack.c.bf16 %v2385_v2, %v2382_v0  ;;  %4905 = vmatprep.subr.bf16.mxu1 %v5195_v41  ;;  %v2804_v5 = vld [vmem:[%s6984_s7 + $0x8] sm:$0xff] }
0x1db2   :  { %v4941_v7 = vpack.c.bf16 %v2804_v5, %v2803_v4 }
0x1db4   :  { %4931 = vmatpush3.bf16.msra.mxu0 %v4930_v9  ;;  %4907 = vmatpush3.bf16.msra.mxu1 %v4906_v3  ;;  %v2806_v9 = vld [vmem:[%s6984_s7 + $0x18] sm:$0xff] }
0x1db5   :  { %4933 = vmatprep.subr.bf16.mxu0 %v4932_v18  ;;  %4940 = vmatprep.subr.bf16.mxu1 %v5195_v41  ;;  %v4944_v10 = vpack.c.bf16 %v2806_v9, %v2805_v8  ;;  %v4947_v18 = vpack.c.bf16 %v2808_v16, %v2807_v11  ;;  %v2719_v8 = vld [vmem:[%s6980_s3 + $0x38] sm:$0xff] }
0x1db7   :  { %4488 = vmatmul.mubr.msk.f32.vlgmr.msra.gmra.mrb[0].mxu1 %vm63_vm0, %v6278_v13  ;;  %v2712_v13 = vld [vmem:[%s6980_s3] sm:$0xff] }
0x1db8   :  { %4935 = vmatpush3.bf16.msra.mxu0 %v4934_v23  ;;  %4942 = vmatpush3.bf16.msra.mxu1 %v4941_v7 }
0x1db9   :  { %4937 = vmatprep.subr.bf16.mxu0 %v4936_v24  ;;  %4502 = vmatprep.mubr.msk.f32.mxu1 %vm5196_vm2, %v5194_v6 }
0x1dba   :  { %4943 = vmatprep.subr.bf16.mxu1 %v5195_v41 }
0x1dbc   :  { %4939 = vmatpush3.bf16.msra.mxu0 %v4938_v29  ;;  %4945 = vmatpush3.bf16.msra.mxu1 %v4944_v10 }
0x1dbd   :  { %4946 = vmatprep.subr.bf16.mxu1 %v5195_v41 }
0x1dc0   :  { %4948 = vmatpush3.bf16.msra.mxu1 %v4947_v18 }
0x1dc1   :  { %4949 = vmatprep.subr.bf16.mxu1 %v5195_v41 }
0x1e72   :  { %v2454_v35 = vpop.f32.mrb[0].mxu0 }
0x1e73   :  { %v2539_v37 = vadd.f32 %v2537_v31, %v2454_v35  ;;  %v2456_v38 = vpop.f32.mrb[1].mxu0  ;;  %v2715_v31 = vld [vmem:[%s6980_s3 + $0x18] sm:$0xff] }
0x1e74   :  { %v2540_v39 = vadd.f32 %v2538_v33, %v2456_v38 }
0x1e76   :  { %5127 = vtanh.f32 %v2540_v39 }
0x1e77   :  { %5129 = vtanh.f32 %v2539_v37 }
0x1e80   :  { %v5128_v40 = vpop.eup %5127 }
0x1e81   :  { %v5130_v42 = vpop.eup %5129  ;;  %2639 = vmatprep.mubr.f32.mxu0 %v5128_v40 }
0x1e82   :  { %2640 = vmatmul.mubr.f32.vlgmr.msra.gmra.mrb[2].mxu0 %v5130_v42 }
0x1f55   :  { %v4131_v43 = vpop.f32.mrb[2].mxu0 }
0x1f56   :  { %v4132_v44 = vpop.f32.mrb[3].mxu0 }
0x1f57   :  { %v4133_v45 = vadd.f32 %v4132_v44, %v4131_v43  ;;  %v2716_v43 = vld [vmem:[%s6980_s3 + $0x20] sm:$0xff] }
0x1f59   :  { %v2645_v46 = vsel %vm324_vm1, %v4133_v45, -inf }
0x1f5a   :  { %2646 = vmax.xlane.f32.xlu0 %v2645_v46 }
0x1fe7   :  { %v2647_v47 = vpop.xlane.xlu0 %2646 }
0x1fe8   :  { %v2648_v48 = vsub.f32 %v4133_v45, %v2647_v47 }
0x1fea   :  { %v2649_v49 = vmul.f32 1.442695, %v2648_v48 }
0x1fec   :  { %5131 = vpow2.f32 %v2649_v49 }
0x1ff6   :  { %v5132_v50 = vpop.eup %5131 }
0x1ff7   :  { %v2651_v53 = vsel %vm324_vm1, %v5132_v50, 0.0 }
0x1ff8   :  { %2652 = vadd.xlane.f32.xlu0 %v2651_v53  ;;  %v2717_v53 = vld [vmem:[%s6980_s3 + $0x28] sm:$0xff] }
0x2085   :  { %v2653_v54 = vpop.xlane.xlu0 %2652 }
0x2086   :  { %5133 = vrcp.f32 %v2653_v54 }
0x2090   :  { %v5134_v52 = vpop.eup %5133 }
0x2091   :  { %v2655_v55 = vmul.f32 %v5134_v52, %v5132_v50 }
0x2093   :  { %v2673_v56 = vrot.slane %v2655_v55, %v5430_v19  ;;  %v2659_v14 = vrot.slane %v2655_v55, %v5432_v21  ;;  %v2666_v57 = vrot.slane %v2655_v55, %v5436_v26  ;;  %v2680_v58 = vrot.slane %v2655_v55, %v5439_v28 }
0x2094   :  { %v2687_v59 = vrot.slane %v2655_v55, %v5442_v30  ;;  %v2694_v60 = vrot.slane %v2655_v55, %v5445_v32  ;;  %v2701_v20 = vrot.slane %v2655_v55, %v5448_v34  ;;  %v2708_v61 = vrot.slane %v2655_v55, %v5451_v36 }
0x2095   :  { %2675 = vbcast.lane.b32.xlu0 %v2673_v56, 256  ;;  %2661 = vbcast.lane.b32.xlu1 %v2659_v14, 256 }
0x2099   :  { %2668 = vbcast.lane.b32.xlu1 %v2666_v57, 256 }
0x209d   :  { %2682 = vbcast.lane.b32.xlu1 %v2680_v58, 256 }
0x20a1   :  { %2689 = vbcast.lane.b32.xlu1 %v2687_v59, 256 }
0x20a5   :  { %2696 = vbcast.lane.b32.xlu1 %v2694_v60, 256 }
0x20a9   :  { %2703 = vbcast.lane.b32.xlu1 %v2701_v20, 256  ;;  %v2718_v20 = vld [vmem:[%s6980_s3 + $0x30] sm:$0xff] }
0x20ad   :  { %2710 = vbcast.lane.b32.xlu1 %v2708_v61, 256 }
0x2107   :  { %v2662_v15 = vpop.permute.xlu1 %2661  ;;  %v2676_v23 = vpop.permute.xlu0 %2675 }
0x2108   :  { %v2720_v24 = vmul.f32 %v2712_v13, %v2662_v15  ;;  %v2722_v29 = vmul.f32 %v2714_v51, %v2676_v23 }
0x210a   :  { %v2728_v33 = vsel %vm63_vm0, %v2720_v24, 0.0  ;;  %v2742_v40 = vsel %vm63_vm0, %v2722_v29, 0.0 }
0x210b   :  { %v2669_v25 = vpop.permute.xlu1 %2668  ;;  %v2729_v42 = vrot.slane %v2728_v33, 4  ;;  %v2743_v48 = vrot.slane %v2742_v40, 4 }
0x210c   :  { %v2721_v27 = vmul.f32 %v2713_v22, %v2669_v25 }
0x210d   :  { %v2730_v50 = vadd.f32 %v2729_v42, %v2728_v33  ;;  %v2744_v57 = vadd.f32 %v2743_v48, %v2742_v40 }
0x210e   :  { %v2735_v35 = vsel %vm63_vm0, %v2721_v27, 0.0 }
0x210f   :  { %v2736_v37 = vrot.slane %v2735_v35, 4  ;;  %v2683_v38 = vpop.permute.xlu1 %2682  ;;  %v2731_v59 = vrot.slane %v2730_v50, 2  ;;  %v2745_v2 = vrot.slane %v2744_v57, 2 }
0x2110   :  { %v2723_v39 = vmul.f32 %v2715_v31, %v2683_v38 }
0x2111   :  { %v2737_v45 = vadd.f32 %v2736_v37, %v2735_v35  ;;  %v2732_v5 = vadd.f32 %v2731_v59, %v2730_v50  ;;  %v2746_v15 = vadd.f32 %v2745_v2, %v2744_v57 }
0x2112   :  { %v2749_v44 = vsel %vm63_vm0, %v2723_v39, 0.0 }
0x2113   :  { %v2750_v46 = vrot.slane %v2749_v44, 4  ;;  %v2690_v47 = vpop.permute.xlu1 %2689  ;;  %v2738_v52 = vrot.slane %v2737_v45, 2  ;;  %v2733_v23 = vrot.slane %v2732_v5, 1  ;;  %v2747_v37 = vrot.slane %v2746_v15, 1 }
0x2114   :  { %v2724_v49 = vmul.f32 %v2716_v43, %v2690_v47 }
0x2115   :  { %v2751_v55 = vadd.f32 %v2750_v46, %v2749_v44  ;;  %v2739_v62 = vadd.f32 %v2738_v52, %v2737_v45  ;;  %v2734_v39 = vadd.f32 %v2733_v23, %v2732_v5  ;;  %v2748_v48 = vadd.f32 %v2747_v37, %v2746_v15  ;;  %v2929_v23 = vld [vmem:[%s6986_s9 + $0x8] sm:$0xff] }
0x2116   :  { %v2756_v54 = vsel %vm63_vm0, %v2724_v49, 0.0 }
0x2117   :  { %v2757_v56 = vrot.slane %v2756_v54, 4  ;;  %v2697_v14 = vpop.permute.xlu1 %2696  ;;  %v2752_v63 = vrot.slane %v2751_v55, 2  ;;  %v2740_v10 = vrot.slane %v2739_v62, 1 }
0x2118   :  { %v2725_v58 = vmul.f32 %v2717_v53, %v2697_v14 }
0x2119   :  { %v2758_v60 = vadd.f32 %v2757_v56, %v2756_v54  ;;  %v2753_v11 = vadd.f32 %v2752_v63, %v2751_v55  ;;  %v2741_v29 = vadd.f32 %v2740_v10, %v2739_v62 }
0x211a   :  { %v2763_v61 = vsel %vm63_vm0, %v2725_v58, 0.0 }
0x211b   :  { %v2764_v0 = vrot.slane %v2763_v61, 4  ;;  %v2704_v1 = vpop.permute.xlu1 %2703  ;;  %v2759_v3 = vrot.slane %v2758_v60, 2  ;;  %v2754_v31 = vrot.slane %v2753_v11, 1  ;;  %v2792_v47 = vsel %vm472_vm3, %v2741_v29, %v2734_v39  ;;  %v2935_v39 = vld [vmem:[%s6986_s9 + $0x38] sm:$0xff] }
0x211c   :  { %v2726_v4 = vmul.f32 %v2718_v20, %v2704_v1  ;;  %v2793_v52 = vsel %vm474_vm4, %v2748_v48, %v2792_v47  ;;  %v3849_v20 = vld [vmem:[%s6983_s6] ss:$0 sm:$0xff] }
0x211d   :  { %v2765_v7 = vadd.f32 %v2764_v0, %v2763_v61  ;;  %v2760_v22 = vadd.f32 %v2759_v3, %v2758_v60  ;;  %v2755_v44 = vadd.f32 %v2754_v31, %v2753_v11  ;;  %v2525_v61 = vpop.f32.mrb[0].mxu1  ;;  %v2373_v0 = vld [vmem:[#allocation2] sm:$0xff] }
0x211e   :  { %v2770_v9 = vsel %vm63_vm0, %v2726_v4, 0.0  ;;  %v2536_v62 = vadd.f32 %v3849_v20, %v2525_v61  ;;  %v4489_v63 = vpop.f32.mrb[1].mxu1  ;;  %v3850_v3 = vld [vmem:[%s6985_s8] ss:$0 sm:$0xff] }
0x211f   :  { %v2766_v16 = vrot.slane %v2765_v7, 2  ;;  %v2771_v18 = vrot.slane %v2770_v9, 4  ;;  %v2711_v13 = vpop.permute.xlu1 %2710  ;;  %v2761_v38 = vrot.slane %v2760_v22, 1  ;;  %v2794_v56 = vsel %vm476_vm5, %v2755_v44, %v2793_v52 }
0x2120   :  { %v2727_v51 = vmul.f32 %v2719_v8, %v2711_v13  ;;  %2897 = vrot.lane.b32.xlu0 %v2536_v62, %s5198_s24 }
0x2121   :  { %v2767_v24 = vadd.f32 %v2766_v16, %v2765_v7  ;;  %v2772_v25 = vadd.f32 %v2771_v18, %v2770_v9  ;;  %v2762_v49 = vadd.f32 %v2761_v38, %v2760_v22  ;;  %v2934_v38 = vld [vmem:[%s6986_s9 + $0x30] sm:$0xff] }
0x2122   :  { %v2777_v27 = vsel %vm63_vm0, %v2727_v51, 0.0  ;;  %v2928_v51 = vld [vmem:[%s6986_s9] sm:$0xff] }
0x2123   :  { %v2773_v33 = vrot.slane %v2772_v25, 2  ;;  %v2778_v35 = vrot.slane %v2777_v27, 4  ;;  %v2768_v40 = vrot.slane %v2767_v24, 1  ;;  %v2795_v14 = vsel %vm478_vm6, %v2762_v49, %v2794_v56 }
0x2125   :  { %v2774_v42 = vadd.f32 %v2773_v33, %v2772_v25  ;;  %v2779_v43 = vadd.f32 %v2778_v35, %v2777_v27  ;;  %v2769_v53 = vadd.f32 %v2768_v40, %v2767_v24  ;;  %v2930_v24 = vld [vmem:[%s6986_s9 + $0x10] sm:$0xff]  ;;  %v4950_v25 = vpack.c.bf16 %v2929_v23, %v2928_v51  ;;  %v2931_v27 = vld [vmem:[%s6986_s9 + $0x18] sm:$0xff]  ;;  %v2932_v33 = vld [vmem:[%s6986_s9 + $0x20] sm:$0xff] }
0x2126   :  { %v4953_v29 = vpack.c.bf16 %v2931_v27, %v2930_v24  ;;  %v2933_v35 = vld [vmem:[%s6986_s9 + $0x28] sm:$0xff]  ;;  %v4959_v40 = vpack.c.bf16 %v2935_v39, %v2934_v38 }
0x2127   :  { %v2780_v45 = vrot.slane %v2779_v43, 2  ;;  %v2775_v46 = vrot.slane %v2774_v42, 1  ;;  %v2796_v58 = vsel %vm480_vm7, %v2769_v53, %v2795_v14  ;;  %v4956_v37 = vpack.c.bf16 %v2933_v35, %v2932_v33 }
0x2129   :  { %v2781_v50 = vadd.f32 %v2780_v45, %v2779_v43  ;;  %v2776_v54 = vadd.f32 %v2775_v46, %v2774_v42  ;;  %v2936_v42 = vld [vmem:[%s6986_s9 + $0x40] sm:$0xff]  ;;  %v2937_v43 = vld [vmem:[%s6986_s9 + $0x48] sm:$0xff] }
0x212a   :  { %v4962_v44 = vpack.c.bf16 %v2937_v43, %v2936_v42 }
0x212b   :  { %v2782_v55 = vrot.slane %v2781_v50, 1  ;;  %v2797_v59 = vsel %vm482_vm8, %v2776_v54, %v2796_v58  ;;  %v3857_v58 = vld [vmem:[%s6978_s1 + $0x20] sm:$0xff] (!%p3856_p11) }
0x212c   :  { %3027 = vst.msk [vmem:[#allocation2] sm:$0xff] (!%p3856_p11), %vm489_vm10, %v3857_v58 }
0x212d   :  { %v2783_v57 = vadd.f32 %v2782_v55, %v2781_v50 }
0x212f   :  { %v2798_v60 = vsel %vm484_vm9, %v2783_v57, %v2797_v59 }
0x2130   :  { %2799 = vrot.lane.b32.xlu1 %v2798_v60, %s5197_s21 }
0x2192   :  { %v2898_v16 = vpop.permute.xlu0 %2897 }
0x21a2   :  { %v2800_v1 = vpop.permute.xlu1 %2799 }
0x21a3   :  { %v2802_v2 = vsel %vm489_vm10, %v2373_v0, %v2800_v1 }
0x21a4   :  { %4503 = vmatmul.mubr.msk.f32.vlgmr.msra.gmra.mrb[2].mxu1 %vm504_vm11, %v2802_v2 }
0x21a5   :  { %4525 = vmatprep.mubr.msk.f32.mxu1 %vm5196_vm2, %v5194_v6  ;;  %4951 = vmatpush3.bf16.msra.mxu1 %v4950_v25 }
0x21a6   :  { %4952 = vmatprep.subr.bf16.mxu1 %v5195_v41 }
0x21a9   :  { %4954 = vmatpush3.bf16.msra.mxu1 %v4953_v29 }
0x21aa   :  { %4955 = vmatprep.subr.bf16.mxu1 %v5195_v41 }
0x21ad   :  { %4957 = vmatpush3.bf16.msra.mxu1 %v4956_v37 }
0x21ae   :  { %4958 = vmatprep.subr.bf16.mxu1 %v5195_v41 }
0x21b1   :  { %4960 = vmatpush3.bf16.msra.mxu1 %v4959_v40 }
0x21b2   :  { %4961 = vmatprep.subr.bf16.mxu1 %v5195_v41 }
0x21b5   :  { %4963 = vmatpush3.bf16.msra.mxu1 %v4962_v44 }
0x2277   :  { %v2885_v4 = vpop.f32.mrb[2].mxu1 }
0x2278   :  { %v2886_v5 = vadd.f32 %v3850_v3, %v2885_v4  ;;  %v4504_v7 = vpop.f32.mrb[3].mxu1 }
0x227a   :  { %v2889_v8 = vadd.f32 %v2886_v5, %v2536_v62 }
0x227c   :  { %v3852_v9 = vmul.f32 -1.442695, %v2889_v8 }
0x227e   :  { %5135 = vpow2.f32 %v3852_v9 }
0x2288   :  { %v5136_v10 = vpop.eup %5135 }
0x2289   :  { %v2893_v11 = vadd.f32 1.0, %v5136_v10 }
0x228b   :  { %5137 = vrcp.f32 %v2893_v11 }
0x2295   :  { %v5138_v18 = vpop.eup %5137 }
0x2296   :  { %v2900_v13 = vmul.f32 %v5138_v18, %v2898_v16  ;;  %v2907_v45 = vsub.f32 1.0, %v5138_v18  ;;  %v2913_v48 = vmul.f32 %v5138_v18, %v6273_v12  ;;  %v3853_v12 = vld [vmem:[%s6987_s10] ss:$0 sm:$0xff] }
0x2298   :  { %2902 = vrot.lane.b32.xlu1 %v2900_v13, %s5198_s24 }
0x230a   :  { %v2903_v15 = vpop.permute.xlu1 %2902 }
0x230b   :  { %v2905_v22 = vadd.f32 %v2903_v15, %v2886_v5 }
0x230d   :  { %5139 = vtanh.f32 %v2905_v22 }
0x2317   :  { %v5140_v31 = vpop.eup %5139 }
0x2318   :  { %2909 = vrot.lane.b32.xlu0 %v5140_v31, %s5200_s25 }
0x231c   :  { %2919 = vrot.lane.b32.xlu0 %v2798_v60, %s5199_s29 }
0x238a   :  { %v2910_v46 = vpop.permute.xlu0 %2909 }
0x238b   :  { %v2912_v47 = vmul.f32 %v2910_v46, %v2907_v45 }
0x238d   :  { %v6615_v49 = vadd.f32 %v2913_v48, %v2912_v47 }
0x238e   :  { %v2920_v53 = vpop.permute.xlu0 %2919 }
0x238f   :  { %2916 = vrot.lane.b32.xlu1 %v6615_v49, %s5200_s25 }
0x2393   :  { %2923 = vrot.lane.b32.xlu1 %v2373_v0, %s5198_s24 }
0x2401   :  { %v6620_v50 = vpop.permute.xlu1 %2916 }
0x2402   :  { %v2926_v54 = vsel %vm63_vm0, %v6620_v50, %v2920_v53 }
0x2405   :  { %v2924_v52 = vpop.permute.xlu1 %2923 }
0x2406   :  { %v2927_v55 = vsel %vm619_vm12, %v2926_v54, %v2924_v52 }
0x2407   :  { %4526 = vmatmul.mubr.msk.f32.vlgmr.msra.gmra.mrb[4].mxu1 %vm638_vm13, %v2927_v55 }
0x24d7   :  { %3024 = sbr.rel (%p3856_p11) target bundleno = 9438 (0x24de), region = 77 }
0x24da   :  { %v3014_v56 = vpop.f32.mrb[4].mxu1 }
0x24db   :  { %v3015_v14 = vadd.f32 %v3853_v12, %v3014_v56  ;;  %v4527_v57 = vpop.f32.mrb[5].mxu1 }
0x24dd   :  { %3019 = vst [vmem:[#allocation5 + $0x18] sm:$0xff] %v3015_v14 }
0x24de PF:  { %p3858_p12 = scmp.gt.s32.totalorder %s3855_s19, 0 }
0x24df   :  { %3034 = vmax.xlane.f32.xlu0 (!%p3858_p12), %v3015_v14  ;;  %v6634_v59 = vand.u32 (!%p3858_p12), 127, %v336_v17  ;;  %v3055_v63 = vld [vmem:[%s6988_s11] sm:$0xff] (!%p3858_p12)  ;;  %v3056_v0 = vld [vmem:[%s6988_s11 + $0x8] sm:$0xff] (!%p3858_p12)  ;;  %v3057_v17 = vld [vmem:[%s6988_s11 + $0x10] sm:$0xff] (!%p3858_p12)  ;;  %v5213_v1 = vmov (!%p3858_p12), 0.0|0.0   ;;  %v5215_v39 = vmov (!%p3858_p12), 0.0  }
0x24e0   :  { %3031 = sbr.rel (%p3858_p12) target bundleno = 10091 (0x276b), region = 81  ;;  %4964 = vmatprep.subr.bf16.mxu0 (!%p3858_p12), %v5213_v1  ;;  %v4965_v2 = vpack.c.bf16 (!%p3858_p12), %v3056_v0, %v3055_v63  ;;  %v3058_v3 = vld [vmem:[%s6988_s11 + $0x18] sm:$0xff] (!%p3858_p12)  ;;  %v3059_v5 = vld [vmem:[%s6988_s11 + $0x20] sm:$0xff] (!%p3858_p12)  ;;  %v3060_v7 = vld [vmem:[%s6988_s11 + $0x28] sm:$0xff] (!%p3858_p12)  ;;  %v5216_v46 = vmov (!%p3858_p12), 1.0  }
0x24e1   :  { %v4968_v4 = vpack.c.bf16 (!%p3858_p12), %v3058_v3, %v3057_v17  ;;  %v4971_v8 = vpack.c.bf16 (!%p3858_p12), %v3060_v7, %v3059_v5  ;;  %v3061_v9 = vld [vmem:[%s6988_s11 + $0x30] sm:$0xff] (!%p3858_p12)  ;;  %v3062_v10 = vld [vmem:[%s6988_s11 + $0x38] sm:$0xff] (!%p3858_p12)  ;;  %v3063_v16 = vld [vmem:[%s6988_s11 + $0x40] sm:$0xff] (!%p3858_p12) }
0x24e2   :  { %4966 = vmatpush3.bf16.msra.mxu0 (!%p3858_p12), %v4965_v2  ;;  %v4974_v11 = vpack.c.bf16 (!%p3858_p12), %v3062_v10, %v3061_v9  ;;  %v3064_v18 = vld [vmem:[%s6988_s11 + $0x48] sm:$0xff] (!%p3858_p12)  ;;  %v3065_v15 = vld [vmem:[%s6988_s11 + $0x50] sm:$0xff] (!%p3858_p12)  ;;  %v3066_v22 = vld [vmem:[%s6988_s11 + $0x58] sm:$0xff] (!%p3858_p12) }
0x24e3   :  { %4967 = vmatprep.subr.bf16.mxu0 (!%p3858_p12), %v5213_v1  ;;  %v4977_v13 = vpack.c.bf16 (!%p3858_p12), %v3064_v18, %v3063_v16  ;;  %v4980_v51 = vpack.c.bf16 (!%p3858_p12), %v3066_v22, %v3065_v15  ;;  %v3067_v23 = vld [vmem:[%s6988_s11 + $0x60] sm:$0xff] (!%p3858_p12)  ;;  %v3068_v24 = vld [vmem:[%s6988_s11 + $0x68] sm:$0xff] (!%p3858_p12)  ;;  %v3069_v35 = vld [vmem:[%s6988_s11 + $0x70] sm:$0xff] (!%p3858_p12) }
0x24e4   :  { %v4983_v25 = vpack.c.bf16 (!%p3858_p12), %v3068_v24, %v3067_v23  ;;  %v3070_v37 = vld [vmem:[%s6988_s11 + $0x78] sm:$0xff] (!%p3858_p12) }
0x24e5   :  { %v4986_v38 = vpack.c.bf16 (!%p3858_p12), %v3070_v37, %v3069_v35 }
0x24e6   :  { %4969 = vmatpush3.bf16.msra.mxu0 (!%p3858_p12), %v4968_v4 }
0x24e7   :  { %4970 = vmatprep.subr.bf16.mxu0 %v5213_v1 }
0x24ea   :  { %4972 = vmatpush3.bf16.msra.mxu0 %v4971_v8 }
0x24eb   :  { %4973 = vmatprep.subr.bf16.mxu0 %v5213_v1 }
0x24ee   :  { %4975 = vmatpush3.bf16.msra.mxu0 %v4974_v11 }
0x24ef   :  { %4976 = vmatprep.subr.bf16.mxu0 %v5213_v1 }
0x24f2   :  { %4978 = vmatpush3.bf16.msra.mxu0 %v4977_v13 }
0x24f3   :  { %4979 = vmatprep.subr.bf16.mxu0 %v5213_v1 }
0x24f6   :  { %4981 = vmatpush3.bf16.msra.mxu0 %v4980_v51 }
0x24f7   :  { %4982 = vmatprep.subr.bf16.mxu0 %v5213_v1 }
0x24fa   :  { %4984 = vmatpush3.bf16.msra.mxu0 %v4983_v25 }
0x24fb   :  { %4985 = vmatprep.subr.bf16.mxu0 %v5213_v1 }
0x24fe   :  { %4987 = vmatpush3.bf16.msra.mxu0 %v4986_v38 }
0x256c   :  { %v3035_v60 = vpop.xlane.xlu0 %3034 }
0x256d   :  { %vm3036_vm14 = vcmp.ge.f32.partialorder %v3015_v14, %v3035_v60 }
0x256e   :  { %v3037_v20 = vsel %vm3036_vm14, %v6634_v59, 128  ;;  %vm5214_vm14 = vmmov 0  }
0x256f   :  { %v3039_v61 = vshra.s32 %v3037_v20, 16  ;;  %v3038_v27 = vand.u32 65535, %v3037_v20  ;;  %4560 = vmatprep.mubr.msk.f32.mxu0 %vm5214_vm14, %v5215_v39 }
0x2571   :  { %v3041_v62 = vcvt.s32.f32 %v3039_v61  ;;  %v3040_v31 = vcvt.s32.f32 %v3038_v27 }
0x2573   :  { %3042 = vmin.xlane.f32.xlu0 %v3041_v62 }
0x2600   :  { %v3043_v29 = vpop.xlane.xlu0 %3042 }
0x2601   :  { %vm3044_vm15 = vcmp.eq.f32.partialorder %v3041_v62, %v3043_v29  ;;  %v3049_v40 = vcvt.f32.s32 %v3043_v29 }
0x2602   :  { %v3045_v33 = vsel %vm3044_vm15, %v3040_v31, inf }
0x2603   :  { %3046 = vmin.xlane.f32.xlu1 %v3045_v33  ;;  %v3050_v43 = vshll.u32 %v3049_v40, 16 }
0x2690   :  { %v3047_v42 = vpop.xlane.xlu1 %3046 }
0x2691   :  { %v3048_v44 = vcvt.f32.s32 %v3047_v42 }
0x2693   :  { %v3051_v45 = vadd.s32 %v3050_v43, %v3048_v44 }
0x2695   :  { %vm3052_vm15 = vcmp.eq.s32.totalorder %v6634_v59, %v3051_v45 }
0x2696   :  { %4561 = vmatmul.mubr.msk.f32.vlgmr.msra.gmra.mrb[0].mxu0 %vm3052_vm15, %v5216_v46 }
0x2769   :  { %v3137_v47 = vpop.f32.mrb[0].mxu0 }
0x276a   :  { %3141 = vst.msk [vmem:[#allocation2] sm:$0xff] %vm489_vm10, %v3137_v47  ;;  %v4562_v48 = vpop.f32.mrb[1].mxu0 }
0x276b PF:  { %v3144_v53 = vld [vmem:[%s6982_s5 + $0x8] sm:$0xff]  ;;  %v3147_v54 = vld [vmem:[%s6982_s5 + $0x20] sm:$0xff]  ;;  %3221 = vmatprep.mubr.f32.mxu0 %v5194_v6  ;;  %4996 = vmatprep.subr.bf16.mxu1 %v5195_v41  ;;  %v3146_v12 = vld [vmem:[%s6982_s5 + $0x18] sm:$0xff] }
0x276c   :  { %v3143_v52 = vld [vmem:[%s6982_s5] sm:$0xff]  ;;  %v4988_v55 = vpack.c.bf16 %v3147_v54, %v3144_v53  ;;  %v3150_v56 = vld [vmem:[%s6982_s5 + $0x38] sm:$0xff]  ;;  %v3153_v14 = vld [vmem:[%s6982_s5 + $0x50] sm:$0xff]  ;;  %4571 = vmatprep.mubr.msk.f32.mxu1 %vm5196_vm2, %v5194_v6 }
0x276d   :  { %v4990_v57 = vpack.c.bf16 %v3146_v12, %v3143_v52  ;;  %v4992_v58 = vpack.c.bf16 %v3153_v14, %v3150_v56  ;;  %v3149_v59 = vld [vmem:[%s6982_s5 + $0x30] sm:$0xff]  ;;  %v3152_v60 = vld [vmem:[%s6982_s5 + $0x48] sm:$0xff]  ;;  %v3328_v20 = vld [vmem:[%s6989_s12 + $0x80] sm:$0xff] }
0x276e   :  { %4989 = vmatprep.subr.bf16.mxu0 %v4988_v55  ;;  %v3329_v61 = vld [vmem:[%s6989_s12 + $0x88] sm:$0xff]  ;;  %v4994_v62 = vpack.c.bf16 %v3152_v60, %v3149_v59  ;;  %v3312_v0 = vld [vmem:[%s6989_s12] sm:$0xff]  ;;  %v3330_v1 = vld [vmem:[%s6989_s12 + $0x90] sm:$0xff] }
0x276f   :  { %4991 = vmatpush1.bf16.msra.mxu0 %v4990_v57  ;;  %v5002_v63 = vpack.c.bf16 %v3329_v61, %v3328_v20  ;;  %v3313_v17 = vld [vmem:[%s6989_s12 + $0x8] sm:$0xff]  ;;  %v3331_v2 = vld [vmem:[%s6989_s12 + $0x98] sm:$0xff]  ;;  %v3314_v5 = vld [vmem:[%s6989_s12 + $0x10] sm:$0xff] }
0x2770   :  { %4993 = vmatprep.subr.bf16.mxu0 %v4992_v58  ;;  %v5004_v3 = vpack.c.bf16 %v3313_v17, %v3312_v0  ;;  %v5006_v4 = vpack.c.bf16 %v3331_v2, %v3330_v1  ;;  %v3315_v7 = vld [vmem:[%s6989_s12 + $0x18] sm:$0xff]  ;;  %v3332_v8 = vld [vmem:[%s6989_s12 + $0xa0] sm:$0xff]  ;;  %v3333_v9 = vld [vmem:[%s6989_s12 + $0xa8] sm:$0xff] }
0x2771   :  { %v5008_v10 = vpack.c.bf16 %v3315_v7, %v3314_v5  ;;  %v5010_v11 = vpack.c.bf16 %v3333_v9, %v3332_v8  ;;  %v3316_v16 = vld [vmem:[%s6989_s12 + $0x20] sm:$0xff]  ;;  %v3317_v18 = vld [vmem:[%s6989_s12 + $0x28] sm:$0xff]  ;;  %v3334_v13 = vld [vmem:[%s6989_s12 + $0xb0] sm:$0xff] }
0x2772   :  { %v3335_v15 = vld [vmem:[%s6989_s12 + $0xb8] sm:$0xff]  ;;  %v5012_v22 = vpack.c.bf16 %v3317_v18, %v3316_v16  ;;  %v3318_v23 = vld [vmem:[%s6989_s12 + $0x30] sm:$0xff]  ;;  %v3336_v27 = vld [vmem:[%s6989_s12 + $0xc0] sm:$0xff] }
0x2773   :  { %4995 = vmatpush1.bf16.msra.mxu0 %v4994_v62  ;;  %v5014_v51 = vpack.c.bf16 %v3335_v15, %v3334_v13  ;;  %v3319_v24 = vld [vmem:[%s6989_s12 + $0x38] sm:$0xff]  ;;  %v3337_v29 = vld [vmem:[%s6989_s12 + $0xc8] sm:$0xff]  ;;  %v3320_v33 = vld [vmem:[%s6989_s12 + $0x40] sm:$0xff] }
0x2774   :  { %5003 = vmatprep.subr.bf16.mxu0 %v5002_v63  ;;  %v5016_v25 = vpack.c.bf16 %v3319_v24, %v3318_v23  ;;  %v5018_v31 = vpack.c.bf16 %v3337_v29, %v3336_v27  ;;  %v3321_v35 = vld [vmem:[%s6989_s12 + $0x48] sm:$0xff]  ;;  %v3338_v38 = vld [vmem:[%s6989_s12 + $0xd0] sm:$0xff]  ;;  %v3339_v39 = vld [vmem:[%s6989_s12 + $0xd8] sm:$0xff] }
0x2775   :  { %v5020_v37 = vpack.c.bf16 %v3321_v35, %v3320_v33  ;;  %v5022_v40 = vpack.c.bf16 %v3339_v39, %v3338_v38  ;;  %v3322_v42 = vld [vmem:[%s6989_s12 + $0x50] sm:$0xff]  ;;  %v3323_v43 = vld [vmem:[%s6989_s12 + $0x58] sm:$0xff]  ;;  %v3340_v45 = vld [vmem:[%s6989_s12 + $0xe0] sm:$0xff] }
0x2776   :  { %3861 = vmatmul.mubr.msk.f32.vlgmr.msra.gmra.mrb[0].mxu0 %vm63_vm0, %v6620_v50  ;;  %v5024_v44 = vpack.c.bf16 %v3323_v43, %v3322_v42  ;;  %v3341_v46 = vld [vmem:[%s6989_s12 + $0xe8] sm:$0xff]  ;;  %v3324_v47 = vld [vmem:[%s6989_s12 + $0x60] sm:$0xff]  ;;  %v3342_v54 = vld [vmem:[%s6989_s12 + $0xf0] sm:$0xff] }
0x2777   :  { %5005 = vmatpush3.bf16.msra.mxu0 %v5004_v3  ;;  %v5026_v48 = vpack.c.bf16 %v3341_v46, %v3340_v45  ;;  %v3325_v53 = vld [vmem:[%s6989_s12 + $0x68] sm:$0xff]  ;;  %v3343_v52 = vld [vmem:[%s6989_s12 + $0xf8] sm:$0xff]  ;;  %v3326_v56 = vld [vmem:[%s6989_s12 + $0x70] sm:$0xff] }
0x2778   :  { %5007 = vmatprep.subr.bf16.mxu0 %v5006_v4  ;;  %v5028_v55 = vpack.c.bf16 %v3325_v53, %v3324_v47  ;;  %v5030_v12 = vpack.c.bf16 %v3343_v52, %v3342_v54  ;;  %v3327_v14 = vld [vmem:[%s6989_s12 + $0x78] sm:$0xff]  ;;  %v3306_v58 = vld [vmem:[%s6981_s4] sm:$0xff]  ;;  %v3307_v59 = vld [vmem:[%s6981_s4 + $0x8] sm:$0xff] }
0x2779   :  { %v5032_v57 = vpack.c.bf16 %v3327_v14, %v3326_v56  ;;  %v3574_v29 = vld [vmem:[%s6984_s7 + $0x10] sm:$0xff]  ;;  %v3576_v35 = vld [vmem:[%s6984_s7 + $0x20] sm:$0xff] }
0x277a   :  { %v3483_v42 = vld [vmem:[%s6980_s3 + $0x10] sm:$0xff] }
0x277b   :  { %5009 = vmatpush3.bf16.msra.mxu0 %v5008_v10 }
0x277c   :  { %5011 = vmatprep.subr.bf16.mxu0 %v5010_v11 }
0x277f   :  { %5013 = vmatpush3.bf16.msra.mxu0 %v5012_v22 }
0x2780   :  { %5015 = vmatprep.subr.bf16.mxu0 %v5014_v51 }
0x2783   :  { %5017 = vmatpush3.bf16.msra.mxu0 %v5016_v25  ;;  %v3573_v25 = vld [vmem:[%s6984_s7 + $0x8] sm:$0xff] }
0x2784   :  { %5019 = vmatprep.subr.bf16.mxu0 %v5018_v31  ;;  %v3575_v31 = vld [vmem:[%s6984_s7 + $0x18] sm:$0xff] }
0x2785   :  { %v5038_v33 = vpack.c.bf16 %v3575_v31, %v3574_v29 }
0x2787   :  { %5021 = vmatpush3.bf16.msra.mxu0 %v5020_v37  ;;  %v3577_v37 = vld [vmem:[%s6984_s7 + $0x28] sm:$0xff] }
0x2788   :  { %5023 = vmatprep.subr.bf16.mxu0 %v5022_v40  ;;  %v5041_v38 = vpack.c.bf16 %v3577_v37, %v3576_v35  ;;  %v3482_v40 = vld [vmem:[%s6980_s3 + $0x8] sm:$0xff] }
0x278b   :  { %5025 = vmatpush3.bf16.msra.mxu0 %v5024_v44 }
0x278c   :  { %5027 = vmatprep.subr.bf16.mxu0 %v5026_v48  ;;  %v3484_v48 = vld [vmem:[%s6980_s3 + $0x18] sm:$0xff] }
0x278f   :  { %5029 = vmatpush3.bf16.msra.mxu0 %v5028_v55 }
0x2790   :  { %5031 = vmatprep.subr.bf16.mxu0 %v5030_v12 }
0x2793   :  { %5033 = vmatpush3.bf16.msra.mxu0 %v5032_v57  ;;  %v3485_v57 = vld [vmem:[%s6980_s3 + $0x20] sm:$0xff] }
0x2849   :  { %v3223_v60 = vpop.f32.mrb[0].mxu0 }
0x284a   :  { %v3308_v20 = vadd.f32 %v3306_v58, %v3223_v60  ;;  %v3225_v61 = vpop.f32.mrb[1].mxu0 }
0x284b   :  { %v3309_v62 = vadd.f32 %v3307_v59, %v3225_v61 }
0x284d   :  { %5141 = vtanh.f32 %v3309_v62 }
0x284e   :  { %5143 = vtanh.f32 %v3308_v20 }
0x2857   :  { %v5142_v63 = vpop.eup %5141 }
0x2858   :  { %v5144_v0 = vpop.eup %5143  ;;  %3408 = vmatprep.mubr.f32.mxu0 %v5142_v63 }
0x2859   :  { %3409 = vmatmul.mubr.f32.vlgmr.msra.gmra.mrb[2].mxu0 %v5144_v0  ;;  %v3486_v0 = vld [vmem:[%s6980_s3 + $0x28] sm:$0xff] }
0x292c   :  { %v4206_v17 = vpop.f32.mrb[2].mxu0 }
0x292d   :  { %v4207_v1 = vpop.f32.mrb[3].mxu0 }
0x292e   :  { %v4208_v2 = vadd.f32 %v4207_v1, %v4206_v17 }
0x2930   :  { %v3414_v3 = vsel %vm324_vm1, %v4208_v2, -inf }
0x2931   :  { %3415 = vmax.xlane.f32.xlu0 %v3414_v3 }
0x29be   :  { %v3416_v4 = vpop.xlane.xlu0 %3415 }
0x29bf   :  { %v3417_v5 = vsub.f32 %v4208_v2, %v3416_v4 }
0x29c1   :  { %v3418_v7 = vmul.f32 1.442695, %v3417_v5 }
0x29c3   :  { %5145 = vpow2.f32 %v3418_v7 }
0x29cd   :  { %v5146_v8 = vpop.eup %5145 }
0x29ce   :  { %v3420_v9 = vsel %vm324_vm1, %v5146_v8, 0.0 }
0x29cf   :  { %3421 = vadd.xlane.f32.xlu0 %v3420_v9 }
0x2a5c   :  { %v3422_v10 = vpop.xlane.xlu0 %3421 }
0x2a5d   :  { %5147 = vrcp.f32 %v3422_v10  ;;  %v3487_v10 = vld [vmem:[%s6980_s3 + $0x30] sm:$0xff] }
0x2a67   :  { %v5148_v11 = vpop.eup %5147 }
0x2a68   :  { %v3424_v16 = vmul.f32 %v5148_v11, %v5146_v8 }
0x2a6a   :  { %v3442_v18 = vrot.slane %v3424_v16, %v5430_v19  ;;  %v3428_v13 = vrot.slane %v3424_v16, %v5432_v21  ;;  %v3435_v15 = vrot.slane %v3424_v16, %v5436_v26  ;;  %v3449_v22 = vrot.slane %v3424_v16, %v5439_v28  ;;  %v3145_v21 = vld [vmem:[%s6982_s5 + $0x10] sm:$0xff]  ;;  %v3148_v26 = vld [vmem:[%s6982_s5 + $0x28] sm:$0xff]  ;;  %v3151_v28 = vld [vmem:[%s6982_s5 + $0x40] sm:$0xff] }
0x2a6b   :  { %v3456_v51 = vrot.slane %v3424_v16, %v5442_v30  ;;  %v3463_v23 = vrot.slane %v3424_v16, %v5445_v32  ;;  %v3470_v24 = vrot.slane %v3424_v16, %v5448_v34  ;;  %v3477_v19 = vrot.slane %v3424_v16, %v5451_v36  ;;  %v3154_v32 = vld [vmem:[%s6982_s5 + $0x58] sm:$0xff]  ;;  %v3572_v36 = vld [vmem:[%s6984_s7] sm:$0xff]  ;;  %s5217_s5 = smov [#allocation5]  }
0x2a6c   :  { %3444 = vbcast.lane.b32.xlu0 %v3442_v18, 256  ;;  %3430 = vbcast.lane.b32.xlu1 %v3428_v13, 256  ;;  %v4997_v30 = vpack.c.bf16 %v3148_v26, %v3145_v21  ;;  %v5000_v34 = vpack.c.bf16 %v3154_v32, %v3151_v28  ;;  %v5035_v27 = vpack.c.bf16 %v3573_v25, %v3572_v36  ;;  %v3488_v21 = vld [vmem:[%s6980_s3 + $0x38] sm:$0xff] }
0x2a6e   :  { %4998 = vmatpush3.bf16.msra.mxu1 %v4997_v30 }
0x2a6f   :  { %4999 = vmatprep.subr.bf16.mxu1 %v5195_v41 }
0x2a70   :  { %3437 = vbcast.lane.b32.xlu1 %v3435_v15, 256 }
0x2a72   :  { %5001 = vmatpush3.bf16.msra.mxu1 %v5000_v34 }
0x2a73   :  { %5034 = vmatprep.subr.bf16.mxu1 %v5195_v41 }
0x2a74   :  { %3451 = vbcast.lane.b32.xlu1 %v3449_v22, 256 }
0x2a75   :  { %4572 = vmatmul.mubr.msk.f32.vlgmr.msra.gmra.mrb[0].mxu1 %vm63_vm0, %v6620_v50  ;;  %v3481_v50 = vld [vmem:[%s6980_s3] sm:$0xff]  ;;  %s3794_s3 = sshll.u32 %s5217_s5, 4  ;;  %s3795_s3 = int_to_ptr.vmem [resolvable:$true] %s3794_s3 }
0x2a76   :  { %5036 = vmatpush3.bf16.msra.mxu1 %v5035_v27  ;;  %4586 = vmatprep.mubr.msk.f32.mxu1 %vm5196_vm2, %v5194_v6  ;;  %p5172_p0 = scmp.lt.s32.totalorder %s3795_s3, %s3795_s3 }
0x2a77   :  { %5037 = vmatprep.subr.bf16.mxu1 %v5195_v41 }
0x2a78   :  { %3458 = vbcast.lane.b32.xlu1 %v3456_v51, 256 }
0x2a7a   :  { %5039 = vmatpush3.bf16.msra.mxu1 %v5038_v33 }
0x2a7b   :  { %5040 = vmatprep.subr.bf16.mxu1 %v5195_v41 }
0x2a7c   :  { %3465 = vbcast.lane.b32.xlu1 %v3463_v23, 256 }
0x2a7e   :  { %5042 = vmatpush3.bf16.msra.mxu1 %v5041_v38 }
0x2a7f   :  { %5043 = vmatprep.subr.bf16.mxu1 %v5195_v41 }
0x2a80   :  { %3472 = vbcast.lane.b32.xlu1 %v3470_v24, 256 }
0x2a84   :  { %3479 = vbcast.lane.b32.xlu1 %v3477_v19, 256 }
0x2ade   :  { %v3431_v39 = vpop.permute.xlu1 %3430  ;;  %v3445_v43 = vpop.permute.xlu0 %3444 }
0x2adf   :  { %v3489_v44 = vmul.f32 %v3481_v50, %v3431_v39  ;;  %v3491_v47 = vmul.f32 %v3483_v42, %v3445_v43 }
0x2ae1   :  { %v3497_v53 = vsel %vm63_vm0, %v3489_v44, 0.0  ;;  %v3511_v56 = vsel %vm63_vm0, %v3491_v47, 0.0 }
0x2ae2   :  { %v3438_v45 = vpop.permute.xlu1 %3437  ;;  %v3498_v14 = vrot.slane %v3497_v53, 4  ;;  %v3512_v61 = vrot.slane %v3511_v56, 4 }
0x2ae3   :  { %v3490_v46 = vmul.f32 %v3482_v40, %v3438_v45 }
0x2ae4   :  { %v3499_v63 = vadd.f32 %v3498_v14, %v3497_v53  ;;  %v3513_v5 = vadd.f32 %v3512_v61, %v3511_v56 }
0x2ae5   :  { %v3504_v54 = vsel %vm63_vm0, %v3490_v46, 0.0 }
0x2ae6   :  { %v3505_v52 = vrot.slane %v3504_v54, 4  ;;  %v3452_v55 = vpop.permute.xlu1 %3451  ;;  %v3500_v8 = vrot.slane %v3499_v63, 2  ;;  %v3514_v22 = vrot.slane %v3513_v5, 2 }
0x2ae7   :  { %v3492_v12 = vmul.f32 %v3484_v48, %v3452_v55 }
0x2ae8   :  { %v3506_v59 = vadd.f32 %v3505_v52, %v3504_v54  ;;  %v3501_v24 = vadd.f32 %v3500_v8, %v3499_v63  ;;  %v3515_v25 = vadd.f32 %v3514_v22, %v3513_v5  ;;  %v3864_v8 = vld [vmem:[%s6985_s8] ss:$0 sm:$0xff] }
0x2ae9   :  { %v3518_v58 = vsel %vm63_vm0, %v3492_v12, 0.0 }
0x2aea   :  { %v3519_v60 = vrot.slane %v3518_v58, 4  ;;  %v3459_v20 = vpop.permute.xlu1 %3458  ;;  %v3507_v1 = vrot.slane %v3506_v59, 2  ;;  %v3502_v31 = vrot.slane %v3501_v24, 1  ;;  %v3516_v42 = vrot.slane %v3515_v25, 1 }
0x2aeb   :  { %v3493_v62 = vmul.f32 %v3485_v57, %v3459_v20 }
0x2aec   :  { %v3520_v2 = vadd.f32 %v3519_v60, %v3518_v58  ;;  %v3508_v16 = vadd.f32 %v3507_v1, %v3506_v59  ;;  %v3503_v44 = vadd.f32 %v3502_v31, %v3501_v24  ;;  %v3517_v55 = vadd.f32 %v3516_v42, %v3515_v25  ;;  %v3702_v25 = vld [vmem:[%s6986_s9 + $0x28] sm:$0xff]  ;;  %v3704_v31 = vld [vmem:[%s6986_s9 + $0x38] sm:$0xff] }
0x2aed   :  { %v3525_v17 = vsel %vm63_vm0, %v3493_v62, 0.0 }
0x2aee   :  { %v3526_v3 = vrot.slane %v3525_v17, 4  ;;  %v3466_v4 = vpop.permute.xlu1 %3465  ;;  %v3521_v18 = vrot.slane %v3520_v2, 2  ;;  %v3509_v28 = vrot.slane %v3508_v16, 1 }
0x2aef   :  { %v3494_v7 = vmul.f32 %v3486_v0, %v3466_v4  ;;  %v3142_v4 = vld [vmem:[#allocation2] sm:$0xff] }
0x2af0   :  { %v3527_v9 = vadd.f32 %v3526_v3, %v3525_v17  ;;  %v3522_v30 = vadd.f32 %v3521_v18, %v3520_v2  ;;  %v3510_v38 = vadd.f32 %v3509_v28, %v3508_v16  ;;  %v3863_v17 = vld [vmem:[%s6983_s6] ss:$0 sm:$0xff] }
0x2af1   :  { %v3532_v11 = vsel %vm63_vm0, %v3494_v7, 0.0 }
0x2af2   :  { %v3533_v13 = vrot.slane %v3532_v11, 4  ;;  %v3473_v15 = vpop.permute.xlu1 %3472  ;;  %v3528_v51 = vrot.slane %v3527_v9, 2  ;;  %v3523_v50 = vrot.slane %v3522_v30, 1  ;;  %v3561_v52 = vsel %vm472_vm3, %v3510_v38, %v3503_v44 }
0x2af3   :  { %v3495_v23 = vmul.f32 %v3487_v10, %v3473_v15  ;;  %v3562_v58 = vsel %vm474_vm4, %v3517_v55, %v3561_v52 }
0x2af4   :  { %v3534_v19 = vadd.f32 %v3533_v13, %v3532_v11  ;;  %v3529_v27 = vadd.f32 %v3528_v51, %v3527_v9  ;;  %v3524_v48 = vadd.f32 %v3523_v50, %v3522_v30  ;;  %v3700_v30 = vld [vmem:[%s6986_s9 + $0x18] sm:$0xff] }
0x2af5   :  { %v3539_v26 = vsel %vm63_vm0, %v3495_v23, 0.0 }
0x2af6   :  { %v3535_v32 = vrot.slane %v3534_v19, 2  ;;  %v3540_v34 = vrot.slane %v3539_v26, 4  ;;  %v3480_v36 = vpop.permute.xlu1 %3479  ;;  %v3530_v43 = vrot.slane %v3529_v27, 1  ;;  %v3563_v60 = vsel %vm476_vm5, %v3524_v48, %v3562_v58  ;;  %v3867_v48 = vld [vmem:[%s6987_s10] ss:$0 sm:$0xff] }
0x2af7   :  { %v3496_v29 = vmul.f32 %v3488_v21, %v3480_v36  ;;  %v3698_v21 = vld [vmem:[%s6986_s9 + $0x8] sm:$0xff]  ;;  %v3701_v36 = vld [vmem:[%s6986_s9 + $0x20] sm:$0xff] }
0x2af8   :  { %v3536_v33 = vadd.f32 %v3535_v32, %v3534_v19  ;;  %v3541_v35 = vadd.f32 %v3540_v34, %v3539_v26  ;;  %v3531_v12 = vadd.f32 %v3530_v43, %v3529_v27  ;;  %v3697_v19 = vld [vmem:[%s6986_s9] sm:$0xff]  ;;  %v3699_v26 = vld [vmem:[%s6986_s9 + $0x10] sm:$0xff]  ;;  %v5050_v27 = vpack.c.bf16 %v3702_v25, %v3701_v36 }
0x2af9   :  { %v3546_v37 = vsel %vm63_vm0, %v3496_v29, 0.0  ;;  %v5044_v28 = vpack.c.bf16 %v3698_v21, %v3697_v19  ;;  %v5047_v32 = vpack.c.bf16 %v3700_v30, %v3699_v26  ;;  %v3703_v29 = vld [vmem:[%s6986_s9 + $0x30] sm:$0xff] }
0x2afa   :  { %v3542_v39 = vrot.slane %v3541_v35, 2  ;;  %v3547_v40 = vrot.slane %v3546_v37, 4  ;;  %v3537_v45 = vrot.slane %v3536_v33, 1  ;;  %v3564_v20 = vsel %vm478_vm6, %v3531_v12, %v3563_v60 }
0x2afc   :  { %v3543_v46 = vadd.f32 %v3542_v39, %v3541_v35  ;;  %v3548_v47 = vadd.f32 %v3547_v40, %v3546_v37  ;;  %v3538_v14 = vadd.f32 %v3537_v45, %v3536_v33  ;;  %v5053_v33 = vpack.c.bf16 %v3704_v31, %v3703_v29  ;;  %v3705_v35 = vld [vmem:[%s6986_s9 + $0x40] sm:$0xff]  ;;  %v3706_v37 = vld [vmem:[%s6986_s9 + $0x48] sm:$0xff] }
0x2afd   :  { %v5056_v38 = vpack.c.bf16 %v3706_v37, %v3705_v35 }
0x2afe   :  { %v3549_v53 = vrot.slane %v3548_v47, 2  ;;  %v3544_v54 = vrot.slane %v3543_v46, 1  ;;  %v3565_v62 = vsel %vm480_vm7, %v3538_v14, %v3564_v20 }
0x2b00   :  { %v3550_v56 = vadd.f32 %v3549_v53, %v3548_v47  ;;  %v3545_v57 = vadd.f32 %v3544_v54, %v3543_v46 }
0x2b02   :  { %v3551_v59 = vrot.slane %v3550_v56, 1  ;;  %v3566_v63 = vsel %vm482_vm8, %v3545_v57, %v3565_v62 }
0x2b04   :  { %v3552_v61 = vadd.f32 %v3551_v59, %v3550_v56 }
0x2b06   :  { %v3567_v0 = vsel %vm484_vm9, %v3552_v61, %v3566_v63 }
0x2b07   :  { %3568 = vrot.lane.b32.xlu1 %v3567_v0, %s5197_s21 }
0x2b48   :  { %v3294_v1 = vpop.f32.mrb[0].mxu1 }
0x2b49   :  { %v3305_v2 = vadd.f32 %v3863_v17, %v3294_v1  ;;  %v4573_v3 = vpop.f32.mrb[1].mxu1 }
0x2b4b   :  { %3666 = vrot.lane.b32.xlu0 %v3305_v2, %s5198_s24 }
0x2b79   :  { %v3569_v5 = vpop.permute.xlu1 %3568 }
0x2b7a   :  { %v3571_v7 = vsel %vm489_vm10, %v3142_v4, %v3569_v5 }
0x2b7b   :  { %4587 = vmatmul.mubr.msk.f32.vlgmr.msra.gmra.mrb[2].mxu1 %vm504_vm11, %v3571_v7 }
0x2b7c   :  { %4609 = vmatprep.mubr.msk.f32.mxu1 %vm5196_vm2, %v5194_v6  ;;  %5045 = vmatpush3.bf16.msra.mxu1 %v5044_v28 }
0x2b7d   :  { %5046 = vmatprep.subr.bf16.mxu1 %v5195_v41 }
0x2b80   :  { %5048 = vmatpush3.bf16.msra.mxu1 %v5047_v32 }
0x2b81   :  { %5049 = vmatprep.subr.bf16.mxu1 %v5195_v41 }
0x2b84   :  { %5051 = vmatpush3.bf16.msra.mxu1 %v5050_v27 }
0x2b85   :  { %5052 = vmatprep.subr.bf16.mxu1 %v5195_v41 }
0x2b88   :  { %5054 = vmatpush3.bf16.msra.mxu1 %v5053_v33 }
0x2b89   :  { %5055 = vmatprep.subr.bf16.mxu1 %v5195_v41 }
0x2b8c   :  { %5057 = vmatpush3.bf16.msra.mxu1 %v5056_v38 }
0x2bbd   :  { %v3667_v22 = vpop.permute.xlu0 %3666 }
0x2c4e   :  { %v3654_v9 = vpop.f32.mrb[2].mxu1 }
0x2c4f   :  { %v3655_v10 = vadd.f32 %v3864_v8, %v3654_v9  ;;  %v4588_v11 = vpop.f32.mrb[3].mxu1 }
0x2c51   :  { %v3658_v16 = vadd.f32 %v3655_v10, %v3305_v2 }
0x2c53   :  { %v3866_v18 = vmul.f32 -1.442695, %v3658_v16 }
0x2c55   :  { %5149 = vpow2.f32 %v3866_v18 }
0x2c5f   :  { %v5150_v13 = vpop.eup %5149 }
0x2c60   :  { %v3662_v15 = vadd.f32 1.0, %v5150_v13 }
0x2c62   :  { %5151 = vrcp.f32 %v3662_v15 }
0x2c6c   :  { %v5152_v51 = vpop.eup %5151 }
0x2c6d   :  { %v3669_v23 = vmul.f32 %v5152_v51, %v3667_v22  ;;  %v3676_v50 = vsub.f32 1.0, %v5152_v51  ;;  %v3682_v42 = vmul.f32 %v5152_v51, %v6615_v49 }
0x2c6f   :  { %3671 = vrot.lane.b32.xlu1 %v3669_v23, %s5198_s24 }
0x2ce1   :  { %v3672_v24 = vpop.permute.xlu1 %3671 }
0x2ce2   :  { %v3674_v6 = vadd.f32 %v3672_v24, %v3655_v10 }
0x2ce4   :  { %5153 = vtanh.f32 %v3674_v6 }
0x2cee   :  { %v5154_v34 = vpop.eup %5153 }
0x2cef   :  { %3678 = vrot.lane.b32.xlu0 %v5154_v34, %s5200_s25 }
0x2cf3   :  { %3688 = vrot.lane.b32.xlu0 %v3567_v0, %s5199_s29 }
0x2d61   :  { %v3679_v39 = vpop.permute.xlu0 %3678 }
0x2d62   :  { %v3681_v40 = vmul.f32 %v3679_v39, %v3676_v50 }
0x2d64   :  { %v3683_v43 = vadd.f32 %v3682_v42, %v3681_v40 }
0x2d65   :  { %v3689_v44 = vpop.permute.xlu0 %3688 }
0x2d66   :  { %3685 = vrot.lane.b32.xlu1 %v3683_v43, %s5200_s25 }
0x2d6a   :  { %3692 = vrot.lane.b32.xlu1 %v3142_v4, %s5198_s24  ;;  %s5167_s24 = scalar_lea.vmem %s3795_s3, 640 }
0x2d6b   :  { %p5168_p13 = scmp.ne.s32.totalorder %s3795_s3, %s5167_s24  ;;  %p5173_p1 = scmp.lt.s32.totalorder %s5167_s24, %s5167_s24 }
0x2d6d   :  { %p5174_p2 = por %p5173_p1, %p5172_p0 }
0x2d6f   :  { %p5175_p3 = pnand %p5174_p2, %p5168_p13 }
0x2dd8   :  { %v3686_v41 = vpop.permute.xlu1 %3685 }
0x2dd9   :  { %v3695_v45 = vsel %vm63_vm0, %v3686_v41, %v3689_v44 }
0x2ddc   :  { %v3693_v46 = vpop.permute.xlu1 %3692 }
0x2ddd   :  { %v3696_v47 = vsel %vm619_vm12, %v3695_v45, %v3693_v46 }
0x2dde   :  { %4610 = vmatmul.mubr.msk.f32.vlgmr.msra.gmra.mrb[4].mxu1 %vm638_vm13, %v3696_v47 }
0x2eb1   :  { %v3783_v49 = vpop.f32.mrb[4].mxu1 }
0x2eb2   :  { %v3784_v53 = vadd.f32 %v3867_v48, %v3783_v49  ;;  %v4611_v54 = vpop.f32.mrb[5].mxu1 }
0x2eb4   :  { %3788 = vst [vmem:[#allocation5 + $0x20] sm:$0xff] %v3784_v53 }
0x2eb5   :  { %5178 = shalt.err (!%p5175_p3)
}
0x2eb6   :  { %s5179_s19 = scalar_lea.hbm %s6990_s13, 640 }
0x2eb7   :  { %p5180_p4 = scmp.ne.s32.totalorder %s6990_s13, %s5179_s19  ;;  %p5183_p5 = scmp.lt.u32.totalorder %s5179_s19, %s6990_s13 }
0x2eb9   :  { %p5185_p6 = pnand %p5183_p5, %p5180_p4 }
0x2ebb   :  { %5188 = shalt.err (!%p5185_p6)
}
0x2ebc   :  { %s5218_s8 = smov 128   ;;  %s5219_s22 = smov 8  }
0x2ebd   :  { %3800 = dma.vmem_to_hbm [thread:$0]  %s3795_s3, 640, %s6990_s13, [#allocation6], %s5218_s8, %s5218_s8, %s5219_s22  }
0x2ebe   :  { %5191 = dma.done.wait [#allocation6], 640  }
0x2ebf   :  { %5192 = vsyncadd [#allocation6], 4294966656 }
0x2ec0   :  { %3804 = vsyncpa [#allocation6], 1 }

</bundles_post_ra>
